<compile_context>
chip_gen: v7x
topology: tpu7x:2x2x1
jax: 0.10.0
libtpu: 0.0.40
codegen_flags: <defaults>
</compile_context>

<pallas_src>
import jax
import jax.numpy as jnp
from jax.experimental import pallas as pl
from jax.experimental.pallas import tpu as pltpu

# ---------------- small synthetic config (consistent with the module) -------
SAMPLE_SIZE = 16          # config.sample_size
PATCH = 4                 # config.patch_size
CHANNELS = 4              # config.channels
D_MODEL = 32              # config.d_model
N_HEADS = 4
HEAD_DIM = D_MODEL // N_HEADS
N_LAYERS = 2              # StackedTransformer depth
N_LATENTS = 8             # config.latent_size
LATENT_CHANNELS = 8       # config.latent_channels
N_TOKENS = (SAMPLE_SIZE // PATCH) ** 2
N_SEQ = N_TOKENS + N_LATENTS
PATCH_DIM = CHANNELS * PATCH * PATCH
MLP_HIDDEN = 4 * D_MODEL
LN_EPS = 1e-5


def _layernorm(x, w, b):
    mu = jnp.mean(x, axis=-1, keepdims=True)
    var = jnp.mean((x - mu) ** 2, axis=-1, keepdims=True)
    return (x - mu) * jax.lax.rsqrt(var + LN_EPS) * w + b


def encoder_kernel(patches_ref, wp_ref, latpos_ref, postok_ref, ln_ref,
                   wqkv_ref, wo_ref, w1_ref, w2_ref,
                   bqkv_ref, bo_ref, b1_ref, b2_ref, wout_ref,
                   out_ref, x_scr):
    Bt = patches_ref.shape[0]
    M = Bt * N_SEQ
    f32 = jnp.float32
    bf16 = jnp.bfloat16

    # ---- PatchProjIn: batch folded into M: (Bt*T, C*p*p) @ (C*p*p, D) ------
    patches = patches_ref[...].reshape(Bt * N_TOKENS, PATCH_DIM)       # bf16
    tokens = jnp.dot(patches, wp_ref[...],
                     preferred_element_type=f32)                       # (Bt*T, D)

    # ---- [latents+pos ; tokens+pos] via slice stores into VMEM scratch -----
    x_scr[:, :N_LATENTS, :] = jnp.broadcast_to(latpos_ref[...],
                                               (Bt, N_LATENTS, D_MODEL))
    x_scr[:, N_LATENTS:, :] = (tokens.reshape(Bt, N_TOKENS, D_MODEL)
                               + postok_ref[...][None, :, :])
    xf = x_scr[...].reshape(M, D_MODEL)                                # flat f32

    # TODO(synk): StackedTransformer internals are not shown in the reference
    # snippet; a standard pre-LN block (LN -> MHSA -> residual, LN -> GELU MLP
    # -> residual) is implemented here.
    for l in range(N_LAYERS):
        ln1w = ln_ref[l, 0:1, :]
        ln1b = ln_ref[l, 1:2, :]
        ln2w = ln_ref[l, 2:3, :]
        ln2b = ln_ref[l, 3:4, :]

        # ----- attention block -----
        h = _layernorm(xf, ln1w, ln1b)
        qkv = jnp.dot(h.astype(bf16), wqkv_ref[l],
                      preferred_element_type=f32)                      # (M, 3D)
        qkv = qkv + bqkv_ref[l]
        qkv3 = qkv.reshape(Bt, N_SEQ, 3 * D_MODEL)

        head_outs = []
        for hh in range(N_HEADS):
            q = qkv3[:, :, hh * HEAD_DIM:(hh + 1) * HEAD_DIM]
            k = qkv3[:, :, D_MODEL + hh * HEAD_DIM:
                           D_MODEL + (hh + 1) * HEAD_DIM]
            v = qkv3[:, :, 2 * D_MODEL + hh * HEAD_DIM:
                           2 * D_MODEL + (hh + 1) * HEAD_DIM]
            # scale (1/sqrt(head_dim)) is folded into the Q weights/bias.
            s = jnp.einsum('bqd,bkd->bqk', q.astype(bf16), k.astype(bf16),
                           preferred_element_type=f32)
            s = s - jnp.max(s, axis=-1, keepdims=True)
            e = jnp.exp(s)
            p = e * pl.reciprocal(jnp.sum(e, axis=-1, keepdims=True),
                                  approx=True)
            head_outs.append(
                jnp.einsum('bqk,bkd->bqd', p.astype(bf16), v.astype(bf16),
                           preferred_element_type=f32))
        attn = jnp.concatenate(head_outs, axis=-1).reshape(M, D_MODEL)
        proj = jnp.dot(attn.astype(bf16), wo_ref[l],
                       preferred_element_type=f32)
        xf = xf + proj + bo_ref[l]

        # ----- MLP block -----
        h = _layernorm(xf, ln2w, ln2b)
        h = jnp.dot(h.astype(bf16), w1_ref[l],
                    preferred_element_type=f32) + b1_ref[l]
        # TODO(synk): PyTorch nn.GELU() default is the exact erf form; the
        # tanh approximation is used here (Mosaic-friendly, ~1e-3 difference).
        h = jax.nn.gelu(h, approximate=True)
        h = jnp.dot(h.astype(bf16), w2_ref[l],
                    preferred_element_type=f32) + b2_ref[l]
        xf = xf + h

    # ---- take latent slots and project (Linear, no bias) -------------------
    z = xf.reshape(Bt, N_SEQ, D_MODEL)[:, :N_LATENTS, :]
    z = z.reshape(Bt * N_LATENTS, D_MODEL)
    out = jnp.dot(z.astype(bf16), wout_ref[...], preferred_element_type=f32)
    out_ref[...] = out.reshape(Bt, N_LATENTS, LATENT_CHANNELS)


def init_params(key):
    ks = jax.random.split(key, 10)

    def nrm(k, shape, scale=0.02):
        return jax.random.normal(k, shape, jnp.float32) * scale

    return dict(
        wp=nrm(ks[0], (PATCH_DIM, D_MODEL)),                       # conv-as-matmul
        latents=nrm(ks[1], (N_LATENTS, D_MODEL)),                  # nn.Parameter
        pos=nrm(ks[2], (N_SEQ, D_MODEL)),                          # LearnedPosEnc
        ln1w=jnp.ones((N_LAYERS, 1, D_MODEL), jnp.float32),
        ln1b=jnp.zeros((N_LAYERS, 1, D_MODEL), jnp.float32),
        wq=nrm(ks[3], (N_LAYERS, N_HEADS, D_MODEL, HEAD_DIM)),
        wk=nrm(ks[4], (N_LAYERS, N_HEADS, D_MODEL, HEAD_DIM)),
        wv=nrm(ks[5], (N_LAYERS, N_HEADS, D_MODEL, HEAD_DIM)),
        bq=jnp.zeros((N_LAYERS, N_HEADS, 1, HEAD_DIM), jnp.float32),
        bk=jnp.zeros((N_LAYERS, N_HEADS, 1, HEAD_DIM), jnp.float32),
        bv=jnp.zeros((N_LAYERS, N_HEADS, 1, HEAD_DIM), jnp.float32),
        wo=nrm(ks[6], (N_LAYERS, N_HEADS, HEAD_DIM, D_MODEL)),
        bo=jnp.zeros((N_LAYERS, 1, D_MODEL), jnp.float32),
        ln2w=jnp.ones((N_LAYERS, 1, D_MODEL), jnp.float32),
        ln2b=jnp.zeros((N_LAYERS, 1, D_MODEL), jnp.float32),
        w1=nrm(ks[7], (N_LAYERS, D_MODEL, MLP_HIDDEN)),
        b1=jnp.zeros((N_LAYERS, 1, MLP_HIDDEN), jnp.float32),
        w2=nrm(ks[8], (N_LAYERS, MLP_HIDDEN, D_MODEL)),
        b2=jnp.zeros((N_LAYERS, 1, D_MODEL), jnp.float32),
        wout=nrm(ks[9], (D_MODEL, LATENT_CHANNELS)),               # proj_out
    )


def pack_params(p):
    """Fuse QKV / out-proj, fold attention scale + latent-pos, cast to bf16."""
    L, H, D, hd = N_LAYERS, N_HEADS, D_MODEL, HEAD_DIM
    bf16 = jnp.bfloat16
    scale = 1.0 / (hd ** 0.5)

    def fuse_w(w):                                   # (L,H,D,hd) -> (L,D,H*hd)
        return w.transpose(0, 2, 1, 3).reshape(L, D, H * hd)

    # fold the attention scale into the query projection (softmax(qk/sqrt(d)))
    w_qkv = jnp.concatenate(
        [fuse_w(p["wq"]) * scale, fuse_w(p["wk"]), fuse_w(p["wv"])],
        axis=-1)                                                       # (L,D,3D)
    b_qkv = jnp.concatenate(
        [p["bq"].reshape(L, 1, H * hd) * scale,
         p["bk"].reshape(L, 1, H * hd),
         p["bv"].reshape(L, 1, H * hd)], axis=-1)                      # (L,1,3D)

    ln = jnp.stack([p["ln1w"].reshape(L, D), p["ln1b"].reshape(L, D),
                    p["ln2w"].reshape(L, D), p["ln2b"].reshape(L, D)],
                   axis=1)                                             # (L,4,D)

    # fold the latent-slot positional embedding into the latent tokens
    lat_pos = p["latents"] + p["pos"][:N_LATENTS]                      # (n_lat,D)
    pos_tok = p["pos"][N_LATENTS:]                                     # (T,D)

    return dict(
        wp=p["wp"].astype(bf16),
        lat_pos=lat_pos,
        pos_tok=pos_tok,
        ln=ln,
        w_qkv=w_qkv.astype(bf16),
        w_o=p["wo"].reshape(L, H * hd, D).astype(bf16),                # (L,D,D)
        w1=p["w1"].astype(bf16),
        w2=p["w2"].astype(bf16),
        b_qkv=b_qkv,
        b_o=p["bo"],
        b1=p["b1"],
        b2=p["b2"],
        wout=p["wout"].astype(bf16),
    )


def _full_spec(shape):
    return pl.BlockSpec(shape, lambda b, s=len(shape): (0,) * s)


def _pick_bt(B):
    # Largest divisor of B such that Bt*N_SEQ <= 512 rows: amortizes the
    # ~0.35us/step pipeline overhead and keeps the MXU matmuls tall; leaves
    # multiple grid steps for megacore only when the batch is large.
    best = 1
    for bt in range(1, B + 1):
        if B % bt == 0 and bt * N_SEQ <= 512:
            best = bt
    return best


@jax.jit
def encoder_forward(x_nchw, params):
    B, C, H, W = x_nchw.shape
    gh, gw = H // PATCH, W // PATCH
    # unfold NCHW into per-token patch vectors, (c, ph, pw)-flattened
    patches = x_nchw.reshape(B, C, gh, PATCH, gw, PATCH)
    patches = patches.transpose(0, 2, 4, 1, 3, 5).reshape(B, N_TOKENS, PATCH_DIM)
    patches = patches.astype(jnp.bfloat16)       # halve the per-step input DMA

    pk = pack_params(params)
    Bt = _pick_bt(B)

    in_specs = [
        pl.BlockSpec((Bt, N_TOKENS, PATCH_DIM), lambda b: (b, 0, 0)),
        _full_spec(pk["wp"].shape),
        _full_spec(pk["lat_pos"].shape),
        _full_spec(pk["pos_tok"].shape),
        _full_spec(pk["ln"].shape),
        _full_spec(pk["w_qkv"].shape),
        _full_spec(pk["w_o"].shape),
        _full_spec(pk["w1"].shape),
        _full_spec(pk["w2"].shape),
        _full_spec(pk["b_qkv"].shape),
        _full_spec(pk["b_o"].shape),
        _full_spec(pk["b1"].shape),
        _full_spec(pk["b2"].shape),
        _full_spec(pk["wout"].shape),
    ]
    out_spec = pl.BlockSpec((Bt, N_LATENTS, LATENT_CHANNELS),
                            lambda b: (b, 0, 0))

    return pl.pallas_call(
        encoder_kernel,
        out_shape=jax.ShapeDtypeStruct((B, N_LATENTS, LATENT_CHANNELS),
                                       jnp.float32),
        grid_spec=pltpu.PrefetchScalarGridSpec(
            num_scalar_prefetch=0,
            grid=(B // Bt,),
            in_specs=in_specs,
            out_specs=out_spec,
            scratch_shapes=[pltpu.VMEM((Bt, N_SEQ, D_MODEL), jnp.float32)],
        ),
        compiler_params=pltpu.CompilerParams(
            dimension_semantics=("parallel",)),
    )(patches, pk["wp"], pk["lat_pos"], pk["pos_tok"], pk["ln"],
      pk["w_qkv"], pk["w_o"], pk["w1"], pk["w2"],
      pk["b_qkv"], pk["b_o"], pk["b1"], pk["b2"], pk["wout"])


if __name__ == "__main__":
    key = jax.random.PRNGKey(0)
    kx, kp = jax.random.split(key)
    x = jax.random.normal(kx, (2, CHANNELS, SAMPLE_SIZE, SAMPLE_SIZE),
                          jnp.float32)
    params = init_params(kp)
    z = encoder_forward(x, params)
    jax.block_until_ready(z)
    assert z.shape == (2, N_LATENTS, LATENT_CHANNELS), z.shape
    assert bool(jnp.all(jnp.isfinite(z)))
    print("KERNEL_OK")
</pallas_src>

<mosaic_0001>
module attributes {stable_mosaic.version = 11 : i64} {
  func.func @encoder_kernel(%arg0: i32, %arg1: memref<2x16x64xbf16, #tpu.memory_space<vmem>>, %arg2: memref<64x32xbf16, #tpu.memory_space<vmem>>, %arg3: memref<8x32xf32, #tpu.memory_space<vmem>>, %arg4: memref<16x32xf32, #tpu.memory_space<vmem>>, %arg5: memref<2x4x32xf32, #tpu.memory_space<vmem>>, %arg6: memref<2x32x96xbf16, #tpu.memory_space<vmem>>, %arg7: memref<2x32x32xbf16, #tpu.memory_space<vmem>>, %arg8: memref<2x32x128xbf16, #tpu.memory_space<vmem>>, %arg9: memref<2x128x32xbf16, #tpu.memory_space<vmem>>, %arg10: memref<2x1x96xf32, #tpu.memory_space<vmem>>, %arg11: memref<2x1x32xf32, #tpu.memory_space<vmem>>, %arg12: memref<2x1x128xf32, #tpu.memory_space<vmem>>, %arg13: memref<2x1x32xf32, #tpu.memory_space<vmem>>, %arg14: memref<32x8xbf16, #tpu.memory_space<vmem>>, %arg15: memref<2x8x8xf32, #tpu.memory_space<vmem>>, %arg16: memref<2x24x32xf32, #tpu.memory_space<vmem>>) attributes {dimension_semantics = [#tpu.dimension_semantics<parallel>], iteration_bounds = array<i64: 1>, scalar_prefetch = 0 : i64, scratch_operands = 1 : i64, tpu.core_type = #tpu.core_type<tc>, window_params = [{transform_indices = @transform_0, window_bounds = array<i64: 2, 16, 64>}, {pipeline_mode = #tpu.pipeline_mode<synchronous>, transform_indices = @transform_1, window_bounds = array<i64: 64, 32>}, {pipeline_mode = #tpu.pipeline_mode<synchronous>, transform_indices = @transform_2, window_bounds = array<i64: 8, 32>}, {pipeline_mode = #tpu.pipeline_mode<synchronous>, transform_indices = @transform_3, window_bounds = array<i64: 16, 32>}, {pipeline_mode = #tpu.pipeline_mode<synchronous>, transform_indices = @transform_4, window_bounds = array<i64: 2, 4, 32>}, {pipeline_mode = #tpu.pipeline_mode<synchronous>, transform_indices = @transform_5, window_bounds = array<i64: 2, 32, 96>}, {pipeline_mode = #tpu.pipeline_mode<synchronous>, transform_indices = @transform_6, window_bounds = array<i64: 2, 32, 32>}, {pipeline_mode = #tpu.pipeline_mode<synchronous>, transform_indices = @transform_7, window_bounds = array<i64: 2, 32, 128>}, {pipeline_mode = #tpu.pipeline_mode<synchronous>, transform_indices = @transform_8, window_bounds = array<i64: 2, 128, 32>}, {pipeline_mode = #tpu.pipeline_mode<synchronous>, transform_indices = @transform_9, window_bounds = array<i64: 2, 1, 96>}, {pipeline_mode = #tpu.pipeline_mode<synchronous>, transform_indices = @transform_10, window_bounds = array<i64: 2, 1, 32>}, {pipeline_mode = #tpu.pipeline_mode<synchronous>, transform_indices = @transform_11, window_bounds = array<i64: 2, 1, 128>}, {pipeline_mode = #tpu.pipeline_mode<synchronous>, transform_indices = @transform_12, window_bounds = array<i64: 2, 1, 32>}, {pipeline_mode = #tpu.pipeline_mode<synchronous>, transform_indices = @transform_13, window_bounds = array<i64: 32, 8>}, {transform_indices = @transform_14, window_bounds = array<i64: 2, 8, 8>}]} {
    %c0 = arith.constant 0 : index
    %c0_0 = arith.constant 0 : index
    %c0_1 = arith.constant 0 : index
    %0 = vector.load %arg1[%c0, %c0_0, %c0_1] : memref<2x16x64xbf16, #tpu.memory_space<vmem>>, vector<2x16x64xbf16>
    %1 = vector.shape_cast %0 : vector<2x16x64xbf16> to vector<32x64xbf16>
    %c0_2 = arith.constant 0 : index
    %c0_3 = arith.constant 0 : index
    %2 = vector.load %arg2[%c0_2, %c0_3] : memref<64x32xbf16, #tpu.memory_space<vmem>>, vector<64x32xbf16>
    %cst = arith.constant dense<0.000000e+00> : vector<32x32xf32>
    %3 = tpu.matmul %1, %2, %cst {dimension_numbers = #tpu.dot_dimension_numbers<[1], [0], [0], [1], [0, 0, 1, 1], [], []>} : vector<32x64xbf16>, vector<64x32xbf16>, vector<32x32xf32> -> vector<32x32xf32>
    %c0_4 = arith.constant 0 : index
    %c0_5 = arith.constant 0 : index
    %4 = vector.load %arg3[%c0_4, %c0_5] : memref<8x32xf32, #tpu.memory_space<vmem>>, vector<8x32xf32>
    %5 = vector.shape_cast %4 : vector<8x32xf32> to vector<1x8x32xf32>
    %6 = vector.broadcast %5 : vector<1x8x32xf32> to vector<2x8x32xf32>
    %c0_6 = arith.constant 0 : index
    %c0_7 = arith.constant 0 : index
    %c0_8 = arith.constant 0 : index
    %7 = vector.load %arg16[%c0_6, %c0_7, %c0_8] : memref<2x24x32xf32, #tpu.memory_space<vmem>>, vector<2x8x32xf32>
    tpu.vector_store %arg16[%c0_6, %c0_7, %c0_8], %6 {strides = array<i32>} : memref<2x24x32xf32, #tpu.memory_space<vmem>>, vector<2x8x32xf32>,
    %8 = vector.shape_cast %3 : vector<32x32xf32> to vector<2x16x32xf32>
    %c0_9 = arith.constant 0 : index
    %c0_10 = arith.constant 0 : index
    %9 = vector.load %arg4[%c0_9, %c0_10] : memref<16x32xf32, #tpu.memory_space<vmem>>, vector<16x32xf32>
    %10 = vector.shape_cast %9 : vector<16x32xf32> to vector<1x16x32xf32>
    %11 = vector.broadcast %10 : vector<1x16x32xf32> to vector<2x16x32xf32>
    %12 = arith.addf %8, %11 : vector<2x16x32xf32>
    %c0_11 = arith.constant 0 : index
    %c8 = arith.constant 8 : index
    %c0_12 = arith.constant 0 : index
    %13 = vector.load %arg16[%c0_11, %c8, %c0_12] : memref<2x24x32xf32, #tpu.memory_space<vmem>>, vector<2x16x32xf32>
    tpu.vector_store %arg16[%c0_11, %c8, %c0_12], %12 {strides = array<i32>} : memref<2x24x32xf32, #tpu.memory_space<vmem>>, vector<2x16x32xf32>,
    %c0_13 = arith.constant 0 : index
    %c0_14 = arith.constant 0 : index
    %c0_15 = arith.constant 0 : index
    %14 = vector.load %arg16[%c0_13, %c0_14, %c0_15] : memref<2x24x32xf32, #tpu.memory_space<vmem>>, vector<2x24x32xf32>
    %15 = vector.shape_cast %14 : vector<2x24x32xf32> to vector<48x32xf32>
    %c0_16 = arith.constant 0 : index
    %c0_17 = arith.constant 0 : index
    %c0_18 = arith.constant 0 : index
    %16 = vector.load %arg5[%c0_16, %c0_17, %c0_18] : memref<2x4x32xf32, #tpu.memory_space<vmem>>, vector<1x1x32xf32>
    %17 = vector.shape_cast %16 : vector<1x1x32xf32> to vector<1x32xf32>
    %c0_19 = arith.constant 0 : index
    %c1 = arith.constant 1 : index
    %c0_20 = arith.constant 0 : index
    %18 = vector.load %arg5[%c0_19, %c1, %c0_20] : memref<2x4x32xf32, #tpu.memory_space<vmem>>, vector<1x1x32xf32>
    %19 = vector.shape_cast %18 : vector<1x1x32xf32> to vector<1x32xf32>
    %c0_21 = arith.constant 0 : index
    %c2 = arith.constant 2 : index
    %c0_22 = arith.constant 0 : index
    %20 = vector.load %arg5[%c0_21, %c2, %c0_22] : memref<2x4x32xf32, #tpu.memory_space<vmem>>, vector<1x1x32xf32>
    %21 = vector.shape_cast %20 : vector<1x1x32xf32> to vector<1x32xf32>
    %c0_23 = arith.constant 0 : index
    %c3 = arith.constant 3 : index
    %c0_24 = arith.constant 0 : index
    %22 = vector.load %arg5[%c0_23, %c3, %c0_24] : memref<2x4x32xf32, #tpu.memory_space<vmem>>, vector<1x1x32xf32>
    %23 = vector.shape_cast %22 : vector<1x1x32xf32> to vector<1x32xf32>
    %cst_25 = arith.constant dense<0.000000e+00> : vector<48xf32>
    %24 = vector.multi_reduction <add>, %15, %cst_25 [1] : vector<48x32xf32> to vector<48xf32>
    %25 = vector.shape_cast %24 : vector<48xf32> to vector<48x1xf32>
    %cst_26 = arith.constant 3.200000e+01 : f32
    %26 = vector.broadcast %cst_26 : f32 to vector<48x1xf32>
    %27 = arith.divf %25, %26 : vector<48x1xf32>
    %28 = vector.broadcast %27 : vector<48x1xf32> to vector<48x32xf32>
    %29 = arith.subf %15, %28 : vector<48x32xf32>
    %30 = arith.mulf %29, %29 : vector<48x32xf32>
    %cst_27 = arith.constant dense<0.000000e+00> : vector<48xf32>
    %31 = vector.multi_reduction <add>, %30, %cst_27 [1] : vector<48x32xf32> to vector<48xf32>
    %32 = vector.shape_cast %31 : vector<48xf32> to vector<48x1xf32>
    %cst_28 = arith.constant 3.200000e+01 : f32
    %33 = vector.broadcast %cst_28 : f32 to vector<48x1xf32>
    %34 = arith.divf %32, %33 : vector<48x1xf32>
    %35 = vector.broadcast %27 : vector<48x1xf32> to vector<48x32xf32>
    %36 = arith.subf %15, %35 : vector<48x32xf32>
    %cst_29 = arith.constant 9.99999974E-6 : f32
    %37 = vector.broadcast %cst_29 : f32 to vector<48x1xf32>
    %38 = arith.addf %34, %37 : vector<48x1xf32>
    %39 = math.rsqrt %38 : vector<48x1xf32>
    %40 = vector.broadcast %39 : vector<48x1xf32> to vector<48x32xf32>
    %41 = arith.mulf %36, %40 : vector<48x32xf32>
    %42 = vector.broadcast %17 : vector<1x32xf32> to vector<48x32xf32>
    %43 = arith.mulf %41, %42 : vector<48x32xf32>
    %44 = vector.broadcast %19 : vector<1x32xf32> to vector<48x32xf32>
    %45 = arith.addf %43, %44 : vector<48x32xf32>
    %46 = arith.truncf %45 : vector<48x32xf32> to vector<48x32xbf16>
    %c0_30 = arith.constant 0 : index
    %c0_31 = arith.constant 0 : index
    %c0_32 = arith.constant 0 : index
    %47 = vector.load %arg6[%c0_30, %c0_31, %c0_32] : memref<2x32x96xbf16, #tpu.memory_space<vmem>>, vector<1x32x96xbf16>
    %48 = vector.shape_cast %47 : vector<1x32x96xbf16> to vector<32x96xbf16>
    %cst_33 = arith.constant dense<0.000000e+00> : vector<48x96xf32>
    %49 = tpu.matmul %46, %48, %cst_33 {dimension_numbers = #tpu.dot_dimension_numbers<[1], [0], [0], [1], [0, 0, 1, 1], [], []>} : vector<48x32xbf16>, vector<32x96xbf16>, vector<48x96xf32> -> vector<48x96xf32>
    %c0_34 = arith.constant 0 : index
    %c0_35 = arith.constant 0 : index
    %c0_36 = arith.constant 0 : index
    %50 = vector.load %arg10[%c0_34, %c0_35, %c0_36] : memref<2x1x96xf32, #tpu.memory_space<vmem>>, vector<1x1x96xf32>
    %51 = vector.shape_cast %50 : vector<1x1x96xf32> to vector<1x96xf32>
    %52 = vector.broadcast %51 : vector<1x96xf32> to vector<48x96xf32>
    %53 = arith.addf %49, %52 : vector<48x96xf32>
    %54 = vector.shape_cast %53 : vector<48x96xf32> to vector<2x24x96xf32>
    %55 = vector.extract_strided_slice %54 {offsets = [0, 0, 0], sizes = [2, 24, 8], strides = [1, 1, 1]} : vector<2x24x96xf32> to vector<2x24x8xf32>
    %56 = vector.extract_strided_slice %54 {offsets = [0, 0, 32], sizes = [2, 24, 8], strides = [1, 1, 1]} : vector<2x24x96xf32> to vector<2x24x8xf32>
    %57 = vector.extract_strided_slice %54 {offsets = [0, 0, 64], sizes = [2, 24, 8], strides = [1, 1, 1]} : vector<2x24x96xf32> to vector<2x24x8xf32>
    %58 = arith.truncf %55 : vector<2x24x8xf32> to vector<2x24x8xbf16>
    %59 = arith.truncf %56 : vector<2x24x8xf32> to vector<2x24x8xbf16>
    "tpu.trace_start"() <{level = 10 : i32, message = "bqd,bkd->bqk"}> : () -> ()
    %cst_37 = arith.constant dense<0.000000e+00> : vector<2x24x24xf32>
    %60 = tpu.matmul %58, %59, %cst_37 {dimension_numbers = #tpu.dot_dimension_numbers<[2], [2], [1], [1], [0, 0, 0, 1, 1, 1], [0], [0]>} : vector<2x24x8xbf16>, vector<2x24x8xbf16>, vector<2x24x24xf32> -> vector<2x24x24xf32>
    "tpu.trace_stop"() : () -> ()
    %cst_38 = arith.constant dense<0xFF800000> : vector<2x24xf32>
    %61 = vector.multi_reduction <maximumf>, %60, %cst_38 [2] : vector<2x24x24xf32> to vector<2x24xf32>
    %62 = vector.shape_cast %61 : vector<2x24xf32> to vector<2x24x1xf32>
    %63 = vector.broadcast %62 : vector<2x24x1xf32> to vector<2x24x24xf32>
    %64 = arith.subf %60, %63 : vector<2x24x24xf32>
    %65 = math.exp %64 : vector<2x24x24xf32>
    %cst_39 = arith.constant dense<0.000000e+00> : vector<2x24xf32>
    %66 = vector.multi_reduction <add>, %65, %cst_39 [2] : vector<2x24x24xf32> to vector<2x24xf32>
    %67 = vector.shape_cast %66 : vector<2x24xf32> to vector<2x24x1xf32>
    %68 = tpu.reciprocal %67 {approx = true} : vector<2x24x1xf32> -> vector<2x24x1xf32>
    %69 = vector.broadcast %68 : vector<2x24x1xf32> to vector<2x24x24xf32>
    %70 = arith.mulf %65, %69 : vector<2x24x24xf32>
    %71 = arith.truncf %70 : vector<2x24x24xf32> to vector<2x24x24xbf16>
    %72 = arith.truncf %57 : vector<2x24x8xf32> to vector<2x24x8xbf16>
    "tpu.trace_start"() <{level = 10 : i32, message = "bqk,bkd->bqd"}> : () -> ()
    %cst_40 = arith.constant dense<0.000000e+00> : vector<2x24x8xf32>
    %73 = tpu.matmul %71, %72, %cst_40 {dimension_numbers = #tpu.dot_dimension_numbers<[2], [1], [1], [2], [0, 0, 0, 1, 1, 2], [0], [0]>} : vector<2x24x24xbf16>, vector<2x24x8xbf16>, vector<2x24x8xf32> -> vector<2x24x8xf32>
    "tpu.trace_stop"() : () -> ()
    %74 = vector.extract_strided_slice %54 {offsets = [0, 0, 8], sizes = [2, 24, 8], strides = [1, 1, 1]} : vector<2x24x96xf32> to vector<2x24x8xf32>
    %75 = vector.extract_strided_slice %54 {offsets = [0, 0, 40], sizes = [2, 24, 8], strides = [1, 1, 1]} : vector<2x24x96xf32> to vector<2x24x8xf32>
    %76 = vector.extract_strided_slice %54 {offsets = [0, 0, 72], sizes = [2, 24, 8], strides = [1, 1, 1]} : vector<2x24x96xf32> to vector<2x24x8xf32>
    %77 = arith.truncf %74 : vector<2x24x8xf32> to vector<2x24x8xbf16>
    %78 = arith.truncf %75 : vector<2x24x8xf32> to vector<2x24x8xbf16>
    "tpu.trace_start"() <{level = 10 : i32, message = "bqd,bkd->bqk"}> : () -> ()
    %cst_41 = arith.constant dense<0.000000e+00> : vector<2x24x24xf32>
    %79 = tpu.matmul %77, %78, %cst_41 {dimension_numbers = #tpu.dot_dimension_numbers<[2], [2], [1], [1], [0, 0, 0, 1, 1, 1], [0], [0]>} : vector<2x24x8xbf16>, vector<2x24x8xbf16>, vector<2x24x24xf32> -> vector<2x24x24xf32>
    "tpu.trace_stop"() : () -> ()
    %cst_42 = arith.constant dense<0xFF800000> : vector<2x24xf32>
    %80 = vector.multi_reduction <maximumf>, %79, %cst_42 [2] : vector<2x24x24xf32> to vector<2x24xf32>
    %81 = vector.shape_cast %80 : vector<2x24xf32> to vector<2x24x1xf32>
    %82 = vector.broadcast %81 : vector<2x24x1xf32> to vector<2x24x24xf32>
    %83 = arith.subf %79, %82 : vector<2x24x24xf32>
    %84 = math.exp %83 : vector<2x24x24xf32>
    %cst_43 = arith.constant dense<0.000000e+00> : vector<2x24xf32>
    %85 = vector.multi_reduction <add>, %84, %cst_43 [2] : vector<2x24x24xf32> to vector<2x24xf32>
    %86 = vector.shape_cast %85 : vector<2x24xf32> to vector<2x24x1xf32>
    %87 = tpu.reciprocal %86 {approx = true} : vector<2x24x1xf32> -> vector<2x24x1xf32>
    %88 = vector.broadcast %87 : vector<2x24x1xf32> to vector<2x24x24xf32>
    %89 = arith.mulf %84, %88 : vector<2x24x24xf32>
    %90 = arith.truncf %89 : vector<2x24x24xf32> to vector<2x24x24xbf16>
    %91 = arith.truncf %76 : vector<2x24x8xf32> to vector<2x24x8xbf16>
    "tpu.trace_start"() <{level = 10 : i32, message = "bqk,bkd->bqd"}> : () -> ()
    %cst_44 = arith.constant dense<0.000000e+00> : vector<2x24x8xf32>
    %92 = tpu.matmul %90, %91, %cst_44 {dimension_numbers = #tpu.dot_dimension_numbers<[2], [1], [1], [2], [0, 0, 0, 1, 1, 2], [0], [0]>} : vector<2x24x24xbf16>, vector<2x24x8xbf16>, vector<2x24x8xf32> -> vector<2x24x8xf32>
    "tpu.trace_stop"() : () -> ()
    %93 = vector.extract_strided_slice %54 {offsets = [0, 0, 16], sizes = [2, 24, 8], strides = [1, 1, 1]} : vector<2x24x96xf32> to vector<2x24x8xf32>
    %94 = vector.extract_strided_slice %54 {offsets = [0, 0, 48], sizes = [2, 24, 8], strides = [1, 1, 1]} : vector<2x24x96xf32> to vector<2x24x8xf32>
    %95 = vector.extract_strided_slice %54 {offsets = [0, 0, 80], sizes = [2, 24, 8], strides = [1, 1, 1]} : vector<2x24x96xf32> to vector<2x24x8xf32>
    %96 = arith.truncf %93 : vector<2x24x8xf32> to vector<2x24x8xbf16>
    %97 = arith.truncf %94 : vector<2x24x8xf32> to vector<2x24x8xbf16>
    "tpu.trace_start"() <{level = 10 : i32, message = "bqd,bkd->bqk"}> : () -> ()
    %cst_45 = arith.constant dense<0.000000e+00> : vector<2x24x24xf32>
    %98 = tpu.matmul %96, %97, %cst_45 {dimension_numbers = #tpu.dot_dimension_numbers<[2], [2], [1], [1], [0, 0, 0, 1, 1, 1], [0], [0]>} : vector<2x24x8xbf16>, vector<2x24x8xbf16>, vector<2x24x24xf32> -> vector<2x24x24xf32>
    "tpu.trace_stop"() : () -> ()
    %cst_46 = arith.constant dense<0xFF800000> : vector<2x24xf32>
    %99 = vector.multi_reduction <maximumf>, %98, %cst_46 [2] : vector<2x24x24xf32> to vector<2x24xf32>
    %100 = vector.shape_cast %99 : vector<2x24xf32> to vector<2x24x1xf32>
    %101 = vector.broadcast %100 : vector<2x24x1xf32> to vector<2x24x24xf32>
    %102 = arith.subf %98, %101 : vector<2x24x24xf32>
    %103 = math.exp %102 : vector<2x24x24xf32>
    %cst_47 = arith.constant dense<0.000000e+00> : vector<2x24xf32>
    %104 = vector.multi_reduction <add>, %103, %cst_47 [2] : vector<2x24x24xf32> to vector<2x24xf32>
    %105 = vector.shape_cast %104 : vector<2x24xf32> to vector<2x24x1xf32>
    %106 = tpu.reciprocal %105 {approx = true} : vector<2x24x1xf32> -> vector<2x24x1xf32>
    %107 = vector.broadcast %106 : vector<2x24x1xf32> to vector<2x24x24xf32>
    %108 = arith.mulf %103, %107 : vector<2x24x24xf32>
    %109 = arith.truncf %108 : vector<2x24x24xf32> to vector<2x24x24xbf16>
    %110 = arith.truncf %95 : vector<2x24x8xf32> to vector<2x24x8xbf16>
    "tpu.trace_start"() <{level = 10 : i32, message = "bqk,bkd->bqd"}> : () -> ()
    %cst_48 = arith.constant dense<0.000000e+00> : vector<2x24x8xf32>
    %111 = tpu.matmul %109, %110, %cst_48 {dimension_numbers = #tpu.dot_dimension_numbers<[2], [1], [1], [2], [0, 0, 0, 1, 1, 2], [0], [0]>} : vector<2x24x24xbf16>, vector<2x24x8xbf16>, vector<2x24x8xf32> -> vector<2x24x8xf32>
    "tpu.trace_stop"() : () -> ()
    %112 = vector.extract_strided_slice %54 {offsets = [0, 0, 24], sizes = [2, 24, 8], strides = [1, 1, 1]} : vector<2x24x96xf32> to vector<2x24x8xf32>
    %113 = vector.extract_strided_slice %54 {offsets = [0, 0, 56], sizes = [2, 24, 8], strides = [1, 1, 1]} : vector<2x24x96xf32> to vector<2x24x8xf32>
    %114 = vector.extract_strided_slice %54 {offsets = [0, 0, 88], sizes = [2, 24, 8], strides = [1, 1, 1]} : vector<2x24x96xf32> to vector<2x24x8xf32>
    %115 = arith.truncf %112 : vector<2x24x8xf32> to vector<2x24x8xbf16>
    %116 = arith.truncf %113 : vector<2x24x8xf32> to vector<2x24x8xbf16>
    "tpu.trace_start"() <{level = 10 : i32, message = "bqd,bkd->bqk"}> : () -> ()
    %cst_49 = arith.constant dense<0.000000e+00> : vector<2x24x24xf32>
    %117 = tpu.matmul %115, %116, %cst_49 {dimension_numbers = #tpu.dot_dimension_numbers<[2], [2], [1], [1], [0, 0, 0, 1, 1, 1], [0], [0]>} : vector<2x24x8xbf16>, vector<2x24x8xbf16>, vector<2x24x24xf32> -> vector<2x24x24xf32>
    "tpu.trace_stop"() : () -> ()
    %cst_50 = arith.constant dense<0xFF800000> : vector<2x24xf32>
    %118 = vector.multi_reduction <maximumf>, %117, %cst_50 [2] : vector<2x24x24xf32> to vector<2x24xf32>
    %119 = vector.shape_cast %118 : vector<2x24xf32> to vector<2x24x1xf32>
    %120 = vector.broadcast %119 : vector<2x24x1xf32> to vector<2x24x24xf32>
    %121 = arith.subf %117, %120 : vector<2x24x24xf32>
    %122 = math.exp %121 : vector<2x24x24xf32>
    %cst_51 = arith.constant dense<0.000000e+00> : vector<2x24xf32>
    %123 = vector.multi_reduction <add>, %122, %cst_51 [2] : vector<2x24x24xf32> to vector<2x24xf32>
    %124 = vector.shape_cast %123 : vector<2x24xf32> to vector<2x24x1xf32>
    %125 = tpu.reciprocal %124 {approx = true} : vector<2x24x1xf32> -> vector<2x24x1xf32>
    %126 = vector.broadcast %125 : vector<2x24x1xf32> to vector<2x24x24xf32>
    %127 = arith.mulf %122, %126 : vector<2x24x24xf32>
    %128 = arith.truncf %127 : vector<2x24x24xf32> to vector<2x24x24xbf16>
    %129 = arith.truncf %114 : vector<2x24x8xf32> to vector<2x24x8xbf16>
    "tpu.trace_start"() <{level = 10 : i32, message = "bqk,bkd->bqd"}> : () -> ()
    %cst_52 = arith.constant dense<0.000000e+00> : vector<2x24x8xf32>
    %130 = tpu.matmul %128, %129, %cst_52 {dimension_numbers = #tpu.dot_dimension_numbers<[2], [1], [1], [2], [0, 0, 0, 1, 1, 2], [0], [0]>} : vector<2x24x24xbf16>, vector<2x24x8xbf16>, vector<2x24x8xf32> -> vector<2x24x8xf32>
    "tpu.trace_stop"() : () -> ()
    %131 = tpu.concatenate %73, %92, %111, %130 in 2 : vector<2x24x8xf32>, vector<2x24x8xf32>, vector<2x24x8xf32>, vector<2x24x8xf32> -> vector<2x24x32xf32>
    %132 = vector.shape_cast %131 : vector<2x24x32xf32> to vector<48x32xf32>
    %133 = arith.truncf %132 : vector<48x32xf32> to vector<48x32xbf16>
    %c0_53 = arith.constant 0 : index
    %c0_54 = arith.constant 0 : index
    %c0_55 = arith.constant 0 : index
    %134 = vector.load %arg7[%c0_53, %c0_54, %c0_55] : memref<2x32x32xbf16, #tpu.memory_space<vmem>>, vector<1x32x32xbf16>
    %135 = vector.shape_cast %134 : vector<1x32x32xbf16> to vector<32x32xbf16>
    %cst_56 = arith.constant dense<0.000000e+00> : vector<48x32xf32>
    %136 = tpu.matmul %133, %135, %cst_56 {dimension_numbers = #tpu.dot_dimension_numbers<[1], [0], [0], [1], [0, 0, 1, 1], [], []>} : vector<48x32xbf16>, vector<32x32xbf16>, vector<48x32xf32> -> vector<48x32xf32>
    %137 = arith.addf %15, %136 : vector<48x32xf32>
    %c0_57 = arith.constant 0 : index
    %c0_58 = arith.constant 0 : index
    %c0_59 = arith.constant 0 : index
    %138 = vector.load %arg11[%c0_57, %c0_58, %c0_59] : memref<2x1x32xf32, #tpu.memory_space<vmem>>, vector<1x1x32xf32>
    %139 = vector.shape_cast %138 : vector<1x1x32xf32> to vector<1x32xf32>
    %140 = vector.broadcast %139 : vector<1x32xf32> to vector<48x32xf32>
    %141 = arith.addf %137, %140 : vector<48x32xf32>
    %cst_60 = arith.constant dense<0.000000e+00> : vector<48xf32>
    %142 = vector.multi_reduction <add>, %141, %cst_60 [1] : vector<48x32xf32> to vector<48xf32>
    %143 = vector.shape_cast %142 : vector<48xf32> to vector<48x1xf32>
    %cst_61 = arith.constant 3.200000e+01 : f32
    %144 = vector.broadcast %cst_61 : f32 to vector<48x1xf32>
    %145 = arith.divf %143, %144 : vector<48x1xf32>
    %146 = vector.broadcast %145 : vector<48x1xf32> to vector<48x32xf32>
    %147 = arith.subf %141, %146 : vector<48x32xf32>
    %148 = arith.mulf %147, %147 : vector<48x32xf32>
    %cst_62 = arith.constant dense<0.000000e+00> : vector<48xf32>
    %149 = vector.multi_reduction <add>, %148, %cst_62 [1] : vector<48x32xf32> to vector<48xf32>
    %150 = vector.shape_cast %149 : vector<48xf32> to vector<48x1xf32>
    %cst_63 = arith.constant 3.200000e+01 : f32
    %151 = vector.broadcast %cst_63 : f32 to vector<48x1xf32>
    %152 = arith.divf %150, %151 : vector<48x1xf32>
    %153 = vector.broadcast %145 : vector<48x1xf32> to vector<48x32xf32>
    %154 = arith.subf %141, %153 : vector<48x32xf32>
    %cst_64 = arith.constant 9.99999974E-6 : f32
    %155 = vector.broadcast %cst_64 : f32 to vector<48x1xf32>
    %156 = arith.addf %152, %155 : vector<48x1xf32>
    %157 = math.rsqrt %156 : vector<48x1xf32>
    %158 = vector.broadcast %157 : vector<48x1xf32> to vector<48x32xf32>
    %159 = arith.mulf %154, %158 : vector<48x32xf32>
    %160 = vector.broadcast %21 : vector<1x32xf32> to vector<48x32xf32>
    %161 = arith.mulf %159, %160 : vector<48x32xf32>
    %162 = vector.broadcast %23 : vector<1x32xf32> to vector<48x32xf32>
    %163 = arith.addf %161, %162 : vector<48x32xf32>
    %164 = arith.truncf %163 : vector<48x32xf32> to vector<48x32xbf16>
    %c0_65 = arith.constant 0 : index
    %c0_66 = arith.constant 0 : index
    %c0_67 = arith.constant 0 : index
    %165 = vector.load %arg8[%c0_65, %c0_66, %c0_67] : memref<2x32x128xbf16, #tpu.memory_space<vmem>>, vector<1x32x128xbf16>
    %166 = vector.shape_cast %165 : vector<1x32x128xbf16> to vector<32x128xbf16>
    %cst_68 = arith.constant dense<0.000000e+00> : vector<48x128xf32>
    %167 = tpu.matmul %164, %166, %cst_68 {dimension_numbers = #tpu.dot_dimension_numbers<[1], [0], [0], [1], [0, 0, 1, 1], [], []>} : vector<48x32xbf16>, vector<32x128xbf16>, vector<48x128xf32> -> vector<48x128xf32>
    %c0_69 = arith.constant 0 : index
    %c0_70 = arith.constant 0 : index
    %c0_71 = arith.constant 0 : index
    %168 = vector.load %arg12[%c0_69, %c0_70, %c0_71] : memref<2x1x128xf32, #tpu.memory_space<vmem>>, vector<1x1x128xf32>
    %169 = vector.shape_cast %168 : vector<1x1x128xf32> to vector<1x128xf32>
    %170 = vector.broadcast %169 : vector<1x128xf32> to vector<48x128xf32>
    %171 = arith.addf %167, %170 : vector<48x128xf32>
    %172 = arith.mulf %171, %171 : vector<48x128xf32>
    %173 = arith.mulf %171, %172 : vector<48x128xf32>
    %cst_72 = arith.constant 4.471500e-02 : f32
    %174 = vector.broadcast %cst_72 : f32 to vector<48x128xf32>
    %175 = arith.mulf %174, %173 : vector<48x128xf32>
    %176 = arith.addf %171, %175 : vector<48x128xf32>
    %cst_73 = arith.constant 0.797884583 : f32
    %177 = vector.broadcast %cst_73 : f32 to vector<48x128xf32>
    %178 = arith.mulf %177, %176 : vector<48x128xf32>
    %179 = math.tanh %178 : vector<48x128xf32>
    %cst_74 = arith.constant 1.000000e+00 : f32
    %180 = vector.broadcast %cst_74 : f32 to vector<48x128xf32>
    %181 = arith.addf %180, %179 : vector<48x128xf32>
    %cst_75 = arith.constant 5.000000e-01 : f32
    %182 = vector.broadcast %cst_75 : f32 to vector<48x128xf32>
    %183 = arith.mulf %182, %181 : vector<48x128xf32>
    %184 = arith.mulf %171, %183 : vector<48x128xf32>
    %185 = arith.truncf %184 : vector<48x128xf32> to vector<48x128xbf16>
    %c0_76 = arith.constant 0 : index
    %c0_77 = arith.constant 0 : index
    %c0_78 = arith.constant 0 : index
    %186 = vector.load %arg9[%c0_76, %c0_77, %c0_78] : memref<2x128x32xbf16, #tpu.memory_space<vmem>>, vector<1x128x32xbf16>
    %187 = vector.shape_cast %186 : vector<1x128x32xbf16> to vector<128x32xbf16>
    %cst_79 = arith.constant dense<0.000000e+00> : vector<48x32xf32>
    %188 = tpu.matmul %185, %187, %cst_79 {dimension_numbers = #tpu.dot_dimension_numbers<[1], [0], [0], [1], [0, 0, 1, 1], [], []>} : vector<48x128xbf16>, vector<128x32xbf16>, vector<48x32xf32> -> vector<48x32xf32>
    %c0_80 = arith.constant 0 : index
    %c0_81 = arith.constant 0 : index
    %c0_82 = arith.constant 0 : index
    %189 = vector.load %arg13[%c0_80, %c0_81, %c0_82] : memref<2x1x32xf32, #tpu.memory_space<vmem>>, vector<1x1x32xf32>
    %190 = vector.shape_cast %189 : vector<1x1x32xf32> to vector<1x32xf32>
    %191 = vector.broadcast %190 : vector<1x32xf32> to vector<48x32xf32>
    %192 = arith.addf %188, %191 : vector<48x32xf32>
    %193 = arith.addf %141, %192 : vector<48x32xf32>
    %c1_83 = arith.constant 1 : index
    %c0_84 = arith.constant 0 : index
    %c0_85 = arith.constant 0 : index
    %194 = vector.load %arg5[%c1_83, %c0_84, %c0_85] : memref<2x4x32xf32, #tpu.memory_space<vmem>>, vector<1x1x32xf32>
    %195 = vector.shape_cast %194 : vector<1x1x32xf32> to vector<1x32xf32>
    %c1_86 = arith.constant 1 : index
    %c1_87 = arith.constant 1 : index
    %c0_88 = arith.constant 0 : index
    %196 = vector.load %arg5[%c1_86, %c1_87, %c0_88] : memref<2x4x32xf32, #tpu.memory_space<vmem>>, vector<1x1x32xf32>
    %197 = vector.shape_cast %196 : vector<1x1x32xf32> to vector<1x32xf32>
    %c1_89 = arith.constant 1 : index
    %c2_90 = arith.constant 2 : index
    %c0_91 = arith.constant 0 : index
    %198 = vector.load %arg5[%c1_89, %c2_90, %c0_91] : memref<2x4x32xf32, #tpu.memory_space<vmem>>, vector<1x1x32xf32>
    %199 = vector.shape_cast %198 : vector<1x1x32xf32> to vector<1x32xf32>
    %c1_92 = arith.constant 1 : index
    %c3_93 = arith.constant 3 : index
    %c0_94 = arith.constant 0 : index
    %200 = vector.load %arg5[%c1_92, %c3_93, %c0_94] : memref<2x4x32xf32, #tpu.memory_space<vmem>>, vector<1x1x32xf32>
    %201 = vector.shape_cast %200 : vector<1x1x32xf32> to vector<1x32xf32>
    %cst_95 = arith.constant dense<0.000000e+00> : vector<48xf32>
    %202 = vector.multi_reduction <add>, %193, %cst_95 [1] : vector<48x32xf32> to vector<48xf32>
    %203 = vector.shape_cast %202 : vector<48xf32> to vector<48x1xf32>
    %cst_96 = arith.constant 3.200000e+01 : f32
    %204 = vector.broadcast %cst_96 : f32 to vector<48x1xf32>
    %205 = arith.divf %203, %204 : vector<48x1xf32>
    %206 = vector.broadcast %205 : vector<48x1xf32> to vector<48x32xf32>
    %207 = arith.subf %193, %206 : vector<48x32xf32>
    %208 = arith.mulf %207, %207 : vector<48x32xf32>
    %cst_97 = arith.constant dense<0.000000e+00> : vector<48xf32>
    %209 = vector.multi_reduction <add>, %208, %cst_97 [1] : vector<48x32xf32> to vector<48xf32>
    %210 = vector.shape_cast %209 : vector<48xf32> to vector<48x1xf32>
    %cst_98 = arith.constant 3.200000e+01 : f32
    %211 = vector.broadcast %cst_98 : f32 to vector<48x1xf32>
    %212 = arith.divf %210, %211 : vector<48x1xf32>
    %213 = vector.broadcast %205 : vector<48x1xf32> to vector<48x32xf32>
    %214 = arith.subf %193, %213 : vector<48x32xf32>
    %cst_99 = arith.constant 9.99999974E-6 : f32
    %215 = vector.broadcast %cst_99 : f32 to vector<48x1xf32>
    %216 = arith.addf %212, %215 : vector<48x1xf32>
    %217 = math.rsqrt %216 : vector<48x1xf32>
    %218 = vector.broadcast %217 : vector<48x1xf32> to vector<48x32xf32>
    %219 = arith.mulf %214, %218 : vector<48x32xf32>
    %220 = vector.broadcast %195 : vector<1x32xf32> to vector<48x32xf32>
    %221 = arith.mulf %219, %220 : vector<48x32xf32>
    %222 = vector.broadcast %197 : vector<1x32xf32> to vector<48x32xf32>
    %223 = arith.addf %221, %222 : vector<48x32xf32>
    %224 = arith.truncf %223 : vector<48x32xf32> to vector<48x32xbf16>
    %c1_100 = arith.constant 1 : index
    %c0_101 = arith.constant 0 : index
    %c0_102 = arith.constant 0 : index
    %225 = vector.load %arg6[%c1_100, %c0_101, %c0_102] : memref<2x32x96xbf16, #tpu.memory_space<vmem>>, vector<1x32x96xbf16>
    %226 = vector.shape_cast %225 : vector<1x32x96xbf16> to vector<32x96xbf16>
    %cst_103 = arith.constant dense<0.000000e+00> : vector<48x96xf32>
    %227 = tpu.matmul %224, %226, %cst_103 {dimension_numbers = #tpu.dot_dimension_numbers<[1], [0], [0], [1], [0, 0, 1, 1], [], []>} : vector<48x32xbf16>, vector<32x96xbf16>, vector<48x96xf32> -> vector<48x96xf32>
    %c1_104 = arith.constant 1 : index
    %c0_105 = arith.constant 0 : index
    %c0_106 = arith.constant 0 : index
    %228 = vector.load %arg10[%c1_104, %c0_105, %c0_106] : memref<2x1x96xf32, #tpu.memory_space<vmem>>, vector<1x1x96xf32>
    %229 = vector.shape_cast %228 : vector<1x1x96xf32> to vector<1x96xf32>
    %230 = vector.broadcast %229 : vector<1x96xf32> to vector<48x96xf32>
    %231 = arith.addf %227, %230 : vector<48x96xf32>
    %232 = vector.shape_cast %231 : vector<48x96xf32> to vector<2x24x96xf32>
    %233 = vector.extract_strided_slice %232 {offsets = [0, 0, 0], sizes = [2, 24, 8], strides = [1, 1, 1]} : vector<2x24x96xf32> to vector<2x24x8xf32>
    %234 = vector.extract_strided_slice %232 {offsets = [0, 0, 32], sizes = [2, 24, 8], strides = [1, 1, 1]} : vector<2x24x96xf32> to vector<2x24x8xf32>
    %235 = vector.extract_strided_slice %232 {offsets = [0, 0, 64], sizes = [2, 24, 8], strides = [1, 1, 1]} : vector<2x24x96xf32> to vector<2x24x8xf32>
    %236 = arith.truncf %233 : vector<2x24x8xf32> to vector<2x24x8xbf16>
    %237 = arith.truncf %234 : vector<2x24x8xf32> to vector<2x24x8xbf16>
    "tpu.trace_start"() <{level = 10 : i32, message = "bqd,bkd->bqk"}> : () -> ()
    %cst_107 = arith.constant dense<0.000000e+00> : vector<2x24x24xf32>
    %238 = tpu.matmul %236, %237, %cst_107 {dimension_numbers = #tpu.dot_dimension_numbers<[2], [2], [1], [1], [0, 0, 0, 1, 1, 1], [0], [0]>} : vector<2x24x8xbf16>, vector<2x24x8xbf16>, vector<2x24x24xf32> -> vector<2x24x24xf32>
    "tpu.trace_stop"() : () -> ()
    %cst_108 = arith.constant dense<0xFF800000> : vector<2x24xf32>
    %239 = vector.multi_reduction <maximumf>, %238, %cst_108 [2] : vector<2x24x24xf32> to vector<2x24xf32>
    %240 = vector.shape_cast %239 : vector<2x24xf32> to vector<2x24x1xf32>
    %241 = vector.broadcast %240 : vector<2x24x1xf32> to vector<2x24x24xf32>
    %242 = arith.subf %238, %241 : vector<2x24x24xf32>
    %243 = math.exp %242 : vector<2x24x24xf32>
    %cst_109 = arith.constant dense<0.000000e+00> : vector<2x24xf32>
    %244 = vector.multi_reduction <add>, %243, %cst_109 [2] : vector<2x24x24xf32> to vector<2x24xf32>
    %245 = vector.shape_cast %244 : vector<2x24xf32> to vector<2x24x1xf32>
    %246 = tpu.reciprocal %245 {approx = true} : vector<2x24x1xf32> -> vector<2x24x1xf32>
    %247 = vector.broadcast %246 : vector<2x24x1xf32> to vector<2x24x24xf32>
    %248 = arith.mulf %243, %247 : vector<2x24x24xf32>
    %249 = arith.truncf %248 : vector<2x24x24xf32> to vector<2x24x24xbf16>
    %250 = arith.truncf %235 : vector<2x24x8xf32> to vector<2x24x8xbf16>
    "tpu.trace_start"() <{level = 10 : i32, message = "bqk,bkd->bqd"}> : () -> ()
    %cst_110 = arith.constant dense<0.000000e+00> : vector<2x24x8xf32>
    %251 = tpu.matmul %249, %250, %cst_110 {dimension_numbers = #tpu.dot_dimension_numbers<[2], [1], [1], [2], [0, 0, 0, 1, 1, 2], [0], [0]>} : vector<2x24x24xbf16>, vector<2x24x8xbf16>, vector<2x24x8xf32> -> vector<2x24x8xf32>
    "tpu.trace_stop"() : () -> ()
    %252 = vector.extract_strided_slice %232 {offsets = [0, 0, 8], sizes = [2, 24, 8], strides = [1, 1, 1]} : vector<2x24x96xf32> to vector<2x24x8xf32>
    %253 = vector.extract_strided_slice %232 {offsets = [0, 0, 40], sizes = [2, 24, 8], strides = [1, 1, 1]} : vector<2x24x96xf32> to vector<2x24x8xf32>
    %254 = vector.extract_strided_slice %232 {offsets = [0, 0, 72], sizes = [2, 24, 8], strides = [1, 1, 1]} : vector<2x24x96xf32> to vector<2x24x8xf32>
    %255 = arith.truncf %252 : vector<2x24x8xf32> to vector<2x24x8xbf16>
    %256 = arith.truncf %253 : vector<2x24x8xf32> to vector<2x24x8xbf16>
    "tpu.trace_start"() <{level = 10 : i32, message = "bqd,bkd->bqk"}> : () -> ()
    %cst_111 = arith.constant dense<0.000000e+00> : vector<2x24x24xf32>
    %257 = tpu.matmul %255, %256, %cst_111 {dimension_numbers = #tpu.dot_dimension_numbers<[2], [2], [1], [1], [0, 0, 0, 1, 1, 1], [0], [0]>} : vector<2x24x8xbf16>, vector<2x24x8xbf16>, vector<2x24x24xf32> -> vector<2x24x24xf32>
    "tpu.trace_stop"() : () -> ()
    %cst_112 = arith.constant dense<0xFF800000> : vector<2x24xf32>
    %258 = vector.multi_reduction <maximumf>, %257, %cst_112 [2] : vector<2x24x24xf32> to vector<2x24xf32>
    %259 = vector.shape_cast %258 : vector<2x24xf32> to vector<2x24x1xf32>
    %260 = vector.broadcast %259 : vector<2x24x1xf32> to vector<2x24x24xf32>
    %261 = arith.subf %257, %260 : vector<2x24x24xf32>
    %262 = math.exp %261 : vector<2x24x24xf32>
    %cst_113 = arith.constant dense<0.000000e+00> : vector<2x24xf32>
    %263 = vector.multi_reduction <add>, %262, %cst_113 [2] : vector<2x24x24xf32> to vector<2x24xf32>
    %264 = vector.shape_cast %263 : vector<2x24xf32> to vector<2x24x1xf32>
    %265 = tpu.reciprocal %264 {approx = true} : vector<2x24x1xf32> -> vector<2x24x1xf32>
    %266 = vector.broadcast %265 : vector<2x24x1xf32> to vector<2x24x24xf32>
    %267 = arith.mulf %262, %266 : vector<2x24x24xf32>
    %268 = arith.truncf %267 : vector<2x24x24xf32> to vector<2x24x24xbf16>
    %269 = arith.truncf %254 : vector<2x24x8xf32> to vector<2x24x8xbf16>
    "tpu.trace_start"() <{level = 10 : i32, message = "bqk,bkd->bqd"}> : () -> ()
    %cst_114 = arith.constant dense<0.000000e+00> : vector<2x24x8xf32>
    %270 = tpu.matmul %268, %269, %cst_114 {dimension_numbers = #tpu.dot_dimension_numbers<[2], [1], [1], [2], [0, 0, 0, 1, 1, 2], [0], [0]>} : vector<2x24x24xbf16>, vector<2x24x8xbf16>, vector<2x24x8xf32> -> vector<2x24x8xf32>
    "tpu.trace_stop"() : () -> ()
    %271 = vector.extract_strided_slice %232 {offsets = [0, 0, 16], sizes = [2, 24, 8], strides = [1, 1, 1]} : vector<2x24x96xf32> to vector<2x24x8xf32>
    %272 = vector.extract_strided_slice %232 {offsets = [0, 0, 48], sizes = [2, 24, 8], strides = [1, 1, 1]} : vector<2x24x96xf32> to vector<2x24x8xf32>
    %273 = vector.extract_strided_slice %232 {offsets = [0, 0, 80], sizes = [2, 24, 8], strides = [1, 1, 1]} : vector<2x24x96xf32> to vector<2x24x8xf32>
    %274 = arith.truncf %271 : vector<2x24x8xf32> to vector<2x24x8xbf16>
    %275 = arith.truncf %272 : vector<2x24x8xf32> to vector<2x24x8xbf16>
    "tpu.trace_start"() <{level = 10 : i32, message = "bqd,bkd->bqk"}> : () -> ()
    %cst_115 = arith.constant dense<0.000000e+00> : vector<2x24x24xf32>
    %276 = tpu.matmul %274, %275, %cst_115 {dimension_numbers = #tpu.dot_dimension_numbers<[2], [2], [1], [1], [0, 0, 0, 1, 1, 1], [0], [0]>} : vector<2x24x8xbf16>, vector<2x24x8xbf16>, vector<2x24x24xf32> -> vector<2x24x24xf32>
    "tpu.trace_stop"() : () -> ()
    %cst_116 = arith.constant dense<0xFF800000> : vector<2x24xf32>
    %277 = vector.multi_reduction <maximumf>, %276, %cst_116 [2] : vector<2x24x24xf32> to vector<2x24xf32>
    %278 = vector.shape_cast %277 : vector<2x24xf32> to vector<2x24x1xf32>
    %279 = vector.broadcast %278 : vector<2x24x1xf32> to vector<2x24x24xf32>
    %280 = arith.subf %276, %279 : vector<2x24x24xf32>
    %281 = math.exp %280 : vector<2x24x24xf32>
    %cst_117 = arith.constant dense<0.000000e+00> : vector<2x24xf32>
    %282 = vector.multi_reduction <add>, %281, %cst_117 [2] : vector<2x24x24xf32> to vector<2x24xf32>
    %283 = vector.shape_cast %282 : vector<2x24xf32> to vector<2x24x1xf32>
    %284 = tpu.reciprocal %283 {approx = true} : vector<2x24x1xf32> -> vector<2x24x1xf32>
    %285 = vector.broadcast %284 : vector<2x24x1xf32> to vector<2x24x24xf32>
    %286 = arith.mulf %281, %285 : vector<2x24x24xf32>
    %287 = arith.truncf %286 : vector<2x24x24xf32> to vector<2x24x24xbf16>
    %288 = arith.truncf %273 : vector<2x24x8xf32> to vector<2x24x8xbf16>
    "tpu.trace_start"() <{level = 10 : i32, message = "bqk,bkd->bqd"}> : () -> ()
    %cst_118 = arith.constant dense<0.000000e+00> : vector<2x24x8xf32>
    %289 = tpu.matmul %287, %288, %cst_118 {dimension_numbers = #tpu.dot_dimension_numbers<[2], [1], [1], [2], [0, 0, 0, 1, 1, 2], [0], [0]>} : vector<2x24x24xbf16>, vector<2x24x8xbf16>, vector<2x24x8xf32> -> vector<2x24x8xf32>
    "tpu.trace_stop"() : () -> ()
    %290 = vector.extract_strided_slice %232 {offsets = [0, 0, 24], sizes = [2, 24, 8], strides = [1, 1, 1]} : vector<2x24x96xf32> to vector<2x24x8xf32>
    %291 = vector.extract_strided_slice %232 {offsets = [0, 0, 56], sizes = [2, 24, 8], strides = [1, 1, 1]} : vector<2x24x96xf32> to vector<2x24x8xf32>
    %292 = vector.extract_strided_slice %232 {offsets = [0, 0, 88], sizes = [2, 24, 8], strides = [1, 1, 1]} : vector<2x24x96xf32> to vector<2x24x8xf32>
    %293 = arith.truncf %290 : vector<2x24x8xf32> to vector<2x24x8xbf16>
    %294 = arith.truncf %291 : vector<2x24x8xf32> to vector<2x24x8xbf16>
    "tpu.trace_start"() <{level = 10 : i32, message = "bqd,bkd->bqk"}> : () -> ()
    %cst_119 = arith.constant dense<0.000000e+00> : vector<2x24x24xf32>
    %295 = tpu.matmul %293, %294, %cst_119 {dimension_numbers = #tpu.dot_dimension_numbers<[2], [2], [1], [1], [0, 0, 0, 1, 1, 1], [0], [0]>} : vector<2x24x8xbf16>, vector<2x24x8xbf16>, vector<2x24x24xf32> -> vector<2x24x24xf32>
    "tpu.trace_stop"() : () -> ()
    %cst_120 = arith.constant dense<0xFF800000> : vector<2x24xf32>
    %296 = vector.multi_reduction <maximumf>, %295, %cst_120 [2] : vector<2x24x24xf32> to vector<2x24xf32>
    %297 = vector.shape_cast %296 : vector<2x24xf32> to vector<2x24x1xf32>
    %298 = vector.broadcast %297 : vector<2x24x1xf32> to vector<2x24x24xf32>
    %299 = arith.subf %295, %298 : vector<2x24x24xf32>
    %300 = math.exp %299 : vector<2x24x24xf32>
    %cst_121 = arith.constant dense<0.000000e+00> : vector<2x24xf32>
    %301 = vector.multi_reduction <add>, %300, %cst_121 [2] : vector<2x24x24xf32> to vector<2x24xf32>
    %302 = vector.shape_cast %301 : vector<2x24xf32> to vector<2x24x1xf32>
    %303 = tpu.reciprocal %302 {approx = true} : vector<2x24x1xf32> -> vector<2x24x1xf32>
    %304 = vector.broadcast %303 : vector<2x24x1xf32> to vector<2x24x24xf32>
    %305 = arith.mulf %300, %304 : vector<2x24x24xf32>
    %306 = arith.truncf %305 : vector<2x24x24xf32> to vector<2x24x24xbf16>
    %307 = arith.truncf %292 : vector<2x24x8xf32> to vector<2x24x8xbf16>
    "tpu.trace_start"() <{level = 10 : i32, message = "bqk,bkd->bqd"}> : () -> ()
    %cst_122 = arith.constant dense<0.000000e+00> : vector<2x24x8xf32>
    %308 = tpu.matmul %306, %307, %cst_122 {dimension_numbers = #tpu.dot_dimension_numbers<[2], [1], [1], [2], [0, 0, 0, 1, 1, 2], [0], [0]>} : vector<2x24x24xbf16>, vector<2x24x8xbf16>, vector<2x24x8xf32> -> vector<2x24x8xf32>
    "tpu.trace_stop"() : () -> ()
    %309 = tpu.concatenate %251, %270, %289, %308 in 2 : vector<2x24x8xf32>, vector<2x24x8xf32>, vector<2x24x8xf32>, vector<2x24x8xf32> -> vector<2x24x32xf32>
    %310 = vector.shape_cast %309 : vector<2x24x32xf32> to vector<48x32xf32>
    %311 = arith.truncf %310 : vector<48x32xf32> to vector<48x32xbf16>
    %c1_123 = arith.constant 1 : index
    %c0_124 = arith.constant 0 : index
    %c0_125 = arith.constant 0 : index
    %312 = vector.load %arg7[%c1_123, %c0_124, %c0_125] : memref<2x32x32xbf16, #tpu.memory_space<vmem>>, vector<1x32x32xbf16>
    %313 = vector.shape_cast %312 : vector<1x32x32xbf16> to vector<32x32xbf16>
    %cst_126 = arith.constant dense<0.000000e+00> : vector<48x32xf32>
    %314 = tpu.matmul %311, %313, %cst_126 {dimension_numbers = #tpu.dot_dimension_numbers<[1], [0], [0], [1], [0, 0, 1, 1], [], []>} : vector<48x32xbf16>, vector<32x32xbf16>, vector<48x32xf32> -> vector<48x32xf32>
    %315 = arith.addf %193, %314 : vector<48x32xf32>
    %c1_127 = arith.constant 1 : index
    %c0_128 = arith.constant 0 : index
    %c0_129 = arith.constant 0 : index
    %316 = vector.load %arg11[%c1_127, %c0_128, %c0_129] : memref<2x1x32xf32, #tpu.memory_space<vmem>>, vector<1x1x32xf32>
    %317 = vector.shape_cast %316 : vector<1x1x32xf32> to vector<1x32xf32>
    %318 = vector.broadcast %317 : vector<1x32xf32> to vector<48x32xf32>
    %319 = arith.addf %315, %318 : vector<48x32xf32>
    %cst_130 = arith.constant dense<0.000000e+00> : vector<48xf32>
    %320 = vector.multi_reduction <add>, %319, %cst_130 [1] : vector<48x32xf32> to vector<48xf32>
    %321 = vector.shape_cast %320 : vector<48xf32> to vector<48x1xf32>
    %cst_131 = arith.constant 3.200000e+01 : f32
    %322 = vector.broadcast %cst_131 : f32 to vector<48x1xf32>
    %323 = arith.divf %321, %322 : vector<48x1xf32>
    %324 = vector.broadcast %323 : vector<48x1xf32> to vector<48x32xf32>
    %325 = arith.subf %319, %324 : vector<48x32xf32>
    %326 = arith.mulf %325, %325 : vector<48x32xf32>
    %cst_132 = arith.constant dense<0.000000e+00> : vector<48xf32>
    %327 = vector.multi_reduction <add>, %326, %cst_132 [1] : vector<48x32xf32> to vector<48xf32>
    %328 = vector.shape_cast %327 : vector<48xf32> to vector<48x1xf32>
    %cst_133 = arith.constant 3.200000e+01 : f32
    %329 = vector.broadcast %cst_133 : f32 to vector<48x1xf32>
    %330 = arith.divf %328, %329 : vector<48x1xf32>
    %331 = vector.broadcast %323 : vector<48x1xf32> to vector<48x32xf32>
    %332 = arith.subf %319, %331 : vector<48x32xf32>
    %cst_134 = arith.constant 9.99999974E-6 : f32
    %333 = vector.broadcast %cst_134 : f32 to vector<48x1xf32>
    %334 = arith.addf %330, %333 : vector<48x1xf32>
    %335 = math.rsqrt %334 : vector<48x1xf32>
    %336 = vector.broadcast %335 : vector<48x1xf32> to vector<48x32xf32>
    %337 = arith.mulf %332, %336 : vector<48x32xf32>
    %338 = vector.broadcast %199 : vector<1x32xf32> to vector<48x32xf32>
    %339 = arith.mulf %337, %338 : vector<48x32xf32>
    %340 = vector.broadcast %201 : vector<1x32xf32> to vector<48x32xf32>
    %341 = arith.addf %339, %340 : vector<48x32xf32>
    %342 = arith.truncf %341 : vector<48x32xf32> to vector<48x32xbf16>
    %c1_135 = arith.constant 1 : index
    %c0_136 = arith.constant 0 : index
    %c0_137 = arith.constant 0 : index
    %343 = vector.load %arg8[%c1_135, %c0_136, %c0_137] : memref<2x32x128xbf16, #tpu.memory_space<vmem>>, vector<1x32x128xbf16>
    %344 = vector.shape_cast %343 : vector<1x32x128xbf16> to vector<32x128xbf16>
    %cst_138 = arith.constant dense<0.000000e+00> : vector<48x128xf32>
    %345 = tpu.matmul %342, %344, %cst_138 {dimension_numbers = #tpu.dot_dimension_numbers<[1], [0], [0], [1], [0, 0, 1, 1], [], []>} : vector<48x32xbf16>, vector<32x128xbf16>, vector<48x128xf32> -> vector<48x128xf32>
    %c1_139 = arith.constant 1 : index
    %c0_140 = arith.constant 0 : index
    %c0_141 = arith.constant 0 : index
    %346 = vector.load %arg12[%c1_139, %c0_140, %c0_141] : memref<2x1x128xf32, #tpu.memory_space<vmem>>, vector<1x1x128xf32>
    %347 = vector.shape_cast %346 : vector<1x1x128xf32> to vector<1x128xf32>
    %348 = vector.broadcast %347 : vector<1x128xf32> to vector<48x128xf32>
    %349 = arith.addf %345, %348 : vector<48x128xf32>
    %350 = arith.mulf %349, %349 : vector<48x128xf32>
    %351 = arith.mulf %349, %350 : vector<48x128xf32>
    %cst_142 = arith.constant 4.471500e-02 : f32
    %352 = vector.broadcast %cst_142 : f32 to vector<48x128xf32>
    %353 = arith.mulf %352, %351 : vector<48x128xf32>
    %354 = arith.addf %349, %353 : vector<48x128xf32>
    %cst_143 = arith.constant 0.797884583 : f32
    %355 = vector.broadcast %cst_143 : f32 to vector<48x128xf32>
    %356 = arith.mulf %355, %354 : vector<48x128xf32>
    %357 = math.tanh %356 : vector<48x128xf32>
    %cst_144 = arith.constant 1.000000e+00 : f32
    %358 = vector.broadcast %cst_144 : f32 to vector<48x128xf32>
    %359 = arith.addf %358, %357 : vector<48x128xf32>
    %cst_145 = arith.constant 5.000000e-01 : f32
    %360 = vector.broadcast %cst_145 : f32 to vector<48x128xf32>
    %361 = arith.mulf %360, %359 : vector<48x128xf32>
    %362 = arith.mulf %349, %361 : vector<48x128xf32>
    %363 = arith.truncf %362 : vector<48x128xf32> to vector<48x128xbf16>
    %c1_146 = arith.constant 1 : index
    %c0_147 = arith.constant 0 : index
    %c0_148 = arith.constant 0 : index
    %364 = vector.load %arg9[%c1_146, %c0_147, %c0_148] : memref<2x128x32xbf16, #tpu.memory_space<vmem>>, vector<1x128x32xbf16>
    %365 = vector.shape_cast %364 : vector<1x128x32xbf16> to vector<128x32xbf16>
    %cst_149 = arith.constant dense<0.000000e+00> : vector<48x32xf32>
    %366 = tpu.matmul %363, %365, %cst_149 {dimension_numbers = #tpu.dot_dimension_numbers<[1], [0], [0], [1], [0, 0, 1, 1], [], []>} : vector<48x128xbf16>, vector<128x32xbf16>, vector<48x32xf32> -> vector<48x32xf32>
    %c1_150 = arith.constant 1 : index
    %c0_151 = arith.constant 0 : index
    %c0_152 = arith.constant 0 : index
    %367 = vector.load %arg13[%c1_150, %c0_151, %c0_152] : memref<2x1x32xf32, #tpu.memory_space<vmem>>, vector<1x1x32xf32>
    %368 = vector.shape_cast %367 : vector<1x1x32xf32> to vector<1x32xf32>
    %369 = vector.broadcast %368 : vector<1x32xf32> to vector<48x32xf32>
    %370 = arith.addf %366, %369 : vector<48x32xf32>
    %371 = arith.addf %319, %370 : vector<48x32xf32>
    %372 = vector.shape_cast %371 : vector<48x32xf32> to vector<2x24x32xf32>
    %373 = vector.extract_strided_slice %372 {offsets = [0, 0, 0], sizes = [2, 8, 32], strides = [1, 1, 1]} : vector<2x24x32xf32> to vector<2x8x32xf32>
    %374 = vector.shape_cast %373 : vector<2x8x32xf32> to vector<16x32xf32>
    %375 = arith.truncf %374 : vector<16x32xf32> to vector<16x32xbf16>
    %c0_153 = arith.constant 0 : index
    %c0_154 = arith.constant 0 : index
    %376 = vector.load %arg14[%c0_153, %c0_154] : memref<32x8xbf16, #tpu.memory_space<vmem>>, vector<32x8xbf16>
    %cst_155 = arith.constant dense<0.000000e+00> : vector<16x8xf32>
    %377 = tpu.matmul %375, %376, %cst_155 {dimension_numbers = #tpu.dot_dimension_numbers<[1], [0], [0], [1], [0, 0, 1, 1], [], []>} : vector<16x32xbf16>, vector<32x8xbf16>, vector<16x8xf32> -> vector<16x8xf32>
    %378 = vector.shape_cast %377 : vector<16x8xf32> to vector<2x8x8xf32>
    %c0_156 = arith.constant 0 : index
    %c0_157 = arith.constant 0 : index
    %c0_158 = arith.constant 0 : index
    %379 = vector.load %arg15[%c0_156, %c0_157, %c0_158] : memref<2x8x8xf32, #tpu.memory_space<vmem>>, vector<2x8x8xf32>
    tpu.vector_store %arg15[%c0_156, %c0_157, %c0_158], %378 {strides = array<i32>} : memref<2x8x8xf32, #tpu.memory_space<vmem>>, vector<2x8x8xf32>,
    return
  }
  func.func @transform_0(%arg0: i32) -> (i32, i32, i32) {
    %c0_i32 = arith.constant 0 : i32
    %c0_i32_0 = arith.constant 0 : i32
    %c0_i32_1 = arith.constant 0 : i32
    return %arg0, %c0_i32, %c0_i32_0 : i32, i32, i32
  }
  func.func @transform_1(%arg0: i32) -> (i32, i32) {
    %c0_i32 = arith.constant 0 : i32
    %c0_i32_0 = arith.constant 0 : i32
    %c0_i32_1 = arith.constant 0 : i32
    return %c0_i32, %c0_i32_0 : i32, i32
  }
  func.func @transform_2(%arg0: i32) -> (i32, i32) {
    %c0_i32 = arith.constant 0 : i32
    %c0_i32_0 = arith.constant 0 : i32
    %c0_i32_1 = arith.constant 0 : i32
    return %c0_i32, %c0_i32_0 : i32, i32
  }
  func.func @transform_3(%arg0: i32) -> (i32, i32) {
    %c0_i32 = arith.constant 0 : i32
    %c0_i32_0 = arith.constant 0 : i32
    %c0_i32_1 = arith.constant 0 : i32
    return %c0_i32, %c0_i32_0 : i32, i32
  }
  func.func @transform_4(%arg0: i32) -> (i32, i32, i32) {
    %c0_i32 = arith.constant 0 : i32
    %c0_i32_0 = arith.constant 0 : i32
    %c0_i32_1 = arith.constant 0 : i32
    %c0_i32_2 = arith.constant 0 : i32
    return %c0_i32, %c0_i32_0, %c0_i32_1 : i32, i32, i32
  }
  func.func @transform_5(%arg0: i32) -> (i32, i32, i32) {
    %c0_i32 = arith.constant 0 : i32
    %c0_i32_0 = arith.constant 0 : i32
    %c0_i32_1 = arith.constant 0 : i32
    %c0_i32_2 = arith.constant 0 : i32
    return %c0_i32, %c0_i32_0, %c0_i32_1 : i32, i32, i32
  }
  func.func @transform_6(%arg0: i32) -> (i32, i32, i32) {
    %c0_i32 = arith.constant 0 : i32
    %c0_i32_0 = arith.constant 0 : i32
    %c0_i32_1 = arith.constant 0 : i32
    %c0_i32_2 = arith.constant 0 : i32
    return %c0_i32, %c0_i32_0, %c0_i32_1 : i32, i32, i32
  }
  func.func @transform_7(%arg0: i32) -> (i32, i32, i32) {
    %c0_i32 = arith.constant 0 : i32
    %c0_i32_0 = arith.constant 0 : i32
    %c0_i32_1 = arith.constant 0 : i32
    %c0_i32_2 = arith.constant 0 : i32
    return %c0_i32, %c0_i32_0, %c0_i32_1 : i32, i32, i32
  }
  func.func @transform_8(%arg0: i32) -> (i32, i32, i32) {
    %c0_i32 = arith.constant 0 : i32
    %c0_i32_0 = arith.constant 0 : i32
    %c0_i32_1 = arith.constant 0 : i32
    %c0_i32_2 = arith.constant 0 : i32
    return %c0_i32, %c0_i32_0, %c0_i32_1 : i32, i32, i32
  }
  func.func @transform_9(%arg0: i32) -> (i32, i32, i32) {
    %c0_i32 = arith.constant 0 : i32
    %c0_i32_0 = arith.constant 0 : i32
    %c0_i32_1 = arith.constant 0 : i32
    %c0_i32_2 = arith.constant 0 : i32
    return %c0_i32, %c0_i32_0, %c0_i32_1 : i32, i32, i32
  }
  func.func @transform_10(%arg0: i32) -> (i32, i32, i32) {
    %c0_i32 = arith.constant 0 : i32
    %c0_i32_0 = arith.constant 0 : i32
    %c0_i32_1 = arith.constant 0 : i32
    %c0_i32_2 = arith.constant 0 : i32
    return %c0_i32, %c0_i32_0, %c0_i32_1 : i32, i32, i32
  }
  func.func @transform_11(%arg0: i32) -> (i32, i32, i32) {
    %c0_i32 = arith.constant 0 : i32
    %c0_i32_0 = arith.constant 0 : i32
    %c0_i32_1 = arith.constant 0 : i32
    %c0_i32_2 = arith.constant 0 : i32
    return %c0_i32, %c0_i32_0, %c0_i32_1 : i32, i32, i32
  }
  func.func @transform_12(%arg0: i32) -> (i32, i32, i32) {
    %c0_i32 = arith.constant 0 : i32
    %c0_i32_0 = arith.constant 0 : i32
    %c0_i32_1 = arith.constant 0 : i32
    %c0_i32_2 = arith.constant 0 : i32
    return %c0_i32, %c0_i32_0, %c0_i32_1 : i32, i32, i32
  }
  func.func @transform_13(%arg0: i32) -> (i32, i32) {
    %c0_i32 = arith.constant 0 : i32
    %c0_i32_0 = arith.constant 0 : i32
    %c0_i32_1 = arith.constant 0 : i32
    return %c0_i32, %c0_i32_0 : i32, i32
  }
  func.func @transform_14(%arg0: i32) -> (i32, i32, i32) {
    %c0_i32 = arith.constant 0 : i32
    %c0_i32_0 = arith.constant 0 : i32
    %c0_i32_1 = arith.constant 0 : i32
    return %arg0, %c0_i32, %c0_i32_0 : i32, i32, i32
  }
}

</mosaic_0001>

<bundles_post_ra>
// kernel: encoder_forward.1
= control target key start
LH: loop header
LB: loop body
LE: loop exit
PB: predicated region body
PF: predicated region fallthrough
CT: control target
= control target key end

     0   :  { %vm95_vm0 = vcmask 523264   ;;  %vm152_vm1 = vcmask 261120   ;;  %s6983_s0 = inlined_call_operand.vmem [shape: bf16[2,16,64], index: 0, kind: input, shape index: {}]   ;;  %s6984_s1 = inlined_call_operand.vmem [shape: bf16[64,32], index: 1, kind: input, shape index: {}]   ;;  %s6985_s2 = inlined_call_operand.vmem [shape: f32[8,32], index: 2, kind: input, shape index: {}]   ;;  %s6986_s3 = inlined_call_operand.vmem [shape: f32[16,32], index: 3, kind: input, shape index: {}]   ;;  %s6987_s4 = inlined_call_operand.vmem [shape: f32[2,4,32], index: 4, kind: input, shape index: {}]   ;;  %s6988_s5 = inlined_call_operand.vmem [shape: bf16[2,32,96], index: 5, kind: input, shape index: {}]   ;;  %s6989_s6 = inlined_call_operand.vmem [shape: bf16[2,32,32], index: 6, kind: input, shape index: {}]   ;;  %s6990_s7 = inlined_call_operand.vmem [shape: bf16[2,32,128], index: 7, kind: input, shape index: {}]   ;;  %s6991_s8 = inlined_call_operand.vmem [shape: bf16[2,128,32], index: 8, kind: input, shape index: {}]   ;;  %s6992_s9 = inlined_call_operand.vmem [shape: f32[2,1,96], index: 9, kind: input, shape index: {}]   ;;  %s6993_s10 = inlined_call_operand.vmem [shape: f32[2,1,32], index: 10, kind: input, shape index: {}]   ;;  %s6994_s11 = inlined_call_operand.vmem [shape: f32[2,1,128], index: 11, kind: input, shape index: {}]   ;;  %s6995_s12 = inlined_call_operand.vmem [shape: f32[2,1,32], index: 12, kind: input, shape index: {}]   ;;  %s6996_s13 = inlined_call_operand.vmem [shape: bf16[32,8], index: 13, kind: input, shape index: {}]   ;;  %s6997_s14 = inlined_call_operand.hbm [shape: f32[2,8,8], index: 14, kind: output, shape index: {}]  }
   0x1   :  { %v5384_v0 = vld [vmem:[%s6984_s1] sm:$0xff]   ;;  %v5385_v1 = vld [vmem:[%s6984_s1 + $0x8] sm:$0xff]   ;;  %v5386_v2 = vld [vmem:[%s6984_s1 + $0x10] sm:$0xff]  }
   0x2   :  { %4796 = vmatprep.subr.bf16.mxu0 %v5384_v0  ;;  %v5388_v3 = vld [vmem:[%s6983_s0] sm:$0xff]   ;;  %v5387_v4 = vld [vmem:[%s6984_s1 + $0x18] sm:$0xff]   ;;  %v5389_v6 = vld [vmem:[%s6983_s0 + $0x8] sm:$0xff]  }
   0x3   :  { %4797 = vmatpush3.bf16.msra.mxu0 %v5384_v0  ;;  %4804 = vmatprep.mubr.msk.bf16.mxu0 %vm95_vm0, %v5388_v3  ;;  %v151_v5 = vld [vmem:[%s6985_s2] sm:$0xff] }
   0x4   :  { %4798 = vmatprep.subr.bf16.mxu0 %v5385_v1  ;;  %153 = vst.msk [vmem:[#allocation2] sm:$0xff] %vm152_vm1, %v151_v5  ;;  %154 = vst.msk [vmem:[#allocation2 + $0x18] sm:$0xff] %vm152_vm1, %v151_v5 }
   0x7   :  { %4799 = vmatpush3.bf16.msra.mxu0 %v5385_v1 }
   0x8   :  { %4800 = vmatprep.subr.bf16.mxu0 %v5386_v2 }
   0xb   :  { %4801 = vmatpush3.bf16.msra.mxu0 %v5386_v2  ;;  %v165_v7 = vld [vmem:[#allocation2] sm:$0xff] }
   0xc   :  { %4802 = vmatprep.subr.bf16.mxu0 %v5387_v4  ;;  %v175_v8 = vsel %vm152_vm1, %v165_v7, 0.0 }
   0xd   :  { %176 = vadd.xlane.f32.xlu0 %v175_v8 }
   0xf   :  { %4803 = vmatpush3.bf16.msra.mxu0 %v5387_v4 }
  0x12   :  { %4805 = vmatmul.mubr.msk.bf16.vlgmr.msra.gmra.mrb[0].mxu0 %vm95_vm0, %v5389_v6 }
  0x13   :  { %19 = vsyncpa [#allocation4], 0  ;;  %v155_v9 = vld [vmem:[%s6986_s3] sm:$0xff]  ;;  %v156_v11 = vld [vmem:[%s6986_s3 + $0x8] sm:$0xff]  ;;  %v5714_v60 = vmov 0.0   ;;  %vm5715_vm2 = vmmov 0  }
  0x14   :  { %v168_v26 = vld [vmem:[#allocation2 + $0x18] sm:$0xff]  ;;  %v5390_v59 = vld [vmem:[%s6988_s5] sm:$0xff]   ;;  %4808 = vmatprep.subr.bf16.mxu0 %v5714_v60  ;;  %5224 = vmatprep.subr.bf16.mxu1 %v5714_v60  ;;  %v5391_v61 = vld [vmem:[%s6988_s5 + $0x8] sm:$0xff]   ;;  %vm376_vm3 = vcmask 64512   ;;  %s5716_s21 = smov 96   ;;  %vm503_vm4 = vcmask 195584  }
  0x15   :  { %v184_v30 = vsel %vm152_vm1, %v168_v26, 0.0  ;;  %4809 = vmatpush3.bf16.msra.mxu0 %v5390_v59  ;;  %5226 = vmatpush3.bf16.msra.mxu1 %v5390_v59  ;;  %s5717_s22 = smov 64   ;;  %s5718_s23 = smov 88   ;;  %vm585_vm5 = vcmask 1043456   ;;  %vm1767_vm6 = vcmask 130048  }
  0x16   :  { %4810 = vmatprep.subr.bf16.mxu0 %v5714_v60  ;;  %4812 = vmatprep.mubr.msk.bf16.mxu0 %vm5715_vm2, %v5714_v60  ;;  %s5719_s24 = smov 120   ;;  %s5720_s25 = smov 56  }
  0x17   :  { %5225 = vmatprep.subr.bf16.mxu1 %v5714_v60  ;;  %4816 = vmatprep.mubr.msk.bf16.mxu1 %vm5715_vm2, %v5714_v60  ;;  %s5721_s26 = smov 80   ;;  %s5722_s1 = smov 112  }
  0x18   :  { %s5723_s2 = smov 48   ;;  %s5724_s27 = smov 72  }
  0x19   :  { %4811 = vmatpush3.bf16.msra.mxu0 %v5391_v61  ;;  %5227 = vmatpush3.bf16.msra.mxu1 %v5391_v61  ;;  %s5725_s28 = smov 104   ;;  %s5726_s0 = smov 40  }
  0x1a   :  { %s7000_s3 = smov 8   ;;  %s5728_s29 = smov 16  }
  0x1b   :  { %s6998_s18 = smov 24  }
  0x9a   :  { %v177_v18 = vpop.xlane.xlu0 %176 }
  0x9b   :  { %v194_v20 = vmul.f32 0.03125, %v177_v18 }
  0x9d   :  { %v5843_v21 = vsub.f32 %v165_v7, %v194_v20 }
  0x9f   :  { %v206_v28 = vmul.f32 %v5843_v21, %v5843_v21 }
  0xa1   :  { %v212_v31 = vsel %vm152_vm1, %v206_v28, 0.0 }
  0xe5   :  { %v4806_v10 = vpop.f32.mrb[0].mxu0 }
  0xe6   :  { %v159_v12 = vadd.f32 %v4806_v10, %v155_v9  ;;  %v136_v13 = vpop.f32.mrb[1].mxu0 }
  0xe7   :  { %v157_v14 = vadd.f32 %v155_v9, %v136_v13  ;;  %v4807_v15 = vpop.f32.mrb[2].mxu0 }
  0xe8   :  { %163 = vst.msk [vmem:[#allocation2 + $0x20] sm:$0xff] %vm152_vm1, %v159_v12  ;;  %v160_v16 = vadd.f32 %v4807_v15, %v156_v11  ;;  %v139_v17 = vpop.f32.mrb[3].mxu0 }
  0xe9   :  { %161 = vst.msk [vmem:[#allocation2 + $0x8] sm:$0xff] %vm152_vm1, %v157_v14  ;;  %v158_v19 = vadd.f32 %v156_v11, %v139_v17  ;;  %v4442_v17 = vld [vmem:[%s6987_s4] ss:$0 sm:$0xff] }
  0xea   :  { %164 = vst.msk [vmem:[#allocation2 + $0x28] sm:$0xff] %vm152_vm1, %v160_v16 }
  0xeb   :  { %162 = vst.msk [vmem:[#allocation2 + $0x10] sm:$0xff] %vm152_vm1, %v158_v19 }
  0xef   :  { %v169_v25 = vld [vmem:[#allocation2 + $0x20] sm:$0xff] }
  0xf0   :  { %v166_v22 = vld [vmem:[#allocation2 + $0x8] sm:$0xff]  ;;  %v187_v29 = vsel %vm152_vm1, %v169_v25, 0.0 }
  0xf1   :  { %v178_v23 = vsel %vm152_vm1, %v166_v22, 0.0  ;;  %v170_v32 = vld [vmem:[#allocation2 + $0x28] sm:$0xff] }
  0xf2   :  { %179 = vadd.xlane.f32.xlu0 %v178_v23  ;;  %v167_v24 = vld [vmem:[#allocation2 + $0x10] sm:$0xff]  ;;  %v190_v33 = vsel %vm152_vm1, %v170_v32, 0.0 }
  0xf3   :  { %v181_v27 = vsel %vm152_vm1, %v167_v24, 0.0 }
  0xf4   :  { %182 = vadd.xlane.f32.xlu1 %v181_v27 }
  0xf6   :  { %188 = vadd.xlane.f32.xlu0 %v187_v29 }
  0xf8   :  { %185 = vadd.xlane.f32.xlu1 %v184_v30 }
  0xfa   :  { %213 = vadd.xlane.f32.xlu0 %v212_v31 }
  0xfc   :  { %191 = vadd.xlane.f32.xlu1 %v190_v33 }
 0x17f   :  { %v180_v34 = vpop.xlane.xlu0 %179 }
 0x180   :  { %v195_v35 = vmul.f32 0.03125, %v180_v34 }
 0x181   :  { %v183_v36 = vpop.xlane.xlu1 %182 }
 0x182   :  { %v5853_v37 = vsub.f32 %v166_v22, %v195_v35  ;;  %v196_v38 = vmul.f32 0.03125, %v183_v36 }
 0x183   :  { %v189_v39 = vpop.xlane.xlu0 %188 }
 0x184   :  { %v5855_v40 = vsub.f32 %v167_v24, %v196_v38  ;;  %v198_v41 = vmul.f32 0.03125, %v189_v39  ;;  %v207_v42 = vmul.f32 %v5853_v37, %v5853_v37  ;;  %v4443_v24 = vld [vmem:[%s6987_s4 + $0x1] ss:$0 sm:$0xff] }
 0x185   :  { %v186_v43 = vpop.xlane.xlu1 %185 }
 0x186   :  { %v5859_v44 = vsub.f32 %v169_v25, %v198_v41  ;;  %v197_v45 = vmul.f32 0.03125, %v186_v43  ;;  %v215_v46 = vsel %vm152_vm1, %v207_v42, 0.0  ;;  %v208_v47 = vmul.f32 %v5855_v40, %v5855_v40 }
 0x187   :  { %216 = vadd.xlane.f32.xlu1 %v215_v46  ;;  %v214_v62 = vpop.xlane.xlu0 %213  ;;  %v4444_v46 = vld [vmem:[%s6992_s9] ss:$0 sm:$0xff] }
 0x188   :  { %v5864_v48 = vsub.f32 %v168_v26, %v197_v45  ;;  %v218_v49 = vsel %vm152_vm1, %v208_v47, 0.0  ;;  %v210_v50 = vmul.f32 %v5859_v44, %v5859_v44  ;;  %v230_v63 = vmul.f32 0.03125, %v214_v62 }
 0x189   :  { %219 = vadd.xlane.f32.xlu0 %v218_v49  ;;  %v192_v51 = vpop.xlane.xlu1 %191 }
 0x18a   :  { %v199_v52 = vmul.f32 0.03125, %v192_v51  ;;  %v209_v53 = vmul.f32 %v5864_v48, %v5864_v48  ;;  %v224_v55 = vsel %vm152_vm1, %v210_v50, 0.0  ;;  %v236_v0 = vadd.f32 1e-05, %v230_v63 }
 0x18c   :  { %v5871_v54 = vsub.f32 %v170_v32, %v199_v52  ;;  %v221_v56 = vsel %vm152_vm1, %v209_v53, 0.0  ;;  %5420 = vrsqrt.f32 %v236_v0 }
 0x18d   :  { %225 = vadd.xlane.f32.xlu0 %v224_v55  ;;  %222 = vadd.xlane.f32.xlu1 %v221_v56 }
 0x18e   :  { %v211_v57 = vmul.f32 %v5871_v54, %v5871_v54 }
 0x190   :  { %v227_v58 = vsel %vm152_vm1, %v211_v57, 0.0 }
 0x191   :  { %228 = vadd.xlane.f32.xlu1 %v227_v58 }
 0x196   :  { %v5421_v11 = vpop.eup %5420 }
 0x197   :  { %v248_v16 = vmul.f32 %v5421_v11, %v5843_v21 }
 0x199   :  { %v258_v20 = vmul.f32 %v4442_v17, %v248_v16 }
 0x19b   :  { %v268_v26 = vadd.f32 %v4443_v24, %v258_v20 }
 0x214   :  { %v217_v1 = vpop.xlane.xlu1 %216 }
 0x215   :  { %v231_v2 = vmul.f32 0.03125, %v217_v1 }
 0x216   :  { %v220_v3 = vpop.xlane.xlu0 %219 }
 0x217   :  { %v237_v4 = vadd.f32 1e-05, %v231_v2  ;;  %v232_v5 = vmul.f32 0.03125, %v220_v3 }
 0x219   :  { %5422 = vrsqrt.f32 %v237_v4  ;;  %v238_v6 = vadd.f32 1e-05, %v232_v5 }
 0x21a   :  { %v226_v7 = vpop.xlane.xlu0 %225  ;;  %v223_v8 = vpop.xlane.xlu1 %222 }
 0x21b   :  { %5424 = vrsqrt.f32 %v238_v6  ;;  %v234_v9 = vmul.f32 0.03125, %v226_v7  ;;  %v233_v10 = vmul.f32 0.03125, %v223_v8 }
 0x21d   :  { %v239_v12 = vadd.f32 1e-05, %v233_v10  ;;  %v240_v13 = vadd.f32 1e-05, %v234_v9 }
 0x21e   :  { %v229_v14 = vpop.xlane.xlu1 %228 }
 0x21f   :  { %v235_v15 = vmul.f32 0.03125, %v229_v14  ;;  %5426 = vrsqrt.f32 %v239_v12 }
 0x220   :  { %5428 = vrsqrt.f32 %v240_v13 }
 0x221   :  { %v241_v18 = vadd.f32 1e-05, %v235_v15 }
 0x223   :  { %v5423_v19 = vpop.eup %5422  ;;  %5430 = vrsqrt.f32 %v241_v18 }
 0x224   :  { %v249_v22 = vmul.f32 %v5423_v19, %v5853_v37 }
 0x225   :  { %v5425_v23 = vpop.eup %5424 }
 0x226   :  { %v259_v25 = vmul.f32 %v4442_v17, %v249_v22  ;;  %v250_v21 = vmul.f32 %v5425_v23, %v5855_v40 }
 0x228   :  { %v269_v27 = vadd.f32 %v4443_v24, %v259_v25  ;;  %v260_v31 = vmul.f32 %v4442_v17, %v250_v21 }
 0x229   :  { %v5427_v28 = vpop.eup %5426 }
 0x22a   :  { %v274_v29 = vpack.c.bf16 %v269_v27, %v268_v26  ;;  %v251_v30 = vmul.f32 %v5427_v28, %v5864_v48  ;;  %v5429_v32 = vpop.eup %5428  ;;  %v270_v36 = vadd.f32 %v4443_v24, %v260_v31 }
 0x22b   :  { %v252_v38 = vmul.f32 %v5429_v32, %v5859_v44 }
 0x22c   :  { %4813 = vmatmul.mubr.msk.bf16.vlgmr.msra.gmra.mrb[4].mxu0 %vm152_vm1, %v274_v29  ;;  %v261_v34 = vmul.f32 %v4442_v17, %v251_v30 }
 0x22d   :  { %v5431_v33 = vpop.eup %5430  ;;  %v262_v41 = vmul.f32 %v4442_v17, %v252_v38 }
 0x22e   :  { %v253_v35 = vmul.f32 %v5431_v33, %v5871_v54  ;;  %v271_v37 = vadd.f32 %v4443_v24, %v261_v34 }
 0x22f   :  { %v272_v43 = vadd.f32 %v4443_v24, %v262_v41 }
 0x230   :  { %v275_v39 = vpack.c.bf16 %v271_v37, %v270_v36  ;;  %v263_v40 = vmul.f32 %v4442_v17, %v253_v35 }
 0x232   :  { %4817 = vmatmul.mubr.msk.bf16.vlgmr.msra.gmra.mrb[0].mxu1 %vm152_vm1, %v275_v39  ;;  %v273_v42 = vadd.f32 %v4443_v24, %v263_v40 }
 0x233   :  { %4820 = vmatprep.mubr.msk.bf16.mxu1 %vm5715_vm2, %v5714_v60 }
 0x234   :  { %v276_v45 = vpack.c.bf16 %v273_v42, %v272_v43 }
 0x23a   :  { %4821 = vmatmul.mubr.msk.bf16.gmra.mrb[4].mxu1 %vm152_vm1, %v276_v45 }
 0x2ff   :  { %v343_v47 = vpop.f32.mrb[4].mxu0 }
 0x300   :  { %v4814_v48 = vpop.f32.mrb[5].mxu0  ;;  %v344_v49 = vadd.f32 %v4444_v46, %v343_v47 }
 0x301   :  { %v346_v44 = vpop.f32.mrb[6].mxu0 }
 0x302   :  { %v347_v50 = vadd.f32 %v4444_v46, %v346_v44  ;;  %v4815_v51 = vpop.f32.mrb[7].mxu0 }
 0x304   :  { %v5912_v52 = vpack.c.bf16 %v347_v50, %v344_v49 }
 0x305   :  { %v351_v53 = vpop.f32.mrb[0].mxu1 }
 0x306   :  { %372 = vrot.lane.b32.xlu0 %v5912_v52, %s5716_s21  ;;  %4828 = vmatprep.mubr.msk.bf16.mxu0 %vm376_vm3, %v5912_v52  ;;  %v352_v54 = vadd.f32 %v4444_v46, %v351_v53  ;;  %v4818_v55 = vpop.f32.mrb[1].mxu1 }
 0x307   :  { %v354_v56 = vpop.f32.mrb[2].mxu1 }
 0x308   :  { %v5918_v57 = vpack.c.bf16 %v352_v54, %v352_v54  ;;  %v4819_v58 = vpop.f32.mrb[3].mxu1  ;;  %v355_v61 = vadd.f32 %v4444_v46, %v354_v56 }
 0x30a   :  { %374 = vrot.lane.b32.xlu1 %v5918_v57, %s5716_s21 }
 0x30d   :  { %v359_v59 = vpop.f32.mrb[4].mxu1 }
 0x30e   :  { %v360_v62 = vadd.f32 %v4444_v46, %v359_v59  ;;  %v4822_v63 = vpop.f32.mrb[5].mxu1 }
 0x30f   :  { %v362_v0 = vpop.f32.mrb[6].mxu1 }
 0x310   :  { %v5922_v1 = vpack.c.bf16 %v360_v62, %v355_v61  ;;  %v363_v2 = vadd.f32 %v4444_v46, %v362_v0  ;;  %v4823_v3 = vpop.f32.mrb[7].mxu1 }
 0x312   :  { %439 = vrot.lane.b32.xlu1 %v5922_v1, %s5716_s21  ;;  %4836 = vmatprep.mubr.msk.bf16.mxu1 %vm376_vm3, %v5922_v1  ;;  %v5928_v4 = vpack.c.bf16 %v363_v2, %v363_v2 }
 0x316   :  { %441 = vrot.lane.b32.xlu1 %v5928_v4, %s5716_s21 }
 0x378   :  { %v373_v5 = vpop.permute.xlu0 %372 }
 0x379   :  { %5228 = vmatprep.subr.msk.bf16.mxu0 %vm376_vm3, %v373_v5  ;;  %v384_v6 = vsel %vm376_vm3, %v373_v5, 0 }
 0x37a   :  { %4825 = vmatpush3.bf16.xpose.msra.mxu0 %v384_v6 }
 0x37c   :  { %v375_v7 = vpop.permute.xlu1 %374 }
 0x37d   :  { %5229 = vmatprep.subr.msk.bf16.mxu0 %vm376_vm3, %v375_v7  ;;  %v387_v8 = vsel %vm376_vm3, %v375_v7, 0 }
 0x382   :  { %4827 = vmatpush3.bf16.xpose.msra.mxu0 %v387_v8 }
 0x384   :  { %v440_v9 = vpop.permute.xlu1 %439 }
 0x385   :  { %5230 = vmatprep.subr.msk.bf16.mxu1 %vm376_vm3, %v440_v9  ;;  %v450_v10 = vsel %vm376_vm3, %v440_v9, 0 }
 0x386   :  { %4833 = vmatpush3.bf16.xpose.msra.mxu1 %v450_v10 }
 0x388   :  { %v442_v11 = vpop.permute.xlu1 %441 }
 0x389   :  { %4829 = vmatmul.mubr.msk.bf16.vlgmr.msra.gmra.mrb[8].mxu0 %vm376_vm3, %v5918_v57  ;;  %5231 = vmatprep.subr.msk.bf16.mxu1 %vm376_vm3, %v442_v11  ;;  %v453_v12 = vsel %vm376_vm3, %v442_v11, 0 }
 0x38e   :  { %4835 = vmatpush3.bf16.xpose.msra.mxu1 %v453_v12 }
 0x395   :  { %4837 = vmatmul.mubr.msk.bf16.vlgmr.msra.gmra.mrb[8].mxu1 %vm376_vm3, %v5928_v4 }
 0x45c   :  { %v4830_v13 = vpop.f32.mrb[8].mxu0 }
 0x45d   :  { %v423_v14 = vpop.f32.mrb[9].mxu0  ;;  %v510_v19 = vsel %vm503_vm4, %v4830_v13, -inf }
 0x45e   :  { %v4831_v15 = vpop.f32.mrb[10].mxu0  ;;  %v504_v16 = vsel %vm503_vm4, %v423_v14, -inf }
 0x45f   :  { %505 = vmax.xlane.f32.xlu0 %v504_v16  ;;  %v426_v17 = vpop.f32.mrb[11].mxu0 }
 0x460   :  { %v507_v18 = vsel %vm503_vm4, %v426_v17, -inf }
 0x461   :  { %508 = vmax.xlane.f32.xlu1 %v507_v18 }
 0x463   :  { %511 = vmax.xlane.f32.xlu0 %v510_v19 }
 0x468   :  { %v4838_v20 = vpop.f32.mrb[8].mxu1 }
 0x469   :  { %v489_v22 = vpop.f32.mrb[9].mxu1  ;;  %v519_v23 = vsel %vm503_vm4, %v4838_v20, -inf }
 0x46a   :  { %520 = vmax.xlane.f32.xlu1 %v519_v23  ;;  %v4839_v24 = vpop.f32.mrb[10].mxu1  ;;  %v513_v25 = vsel %vm503_vm4, %v489_v22, -inf }
 0x46b   :  { %514 = vmax.xlane.f32.xlu0 %v513_v25  ;;  %v5949_v21 = vpop.f32.mrb[11].mxu1 }
 0x46c   :  { %v516_v26 = vsel %vm503_vm4, %v5949_v21, -inf }
 0x46f   :  { %517 = vmax.xlane.f32.xlu0 %v516_v26 }
 0x47b   :  { %576 = vrot.lane.b32.xlu1 %v5918_v57, %s5717_s22 }
 0x47f   :  { %637 = vrot.lane.b32.xlu1 %v5922_v1, %s5717_s22 }
 0x483   :  { %703 = vrot.lane.b32.xlu1 %v5912_v52, %s5718_s23 }
 0x485   :  { %574 = vrot.lane.b32.xlu0 %v5912_v52, %s5717_s22 }
 0x487   :  { %705 = vrot.lane.b32.xlu1 %v5918_v57, %s5718_s23 }
 0x4ec   :  { %v506_v27 = vpop.xlane.xlu0 %505 }
 0x4ed   :  { %v522_v29 = vsub.f32 %v423_v14, %v506_v27 }
 0x4ee   :  { %v509_v28 = vpop.xlane.xlu1 %508 }
 0x4ef   :  { %v523_v30 = vsub.f32 %v426_v17, %v509_v28  ;;  %v528_v34 = vmul.f32 1.442695, %v522_v29 }
 0x4f0   :  { %v512_v31 = vpop.xlane.xlu0 %511 }
 0x4f1   :  { %v530_v32 = vmul.f32 1.442695, %v523_v30  ;;  %v524_v33 = vsub.f32 %v4830_v13, %v512_v31 }
 0x4f3   :  { %5432 = vpow2.f32 %v530_v32  ;;  %v532_v35 = vmul.f32 1.442695, %v524_v33 }
 0x4f5   :  { %5434 = vpow2.f32 %v532_v35 }
 0x4f6   :  { %5436 = vpow2.f32 %v528_v34 }
 0x4f7   :  { %v521_v36 = vpop.xlane.xlu1 %520 }
 0x4f8   :  { %v527_v37 = vsub.f32 %v4838_v20, %v521_v36  ;;  %v515_v38 = vpop.xlane.xlu0 %514 }
 0x4f9   :  { %v525_v39 = vsub.f32 %v489_v22, %v515_v38 }
 0x4fa   :  { %v538_v40 = vmul.f32 1.442695, %v527_v37 }
 0x4fb   :  { %v534_v41 = vmul.f32 1.442695, %v525_v39  ;;  %v577_v42 = vpop.permute.xlu1 %576 }
 0x4fc   :  { %5438 = vpow2.f32 %v538_v40  ;;  %v518_v45 = vpop.xlane.xlu0 %517  ;;  %v587_v53 = vsel %vm585_vm5, %v577_v42, 0 }
 0x4fd   :  { %v5433_v43 = vpop.eup %5432  ;;  %5440 = vpow2.f32 %v534_v41  ;;  %v526_v61 = vsub.f32 %v5949_v21, %v518_v45 }
 0x4fe   :  { %v543_v46 = vsel %vm503_vm4, %v5433_v43, 0.0 }
 0x4ff   :  { %v5435_v47 = vpop.eup %5434  ;;  %544 = vadd.xlane.f32.xlu1 %v543_v46  ;;  %v638_v48 = vpop.permute.xlu1 %637  ;;  %v536_v62 = vmul.f32 1.442695, %v526_v61 }
 0x500   :  { %v546_v44 = vsel %vm503_vm4, %v5435_v47, 0.0  ;;  %v5437_v49 = vpop.eup %5436  ;;  %v575_v50 = vpop.permute.xlu0 %574  ;;  %4848 = vmatprep.subr.bf16.mxu1 %v638_v48 }
 0x501   :  { %547 = vadd.xlane.f32.xlu0 %v546_v44  ;;  %4840 = vmatprep.subr.bf16.mxu0 %v575_v50  ;;  %v540_v51 = vsel %vm503_vm4, %v5437_v49, 0.0  ;;  %5442 = vpow2.f32 %v536_v62 }
 0x502   :  { %4849 = vmatpush3.bf16.msra.mxu1 %v638_v48  ;;  %4841 = vmatpush3.bf16.msra.mxu0 %v575_v50 }
 0x503   :  { %5232 = vmatprep.subr.msk.bf16.mxu0 %vm585_vm5, %v577_v42  ;;  %v704_v55 = vpop.permute.xlu1 %703 }
 0x504   :  { %v714_v20 = vsel %vm376_vm3, %v704_v55, 0 }
 0x505   :  { %541 = vadd.xlane.f32.xlu0 %v540_v51 }
 0x506   :  { %v5968_v54 = vpop.eup %5438  ;;  %4843 = vmatpush3.bf16.msra.mxu0 %v587_v53 }
 0x507   :  { %5234 = vmatprep.subr.msk.bf16.mxu0 %vm376_vm3, %v704_v55  ;;  %v555_v56 = vsel %vm503_vm4, %v5968_v54, 0.0  ;;  %v5441_v58 = vpop.eup %5440  ;;  %v706_v2 = vpop.permute.xlu1 %705 }
 0x508   :  { %556 = vadd.xlane.f32.xlu1 %v555_v56  ;;  %v549_v59 = vsel %vm503_vm4, %v5441_v58, 0.0  ;;  %v717_v22 = vsel %vm376_vm3, %v706_v2, 0 }
 0x50b   :  { %v5443_v63 = vpop.eup %5442 }
 0x50c   :  { %550 = vadd.xlane.f32.xlu1 %v549_v59  ;;  %v552_v0 = vsel %vm503_vm4, %v5443_v63, 0.0 }
 0x51b   :  { %639 = vrot.lane.b32.xlu0 %v5928_v4, %s5717_s22 }
 0x51d   :  { %699 = vrot.lane.b32.xlu1 %v5912_v52, %s5719_s24 }
 0x521   :  { %773 = vrot.lane.b32.xlu1 %v5928_v4, %s5718_s23 }
 0x525   :  { %769 = vrot.lane.b32.xlu1 %v5928_v4, %s5719_s24 }
 0x53a   :  { %553 = vadd.xlane.f32.xlu0 %v552_v0 }
 0x550   :  { %771 = vrot.lane.b32.xlu0 %v5922_v1, %s5718_s23 }
 0x554   :  { %701 = vrot.lane.b32.xlu0 %v5918_v57, %s5719_s24 }
 0x558   :  { %767 = vrot.lane.b32.xlu0 %v5922_v1, %s5719_s24 }
 0x58c   :  { %v545_v3 = vpop.xlane.xlu1 %544 }
 0x58e   :  { %v548_v5 = vpop.xlane.xlu0 %547 }
 0x58f   :  { %5444 = vrcp.f32 %v548_v5 }
 0x590   :  { %5446 = vrcp.f32 %v545_v3 }
 0x592   :  { %v542_v6 = vpop.xlane.xlu0 %541 }
 0x593   :  { %5448 = vrcp.f32 %v542_v6 }
 0x595   :  { %v557_v8 = vpop.xlane.xlu1 %556 }
 0x596   :  { %v640_v7 = vpop.permute.xlu0 %639  ;;  %5450 = vrcp.f32 %v557_v8 }
 0x597   :  { %5233 = vmatprep.subr.msk.bf16.mxu1 %vm585_vm5, %v640_v7  ;;  %v649_v9 = vsel %vm585_vm5, %v640_v7, 0 }
 0x598   :  { %4851 = vmatpush3.bf16.msra.mxu1 %v649_v9 }
 0x599   :  { %v5445_v10 = vpop.eup %5444  ;;  %v551_v13 = vpop.xlane.xlu1 %550 }
 0x59a   :  { %v5447_v11 = vpop.eup %5446  ;;  %v566_v14 = vmul.f32 %v5445_v10, %v5435_v47  ;;  %5452 = vrcp.f32 %v551_v13 }
 0x59b   :  { %v565_v16 = vmul.f32 %v5447_v11, %v5433_v43 }
 0x59c   :  { %v571_v18 = vpack.c.bf16 %v566_v14, %v566_v14 }
 0x59d   :  { %v5449_v12 = vpop.eup %5448  ;;  %v700_v19 = vpop.permute.xlu1 %699 }
 0x59e   :  { %v564_v15 = vmul.f32 %v5449_v12, %v5437_v49 }
 0x5a0   :  { %v570_v17 = vpack.c.bf16 %v565_v16, %v564_v15  ;;  %v5451_v25 = vpop.eup %5450 }
 0x5a1   :  { %v569_v28 = vmul.f32 %v5451_v25, %v5968_v54  ;;  %v774_v35 = vpop.permute.xlu1 %773 }
 0x5a2   :  { %4844 = vmatprep.mubr.msk.bf16.mxu0 %vm503_vm4, %v570_v17  ;;  %v785_v36 = vsel %vm376_vm3, %v774_v35, 0 }
 0x5a3   :  { %4845 = vmatmul.mubr.msk.bf16.vlgmr.msra.gmra.mrb[12].mxu0 %vm503_vm4, %v571_v18  ;;  %v573_v32 = vpack.c.bf16 %v569_v28, %v569_v28 }
 0x5a4   :  { %4857 = vmatpush3.bf16.xpose.msra.mxu0 %v714_v20  ;;  %4860 = vmatprep.mubr.msk.bf16.mxu0 %vm376_vm3, %v700_v19  ;;  %v5453_v26 = vpop.eup %5452 }
 0x5a5   :  { %5235 = vmatprep.subr.msk.bf16.mxu0 %vm376_vm3, %v706_v2  ;;  %v567_v29 = vmul.f32 %v5453_v26, %v5441_v58  ;;  %v770_v37 = vpop.permute.xlu1 %769 }
 0x5ac   :  { %4859 = vmatpush3.bf16.xpose.msra.mxu0 %v717_v22 }
 0x5c7   :  { %v554_v23 = vpop.xlane.xlu0 %553 }
 0x5c8   :  { %5454 = vrcp.f32 %v554_v23 }
 0x5cb   :  { %v772_v24 = vpop.permute.xlu0 %771 }
 0x5cc   :  { %5236 = vmatprep.subr.msk.bf16.mxu1 %vm376_vm3, %v772_v24  ;;  %v782_v34 = vsel %vm376_vm3, %v772_v24, 0 }
 0x5cf   :  { %v702_v21 = vpop.permute.xlu0 %701 }
 0x5d0   :  { %4861 = vmatmul.mubr.msk.bf16.vlgmr.msra.gmra.mrb[16].mxu0 %vm376_vm3, %v702_v21 }
 0x5d2   :  { %v5455_v27 = vpop.eup %5454 }
 0x5d3   :  { %v568_v30 = vmul.f32 %v5455_v27, %v5443_v63  ;;  %v768_v33 = vpop.permute.xlu0 %767 }
 0x5d5   :  { %v572_v31 = vpack.c.bf16 %v568_v30, %v567_v29 }
 0x5d7   :  { %4852 = vmatprep.mubr.msk.bf16.mxu1 %vm503_vm4, %v572_v31 }
 0x5d8   :  { %4853 = vmatmul.mubr.msk.bf16.vlgmr.msra.gmra.mrb[12].mxu1 %vm503_vm4, %v573_v32 }
 0x5d9   :  { %4865 = vmatpush3.bf16.xpose.msra.mxu1 %v782_v34  ;;  %4868 = vmatprep.mubr.msk.bf16.mxu1 %vm376_vm3, %v768_v33 }
 0x5da   :  { %5237 = vmatprep.subr.msk.bf16.mxu1 %vm376_vm3, %v774_v35 }
 0x5e1   :  { %4867 = vmatpush3.bf16.xpose.msra.mxu1 %v785_v36 }
 0x5e8   :  { %4869 = vmatmul.mubr.msk.bf16.vlgmr.msra.gmra.mrb[16].mxu1 %vm376_vm3, %v770_v37 }
 0x676   :  { %v6008_v38 = vpop.f32.mrb[12].mxu0 }
 0x677   :  { %v6010_v39 = vpop.f32.mrb[13].mxu0 }
 0x678   :  { %v4847_v40 = vpop.f32.mrb[14].mxu0 }
 0x679   :  { %v6012_v41 = vpop.f32.mrb[15].mxu0 }
 0x6a3   :  { %v4862_v42 = vpop.f32.mrb[16].mxu0 }
 0x6a4   :  { %v753_v43 = vpop.f32.mrb[17].mxu0  ;;  %v841_v44 = vsel %vm503_vm4, %v4862_v42, -inf }
 0x6a5   :  { %v4863_v45 = vpop.f32.mrb[18].mxu0  ;;  %v835_v46 = vsel %vm503_vm4, %v753_v43, -inf }
 0x6a6   :  { %836 = vmax.xlane.f32.xlu0 %v835_v46  ;;  %v756_v47 = vpop.f32.mrb[19].mxu0 }
 0x6a7   :  { %v838_v48 = vsel %vm503_vm4, %v756_v47, -inf }
 0x6a8   :  { %839 = vmax.xlane.f32.xlu1 %v838_v48 }
 0x6aa   :  { %842 = vmax.xlane.f32.xlu0 %v841_v44 }
 0x6ab   :  { %v6017_v49 = vpop.f32.mrb[12].mxu1 }
 0x6ac   :  { %v6019_v50 = vpop.f32.mrb[13].mxu1 }
 0x6ad   :  { %v4855_v51 = vpop.f32.mrb[14].mxu1 }
 0x6ae   :  { %v6021_v53 = vpop.f32.mrb[15].mxu1 }
 0x6bb   :  { %v4870_v54 = vpop.f32.mrb[16].mxu1 }
 0x6bc   :  { %v821_v55 = vpop.f32.mrb[17].mxu1  ;;  %v850_v56 = vsel %vm503_vm4, %v4870_v54, -inf }
 0x6bd   :  { %851 = vmax.xlane.f32.xlu1 %v850_v56  ;;  %v4871_v58 = vpop.f32.mrb[18].mxu1  ;;  %v844_v59 = vsel %vm503_vm4, %v821_v55, -inf }
 0x6be   :  { %845 = vmax.xlane.f32.xlu0 %v844_v59  ;;  %v824_v61 = vpop.f32.mrb[19].mxu1 }
 0x6bf   :  { %v847_v62 = vsel %vm503_vm4, %v824_v61, -inf }
 0x6c2   :  { %848 = vmax.xlane.f32.xlu0 %v847_v62 }
 0x6ce   :  { %907 = vrot.lane.b32.xlu1 %v5918_v57, %s5720_s25 }
 0x6d2   :  { %967 = vrot.lane.b32.xlu1 %v5922_v1, %s5720_s25 }
 0x6d6   :  { %1033 = vrot.lane.b32.xlu1 %v5912_v52, %s5721_s26 }
 0x6d8   :  { %905 = vrot.lane.b32.xlu0 %v5912_v52, %s5720_s25 }
 0x6da   :  { %1035 = vrot.lane.b32.xlu1 %v5918_v57, %s5721_s26 }
 0x733   :  { %v837_v63 = vpop.xlane.xlu0 %836 }
 0x734   :  { %v853_v2 = vsub.f32 %v753_v43, %v837_v63 }
 0x735   :  { %v840_v0 = vpop.xlane.xlu1 %839 }
 0x736   :  { %v854_v3 = vsub.f32 %v756_v47, %v840_v0  ;;  %v859_v8 = vmul.f32 1.442695, %v853_v2 }
 0x737   :  { %v843_v5 = vpop.xlane.xlu0 %842 }
 0x738   :  { %v861_v6 = vmul.f32 1.442695, %v854_v3  ;;  %v855_v7 = vsub.f32 %v4862_v42, %v843_v5 }
 0x73a   :  { %5456 = vpow2.f32 %v861_v6  ;;  %v863_v9 = vmul.f32 1.442695, %v855_v7 }
 0x73c   :  { %5458 = vpow2.f32 %v863_v9 }
 0x73d   :  { %5460 = vpow2.f32 %v859_v8 }
 0x744   :  { %v6036_v10 = vpop.eup %5456 }
 0x745   :  { %v874_v11 = vsel %vm503_vm4, %v6036_v10, 0.0 }
 0x746   :  { %v5459_v12 = vpop.eup %5458  ;;  %875 = vadd.xlane.f32.xlu1 %v874_v11 }
 0x747   :  { %v877_v13 = vsel %vm503_vm4, %v5459_v12, 0.0  ;;  %v5461_v14 = vpop.eup %5460 }
 0x748   :  { %878 = vadd.xlane.f32.xlu0 %v877_v13  ;;  %v871_v18 = vsel %vm503_vm4, %v5461_v14, 0.0 }
 0x74a   :  { %v852_v15 = vpop.xlane.xlu1 %851 }
 0x74b   :  { %v858_v16 = vsub.f32 %v4870_v54, %v852_v15  ;;  %v846_v17 = vpop.xlane.xlu0 %845 }
 0x74c   :  { %v856_v19 = vsub.f32 %v821_v55, %v846_v17  ;;  %872 = vadd.xlane.f32.xlu0 %v871_v18 }
 0x74d   :  { %v869_v20 = vmul.f32 1.442695, %v858_v16 }
 0x74e   :  { %v865_v22 = vmul.f32 1.442695, %v856_v19  ;;  %v908_v23 = vpop.permute.xlu1 %907 }
 0x74f   :  { %5462 = vpow2.f32 %v869_v20  ;;  %v849_v24 = vpop.xlane.xlu0 %848  ;;  %v917_v26 = vsel %vm585_vm5, %v908_v23, 0 }
 0x750   :  { %5464 = vpow2.f32 %v865_v22  ;;  %v857_v32 = vsub.f32 %v824_v61, %v849_v24 }
 0x752   :  { %v968_v25 = vpop.permute.xlu1 %967  ;;  %v867_v33 = vmul.f32 1.442695, %v857_v32 }
 0x753   :  { %v906_v21 = vpop.permute.xlu0 %905  ;;  %4880 = vmatprep.subr.bf16.mxu1 %v968_v25 }
 0x754   :  { %4872 = vmatprep.subr.bf16.mxu0 %v906_v21  ;;  %4881 = vmatpush3.bf16.msra.mxu1 %v968_v25  ;;  %5466 = vpow2.f32 %v867_v33 }
 0x755   :  { %4873 = vmatpush3.bf16.msra.mxu0 %v906_v21 }
 0x756   :  { %5238 = vmatprep.subr.msk.bf16.mxu0 %vm585_vm5, %v908_v23  ;;  %v1034_v28 = vpop.permute.xlu1 %1033 }
 0x757   :  { %v1044_v59 = vsel %vm376_vm3, %v1034_v28, 0 }
 0x759   :  { %v6044_v27 = vpop.eup %5462  ;;  %4875 = vmatpush3.bf16.msra.mxu0 %v917_v26 }
 0x75a   :  { %5240 = vmatprep.subr.msk.bf16.mxu0 %vm376_vm3, %v1034_v28  ;;  %v886_v29 = vsel %vm503_vm4, %v6044_v27, 0.0  ;;  %v5465_v30 = vpop.eup %5464  ;;  %v1036_v36 = vpop.permute.xlu1 %1035 }
 0x75b   :  { %887 = vadd.xlane.f32.xlu1 %v886_v29  ;;  %v880_v31 = vsel %vm503_vm4, %v5465_v30, 0.0  ;;  %v1047_v63 = vsel %vm376_vm3, %v1036_v36, 0 }
 0x75e   :  { %v5467_v34 = vpop.eup %5466 }
 0x75f   :  { %881 = vadd.xlane.f32.xlu1 %v880_v31  ;;  %v883_v35 = vsel %vm503_vm4, %v5467_v34, 0.0 }
 0x762   :  { %969 = vrot.lane.b32.xlu0 %v5928_v4, %s5720_s25 }
 0x770   :  { %1029 = vrot.lane.b32.xlu1 %v5912_v52, %s5722_s1 }
 0x774   :  { %1103 = vrot.lane.b32.xlu1 %v5928_v4, %s5721_s26 }
 0x778   :  { %1099 = vrot.lane.b32.xlu1 %v5928_v4, %s5722_s1 }
 0x781   :  { %884 = vadd.xlane.f32.xlu0 %v883_v35 }
 0x797   :  { %1101 = vrot.lane.b32.xlu0 %v5922_v1, %s5721_s26 }
 0x79b   :  { %1031 = vrot.lane.b32.xlu0 %v5918_v57, %s5722_s1 }
 0x79f   :  { %1097 = vrot.lane.b32.xlu0 %v5922_v1, %s5722_s1 }
 0x7d3   :  { %v876_v37 = vpop.xlane.xlu1 %875 }
 0x7d5   :  { %v879_v40 = vpop.xlane.xlu0 %878 }
 0x7d6   :  { %5468 = vrcp.f32 %v879_v40 }
 0x7d7   :  { %5470 = vrcp.f32 %v876_v37 }
 0x7d9   :  { %v873_v42 = vpop.xlane.xlu0 %872 }
 0x7da   :  { %5472 = vrcp.f32 %v873_v42 }
 0x7dd   :  { %v970_v43 = vpop.permute.xlu0 %969 }
 0x7de   :  { %5239 = vmatprep.subr.msk.bf16.mxu1 %vm585_vm5, %v970_v43  ;;  %v979_v45 = vsel %vm585_vm5, %v970_v43, 0 }
 0x7df   :  { %4883 = vmatpush3.bf16.msra.mxu1 %v979_v45 }
 0x7e0   :  { %v5469_v46 = vpop.eup %5468 }
 0x7e1   :  { %v5471_v47 = vpop.eup %5470  ;;  %v897_v44 = vmul.f32 %v5469_v46, %v5459_v12 }
 0x7e2   :  { %v896_v54 = vmul.f32 %v5471_v47, %v6036_v10 }
 0x7e3   :  { %v902_v58 = vpack.c.bf16 %v897_v44, %v897_v44 }
 0x7e4   :  { %v5473_v48 = vpop.eup %5472 }
 0x7e5   :  { %v895_v51 = vmul.f32 %v5473_v48, %v5461_v14 }
 0x7e7   :  { %v901_v55 = vpack.c.bf16 %v896_v54, %v895_v51 }
 0x7e8   :  { %v888_v56 = vpop.xlane.xlu1 %887 }
 0x7e9   :  { %4876 = vmatprep.mubr.msk.bf16.mxu0 %vm503_vm4, %v901_v55  ;;  %5474 = vrcp.f32 %v888_v56 }
 0x7ea   :  { %4877 = vmatmul.mubr.msk.bf16.vlgmr.msra.gmra.mrb[20].mxu0 %vm503_vm4, %v902_v58 }
 0x7eb   :  { %4889 = vmatpush3.bf16.xpose.msra.mxu0 %v1044_v59 }
 0x7ec   :  { %5241 = vmatprep.subr.msk.bf16.mxu0 %vm376_vm3, %v1036_v36  ;;  %v882_v61 = vpop.xlane.xlu1 %881 }
 0x7ed   :  { %5476 = vrcp.f32 %v882_v61 }
 0x7f0   :  { %v1030_v62 = vpop.permute.xlu1 %1029 }
 0x7f1   :  { %4892 = vmatprep.mubr.msk.bf16.mxu0 %vm376_vm3, %v1030_v62 }
 0x7f3   :  { %4891 = vmatpush3.bf16.xpose.msra.mxu0 %v1047_v63  ;;  %v5475_v3 = vpop.eup %5474 }
 0x7f4   :  { %v900_v8 = vmul.f32 %v5475_v3, %v6044_v27  ;;  %v1104_v15 = vpop.permute.xlu1 %1103 }
 0x7f5   :  { %v1115_v16 = vsel %vm376_vm3, %v1104_v15, 0 }
 0x7f6   :  { %v904_v12 = vpack.c.bf16 %v900_v8, %v900_v8 }
 0x7f7   :  { %v5477_v6 = vpop.eup %5476 }
 0x7f8   :  { %v898_v9 = vmul.f32 %v5477_v6, %v5465_v30  ;;  %v1100_v17 = vpop.permute.xlu1 %1099 }
 0x80e   :  { %v885_v0 = vpop.xlane.xlu0 %884 }
 0x80f   :  { %5478 = vrcp.f32 %v885_v0 }
 0x812   :  { %v1102_v2 = vpop.permute.xlu0 %1101 }
 0x813   :  { %5242 = vmatprep.subr.msk.bf16.mxu1 %vm376_vm3, %v1102_v2  ;;  %v1112_v14 = vsel %vm376_vm3, %v1102_v2, 0 }
 0x816   :  { %v1032_v5 = vpop.permute.xlu0 %1031 }
 0x817   :  { %4893 = vmatmul.mubr.msk.bf16.vlgmr.msra.gmra.mrb[24].mxu0 %vm376_vm3, %v1032_v5 }
 0x819   :  { %v5479_v7 = vpop.eup %5478 }
 0x81a   :  { %v899_v10 = vmul.f32 %v5479_v7, %v5467_v34  ;;  %v1098_v13 = vpop.permute.xlu0 %1097 }
 0x81c   :  { %v903_v11 = vpack.c.bf16 %v899_v10, %v898_v9 }
 0x81e   :  { %4884 = vmatprep.mubr.msk.bf16.mxu1 %vm503_vm4, %v903_v11 }
 0x81f   :  { %4885 = vmatmul.mubr.msk.bf16.vlgmr.msra.gmra.mrb[20].mxu1 %vm503_vm4, %v904_v12 }
 0x820   :  { %4897 = vmatpush3.bf16.xpose.msra.mxu1 %v1112_v14  ;;  %4900 = vmatprep.mubr.msk.bf16.mxu1 %vm376_vm3, %v1098_v13 }
 0x821   :  { %5243 = vmatprep.subr.msk.bf16.mxu1 %vm376_vm3, %v1104_v15 }
 0x828   :  { %4899 = vmatpush3.bf16.xpose.msra.mxu1 %v1115_v16 }
 0x82f   :  { %4901 = vmatmul.mubr.msk.bf16.vlgmr.msra.gmra.mrb[24].mxu1 %vm376_vm3, %v1100_v17 }
 0x8bd   :  { %v6084_v18 = vpop.f32.mrb[20].mxu0 }
 0x8be   :  { %v6086_v19 = vpop.f32.mrb[21].mxu0 }
 0x8bf   :  { %v4879_v20 = vpop.f32.mrb[22].mxu0 }
 0x8c0   :  { %v6088_v22 = vpop.f32.mrb[23].mxu0 }
 0x8c1   :  { %v5294_v23 = vpack.i.bf16 %v6088_v22, %v6086_v19 }
 0x8ea   :  { %v4894_v24 = vpop.f32.mrb[24].mxu0 }
 0x8eb   :  { %v1083_v25 = vpop.f32.mrb[25].mxu0  ;;  %v1171_v29 = vsel %vm503_vm4, %v4894_v24, -inf }
 0x8ec   :  { %v4895_v21 = vpop.f32.mrb[26].mxu0  ;;  %v1165_v26 = vsel %vm503_vm4, %v1083_v25, -inf }
 0x8ed   :  { %1166 = vmax.xlane.f32.xlu0 %v1165_v26  ;;  %v1086_v27 = vpop.f32.mrb[27].mxu0 }
 0x8ee   :  { %v1168_v28 = vsel %vm503_vm4, %v1086_v27, -inf }
 0x8ef   :  { %1169 = vmax.xlane.f32.xlu1 %v1168_v28 }
 0x8f1   :  { %1172 = vmax.xlane.f32.xlu0 %v1171_v29 }
 0x8f2   :  { %v6095_v30 = vpop.f32.mrb[20].mxu1 }
 0x8f3   :  { %v6097_v31 = vpop.f32.mrb[21].mxu1 }
 0x8f4   :  { %v5309_v32 = vpack.i.bf16 %v6097_v31, %v6084_v18  ;;  %v4887_v33 = vpop.f32.mrb[22].mxu1 }
 0x8f5   :  { %v6101_v34 = vpop.f32.mrb[23].mxu1 }
 0x8f6   :  { %v5324_v35 = vpack.i.bf16 %v6095_v30, %v6101_v34 }
 0x902   :  { %v4902_v36 = vpop.f32.mrb[24].mxu1 }
 0x903   :  { %v1151_v37 = vpop.f32.mrb[25].mxu1  ;;  %v1180_v40 = vsel %vm503_vm4, %v4902_v36, -inf }
 0x904   :  { %1181 = vmax.xlane.f32.xlu1 %v1180_v40  ;;  %v4903_v42 = vpop.f32.mrb[26].mxu1  ;;  %v1174_v43 = vsel %vm503_vm4, %v1151_v37, -inf }
 0x905   :  { %1175 = vmax.xlane.f32.xlu0 %v1174_v43  ;;  %v1154_v45 = vpop.f32.mrb[27].mxu1 }
 0x906   :  { %v1177_v46 = vsel %vm503_vm4, %v1154_v45, -inf }
 0x909   :  { %1178 = vmax.xlane.f32.xlu0 %v1177_v46 }
 0x915   :  { %1237 = vrot.lane.b32.xlu1 %v5918_v57, %s5723_s2 }
 0x919   :  { %1297 = vrot.lane.b32.xlu1 %v5922_v1, %s5723_s2 }
 0x91d   :  { %1363 = vrot.lane.b32.xlu1 %v5912_v52, %s5724_s27 }
 0x91f   :  { %1235 = vrot.lane.b32.xlu0 %v5912_v52, %s5723_s2 }
 0x921   :  { %1365 = vrot.lane.b32.xlu1 %v5918_v57, %s5724_s27 }
 0x97a   :  { %v1167_v47 = vpop.xlane.xlu0 %1166 }
 0x97b   :  { %v1183_v44 = vsub.f32 %v1083_v25, %v1167_v47 }
 0x97c   :  { %v1170_v48 = vpop.xlane.xlu1 %1169 }
 0x97d   :  { %v1184_v51 = vsub.f32 %v1086_v27, %v1170_v48  ;;  %v1189_v58 = vmul.f32 1.442695, %v1183_v44 }
 0x97e   :  { %v1173_v54 = vpop.xlane.xlu0 %1172 }
 0x97f   :  { %v1191_v55 = vmul.f32 1.442695, %v1184_v51  ;;  %v1185_v56 = vsub.f32 %v4894_v24, %v1173_v54 }
 0x981   :  { %5480 = vpow2.f32 %v1191_v55  ;;  %v1193_v59 = vmul.f32 1.442695, %v1185_v56 }
 0x983   :  { %5482 = vpow2.f32 %v1193_v59 }
 0x984   :  { %5484 = vpow2.f32 %v1189_v58 }
 0x98b   :  { %v6118_v61 = vpop.eup %5480 }
 0x98c   :  { %v1204_v62 = vsel %vm503_vm4, %v6118_v61, 0.0 }
 0x98d   :  { %v5483_v63 = vpop.eup %5482  ;;  %1205 = vadd.xlane.f32.xlu1 %v1204_v62 }
 0x98e   :  { %v1207_v0 = vsel %vm503_vm4, %v5483_v63, 0.0  ;;  %v5485_v2 = vpop.eup %5484 }
 0x98f   :  { %1208 = vadd.xlane.f32.xlu0 %v1207_v0  ;;  %v1201_v7 = vsel %vm503_vm4, %v5485_v2, 0.0 }
 0x991   :  { %v1182_v3 = vpop.xlane.xlu1 %1181 }
 0x992   :  { %v1188_v5 = vsub.f32 %v4902_v36, %v1182_v3  ;;  %v1176_v6 = vpop.xlane.xlu0 %1175 }
 0x993   :  { %v1186_v8 = vsub.f32 %v1151_v37, %v1176_v6  ;;  %1202 = vadd.xlane.f32.xlu0 %v1201_v7 }
 0x994   :  { %v1199_v9 = vmul.f32 1.442695, %v1188_v5 }
 0x995   :  { %v1195_v10 = vmul.f32 1.442695, %v1186_v8  ;;  %v1238_v11 = vpop.permute.xlu1 %1237 }
 0x996   :  { %5486 = vpow2.f32 %v1199_v9  ;;  %v1179_v12 = vpop.xlane.xlu0 %1178  ;;  %v1247_v15 = vsel %vm585_vm5, %v1238_v11, 0 }
 0x997   :  { %5488 = vpow2.f32 %v1195_v10  ;;  %v1187_v21 = vsub.f32 %v1154_v45, %v1179_v12 }
 0x999   :  { %v1298_v13 = vpop.permute.xlu1 %1297  ;;  %v1197_v26 = vmul.f32 1.442695, %v1187_v21 }
 0x99a   :  { %v1236_v14 = vpop.permute.xlu0 %1235  ;;  %4912 = vmatprep.subr.bf16.mxu1 %v1298_v13 }
 0x99b   :  { %4904 = vmatprep.subr.bf16.mxu0 %v1236_v14  ;;  %4913 = vmatpush3.bf16.msra.mxu1 %v1298_v13  ;;  %5490 = vpow2.f32 %v1197_v26 }
 0x99c   :  { %4905 = vmatpush3.bf16.msra.mxu0 %v1236_v14 }
 0x99d   :  { %5244 = vmatprep.subr.msk.bf16.mxu0 %vm585_vm5, %v1238_v11  ;;  %v1364_v17 = vpop.permute.xlu1 %1363 }
 0x99e   :  { %v1374_v56 = vsel %vm376_vm3, %v1364_v17, 0 }
 0x9a0   :  { %v6126_v16 = vpop.eup %5486  ;;  %4907 = vmatpush3.bf16.msra.mxu0 %v1247_v15 }
 0x9a1   :  { %5246 = vmatprep.subr.msk.bf16.mxu0 %vm376_vm3, %v1364_v17  ;;  %v1216_v20 = vsel %vm503_vm4, %v6126_v16, 0.0  ;;  %v5489_v24 = vpop.eup %5488  ;;  %v1366_v29 = vpop.permute.xlu1 %1365 }
 0x9a2   :  { %1217 = vadd.xlane.f32.xlu1 %v1216_v20  ;;  %v1210_v25 = vsel %vm503_vm4, %v5489_v24, 0.0  ;;  %v1377_v62 = vsel %vm376_vm3, %v1366_v29, 0 }
 0x9a5   :  { %v5491_v27 = vpop.eup %5490 }
 0x9a6   :  { %1211 = vadd.xlane.f32.xlu1 %v1210_v25  ;;  %v1213_v28 = vsel %vm503_vm4, %v5491_v27, 0.0 }
 0x9a9   :  { %1299 = vrot.lane.b32.xlu0 %v5928_v4, %s5723_s2 }
 0x9b7   :  { %1359 = vrot.lane.b32.xlu1 %v5912_v52, %s5725_s28 }
 0x9bb   :  { %1433 = vrot.lane.b32.xlu1 %v5928_v4, %s5724_s27 }
 0x9bf   :  { %1429 = vrot.lane.b32.xlu1 %v5928_v4, %s5725_s28 }
 0x9c8   :  { %1214 = vadd.xlane.f32.xlu0 %v1213_v28 }
 0x9de   :  { %1431 = vrot.lane.b32.xlu0 %v5922_v1, %s5724_s27 }
 0x9e2   :  { %1361 = vrot.lane.b32.xlu0 %v5918_v57, %s5725_s28 }
 0x9e6   :  { %1427 = vrot.lane.b32.xlu0 %v5922_v1, %s5725_s28 }
 0xa1a   :  { %v1206_v33 = vpop.xlane.xlu1 %1205 }
 0xa1c   :  { %v1209_v36 = vpop.xlane.xlu0 %1208 }
 0xa1d   :  { %5492 = vrcp.f32 %v1209_v36 }
 0xa1e   :  { %5494 = vrcp.f32 %v1206_v33 }
 0xa20   :  { %v1203_v37 = vpop.xlane.xlu0 %1202 }
 0xa21   :  { %5496 = vrcp.f32 %v1203_v37 }
 0xa24   :  { %v1300_v40 = vpop.permute.xlu0 %1299 }
 0xa25   :  { %5245 = vmatprep.subr.msk.bf16.mxu1 %vm585_vm5, %v1300_v40  ;;  %v1309_v42 = vsel %vm585_vm5, %v1300_v40, 0 }
 0xa26   :  { %4915 = vmatpush3.bf16.msra.mxu1 %v1309_v42 }
 0xa27   :  { %v5493_v43 = vpop.eup %5492 }
 0xa28   :  { %v5495_v45 = vpop.eup %5494  ;;  %v1227_v47 = vmul.f32 %v5493_v43, %v5483_v63 }
 0xa29   :  { %v1226_v44 = vmul.f32 %v5495_v45, %v6118_v61 }
 0xa2a   :  { %v1232_v55 = vpack.c.bf16 %v1227_v47, %v1227_v47 }
 0xa2b   :  { %v5497_v46 = vpop.eup %5496 }
 0xa2c   :  { %v1225_v48 = vmul.f32 %v5497_v46, %v5485_v2 }
 0xa2e   :  { %v1231_v51 = vpack.c.bf16 %v1226_v44, %v1225_v48 }
 0xa2f   :  { %v1218_v54 = vpop.xlane.xlu1 %1217 }
 0xa30   :  { %4908 = vmatprep.mubr.msk.bf16.mxu0 %vm503_vm4, %v1231_v51  ;;  %5498 = vrcp.f32 %v1218_v54 }
 0xa31   :  { %4909 = vmatmul.mubr.msk.bf16.vlgmr.msra.gmra.mrb[28].mxu0 %vm503_vm4, %v1232_v55 }
 0xa32   :  { %4921 = vmatpush3.bf16.xpose.msra.mxu0 %v1374_v56 }
 0xa33   :  { %5247 = vmatprep.subr.msk.bf16.mxu0 %vm376_vm3, %v1366_v29  ;;  %v1212_v58 = vpop.xlane.xlu1 %1211 }
 0xa34   :  { %5500 = vrcp.f32 %v1212_v58 }
 0xa37   :  { %v1360_v59 = vpop.permute.xlu1 %1359 }
 0xa38   :  { %4924 = vmatprep.mubr.msk.bf16.mxu0 %vm376_vm3, %v1360_v59 }
 0xa3a   :  { %4923 = vmatpush3.bf16.xpose.msra.mxu0 %v1377_v62  ;;  %v5499_v0 = vpop.eup %5498 }
 0xa3b   :  { %v1230_v6 = vmul.f32 %v5499_v0, %v6126_v16  ;;  %v1434_v13 = vpop.permute.xlu1 %1433 }
 0xa3c   :  { %v1445_v14 = vsel %vm376_vm3, %v1434_v13, 0 }
 0xa3d   :  { %v1234_v10 = vpack.c.bf16 %v1230_v6, %v1230_v6 }
 0xa3e   :  { %v5501_v3 = vpop.eup %5500 }
 0xa3f   :  { %v1228_v7 = vmul.f32 %v5501_v3, %v5489_v24  ;;  %v1430_v15 = vpop.permute.xlu1 %1429 }
 0xa55   :  { %v1215_v61 = vpop.xlane.xlu0 %1214 }
 0xa56   :  { %5502 = vrcp.f32 %v1215_v61 }
 0xa59   :  { %v1432_v63 = vpop.permute.xlu0 %1431 }
 0xa5a   :  { %5248 = vmatprep.subr.msk.bf16.mxu1 %vm376_vm3, %v1432_v63  ;;  %v1442_v12 = vsel %vm376_vm3, %v1432_v63, 0 }
 0xa5d   :  { %v1362_v2 = vpop.permute.xlu0 %1361 }
 0xa5e   :  { %4925 = vmatmul.mubr.msk.bf16.vlgmr.msra.gmra.mrb[32].mxu0 %vm376_vm3, %v1362_v2 }
 0xa60   :  { %v5503_v5 = vpop.eup %5502 }
 0xa61   :  { %v1229_v8 = vmul.f32 %v5503_v5, %v5491_v27  ;;  %v1428_v11 = vpop.permute.xlu0 %1427 }
 0xa63   :  { %v1233_v9 = vpack.c.bf16 %v1229_v8, %v1228_v7 }
 0xa65   :  { %4916 = vmatprep.mubr.msk.bf16.mxu1 %vm503_vm4, %v1233_v9 }
 0xa66   :  { %4917 = vmatmul.mubr.msk.bf16.vlgmr.msra.gmra.mrb[28].mxu1 %vm503_vm4, %v1234_v10 }
 0xa67   :  { %4929 = vmatpush3.bf16.xpose.msra.mxu1 %v1442_v12  ;;  %4932 = vmatprep.mubr.msk.bf16.mxu1 %vm376_vm3, %v1428_v11 }
 0xa68   :  { %5249 = vmatprep.subr.msk.bf16.mxu1 %vm376_vm3, %v1434_v13 }
 0xa6f   :  { %4931 = vmatpush3.bf16.xpose.msra.mxu1 %v1445_v14 }
 0xa76   :  { %4933 = vmatmul.mubr.msk.bf16.vlgmr.msra.gmra.mrb[32].mxu1 %vm376_vm3, %v1430_v15 }
 0xb04   :  { %v6166_v16 = vpop.f32.mrb[28].mxu0 }
 0xb05   :  { %v6168_v17 = vpop.f32.mrb[29].mxu0 }
 0xb06   :  { %v4911_v20 = vpop.f32.mrb[30].mxu0 }
 0xb07   :  { %v6170_v24 = vpop.f32.mrb[31].mxu0 }
 0xb08   :  { %v5299_v25 = vpack.i.bf16 %v6170_v24, %v6168_v17 }
 0xb31   :  { %v4926_v21 = vpop.f32.mrb[32].mxu0 }
 0xb32   :  { %v1413_v26 = vpop.f32.mrb[33].mxu0  ;;  %v1501_v36 = vsel %vm503_vm4, %v4926_v21, -inf }
 0xb33   :  { %v4927_v27 = vpop.f32.mrb[34].mxu0  ;;  %v1495_v28 = vsel %vm503_vm4, %v1413_v26, -inf }
 0xb34   :  { %1496 = vmax.xlane.f32.xlu0 %v1495_v28  ;;  %v1416_v29 = vpop.f32.mrb[35].mxu0 }
 0xb35   :  { %v1498_v33 = vsel %vm503_vm4, %v1416_v29, -inf }
 0xb36   :  { %1499 = vmax.xlane.f32.xlu1 %v1498_v33 }
 0xb38   :  { %1502 = vmax.xlane.f32.xlu0 %v1501_v36 }
 0xb39   :  { %v6177_v37 = vpop.f32.mrb[28].mxu1 }
 0xb3a   :  { %v6179_v40 = vpop.f32.mrb[29].mxu1 }
 0xb3b   :  { %v5314_v42 = vpack.i.bf16 %v6179_v40, %v6166_v16  ;;  %v4919_v43 = vpop.f32.mrb[30].mxu1 }
 0xb3c   :  { %v6183_v45 = vpop.f32.mrb[31].mxu1 }
 0xb3d   :  { %v5329_v46 = vpack.i.bf16 %v6177_v37, %v6183_v45 }
 0xb49   :  { %v4934_v47 = vpop.f32.mrb[32].mxu1 }
 0xb4a   :  { %v1481_v48 = vpop.f32.mrb[33].mxu1  ;;  %v1510_v44 = vsel %vm503_vm4, %v4934_v47, -inf }
 0xb4b   :  { %1511 = vmax.xlane.f32.xlu1 %v1510_v44  ;;  %v4935_v51 = vpop.f32.mrb[34].mxu1  ;;  %v1504_v54 = vsel %vm503_vm4, %v1481_v48, -inf }
 0xb4c   :  { %1505 = vmax.xlane.f32.xlu0 %v1504_v54  ;;  %v1484_v55 = vpop.f32.mrb[35].mxu1 }
 0xb4d   :  { %v1507_v56 = vsel %vm503_vm4, %v1484_v55, -inf }
 0xb50   :  { %1508 = vmax.xlane.f32.xlu0 %v1507_v56 }
 0xbc1   :  { %v1497_v58 = vpop.xlane.xlu0 %1496 }
 0xbc2   :  { %v1513_v62 = vsub.f32 %v1413_v26, %v1497_v58 }
 0xbc3   :  { %v1500_v59 = vpop.xlane.xlu1 %1499 }
 0xbc4   :  { %v1514_v61 = vsub.f32 %v1416_v29, %v1500_v59  ;;  %v1519_v3 = vmul.f32 1.442695, %v1513_v62 }
 0xbc5   :  { %v1503_v63 = vpop.xlane.xlu0 %1502 }
 0xbc6   :  { %v1521_v0 = vmul.f32 1.442695, %v1514_v61  ;;  %v1515_v2 = vsub.f32 %v4926_v21, %v1503_v63 }
 0xbc8   :  { %5504 = vpow2.f32 %v1521_v0  ;;  %v1523_v5 = vmul.f32 1.442695, %v1515_v2 }
 0xbca   :  { %5506 = vpow2.f32 %v1523_v5 }
 0xbcb   :  { %5508 = vpow2.f32 %v1519_v3 }
 0xbd2   :  { %v5505_v6 = vpop.eup %5504 }
 0xbd3   :  { %v1534_v7 = vsel %vm503_vm4, %v5505_v6, 0.0 }
 0xbd4   :  { %v6191_v8 = vpop.eup %5506  ;;  %1535 = vadd.xlane.f32.xlu1 %v1534_v7  ;;  %v5392_v7 = vld [vmem:[%s6989_s6] sm:$0xff]  }
 0xbd5   :  { %v1537_v9 = vsel %vm503_vm4, %v6191_v8, 0.0  ;;  %v5509_v10 = vpop.eup %5508 }
 0xbd6   :  { %1538 = vadd.xlane.f32.xlu0 %v1537_v9  ;;  %v1531_v14 = vsel %vm503_vm4, %v5509_v10, 0.0 }
 0xbd8   :  { %v1512_v11 = vpop.xlane.xlu1 %1511 }
 0xbd9   :  { %v1518_v12 = vsub.f32 %v4934_v47, %v1512_v11  ;;  %v1506_v13 = vpop.xlane.xlu0 %1505 }
 0xbda   :  { %v1516_v15 = vsub.f32 %v1481_v48, %v1506_v13  ;;  %1532 = vadd.xlane.f32.xlu0 %v1531_v14 }
 0xbdb   :  { %v1529_v20 = vmul.f32 1.442695, %v1518_v12 }
 0xbdc   :  { %v1525_v21 = vmul.f32 1.442695, %v1516_v15 }
 0xbdd   :  { %5510 = vpow2.f32 %v1529_v20  ;;  %v1509_v26 = vpop.xlane.xlu0 %1508 }
 0xbde   :  { %v1517_v27 = vsub.f32 %v1484_v55, %v1509_v26  ;;  %5512 = vpow2.f32 %v1525_v21 }
 0xbe0   :  { %v1527_v28 = vmul.f32 1.442695, %v1517_v27 }
 0xbe2   :  { %5514 = vpow2.f32 %v1527_v28 }
 0xbe7   :  { %v5511_v29 = vpop.eup %5510 }
 0xbe8   :  { %v1546_v33 = vsel %vm503_vm4, %v5511_v29, 0.0  ;;  %v5513_v36 = vpop.eup %5512 }
 0xbe9   :  { %1547 = vadd.xlane.f32.xlu1 %v1546_v33  ;;  %v1540_v47 = vsel %vm503_vm4, %v5513_v36, 0.0 }
 0xbec   :  { %v5515_v43 = vpop.eup %5514 }
 0xbed   :  { %1541 = vadd.xlane.f32.xlu1 %v1540_v47  ;;  %v1543_v48 = vsel %vm503_vm4, %v5515_v43, 0.0 }
 0xbee   :  { %1544 = vadd.xlane.f32.xlu0 %v1543_v48 }
 0xbfe   :  { %1567 = vrot.lane.b32.xlu1 %v5918_v57, %s5726_s0 }
 0xc02   :  { %1627 = vrot.lane.b32.xlu1 %v5922_v1, %s5726_s0 }
 0xc04   :  { %1565 = vrot.lane.b32.xlu0 %v5912_v52, %s5726_s0 }
 0xc06   :  { %1629 = vrot.lane.b32.xlu1 %v5928_v4, %s5726_s0 }
 0xc08   :  { %5295 = vrot.lane.b32.xlu0 %v5294_v23, %s7000_s3 }
 0xc0a   :  { %5300 = vrot.lane.b32.xlu1 %v5299_v25, %s5728_s29 }
 0xc0e   :  { %5310 = vrot.lane.b32.xlu1 %v5309_v32, %s7000_s3 }
 0xc61   :  { %v1536_v52 = vpop.xlane.xlu1 %1535 }
 0xc62   :  { %5516 = vrcp.f32 %v1536_v52 }
 0xc63   :  { %v1539_v57 = vpop.xlane.xlu0 %1538 }
 0xc67   :  { %v1533_v1 = vpop.xlane.xlu0 %1532 }
 0xc68   :  { %5518 = vrcp.f32 %v1533_v1 }
 0xc69   :  { %5520 = vrcp.f32 %v1539_v57 }
 0xc6c   :  { %v5517_v4 = vpop.eup %5516 }
 0xc6d   :  { %v1556_v22 = vmul.f32 %v5517_v4, %v5505_v6 }
 0xc72   :  { %v5519_v44 = vpop.eup %5518 }
 0xc73   :  { %v1555_v19 = vmul.f32 %v5519_v44, %v5509_v10  ;;  %v5521_v31 = vpop.eup %5520 }
 0xc74   :  { %v1557_v54 = vmul.f32 %v5521_v31, %v6191_v8  ;;  %v5393_v8 = vld [vmem:[%s6989_s6 + $0x8] sm:$0xff]  }
 0xc75   :  { %v1561_v23 = vpack.c.bf16 %v1556_v22, %v1555_v19 }
 0xc76   :  { %v1548_v51 = vpop.xlane.xlu1 %1547  ;;  %v1562_v61 = vpack.c.bf16 %v1557_v54, %v1557_v54 }
 0xc77   :  { %4940 = vmatprep.mubr.msk.bf16.mxu0 %vm503_vm4, %v1561_v23  ;;  %5522 = vrcp.f32 %v1548_v51 }
 0xc7a   :  { %v1542_v17 = vpop.xlane.xlu1 %1541 }
 0xc7b   :  { %5524 = vrcp.f32 %v1542_v17  ;;  %v1545_v24 = vpop.xlane.xlu0 %1544 }
 0xc7c   :  { %5526 = vrcp.f32 %v1545_v24 }
 0xc7e   :  { %v1568_v18 = vpop.permute.xlu1 %1567 }
 0xc7f   :  { %v1566_v32 = vpop.permute.xlu0 %1565  ;;  %v1577_v56 = vsel %vm585_vm5, %v1568_v18, 0 }
 0xc80   :  { %4936 = vmatprep.subr.bf16.mxu0 %v1566_v32 }
 0xc81   :  { %4937 = vmatpush3.bf16.msra.mxu0 %v1566_v32  ;;  %v5523_v55 = vpop.eup %5522 }
 0xc82   :  { %5250 = vmatprep.subr.msk.bf16.mxu0 %vm585_vm5, %v1568_v18  ;;  %v1628_v25 = vpop.permute.xlu1 %1627  ;;  %v1560_v0 = vmul.f32 %v5523_v55, %v5511_v29 }
 0xc83   :  { %4944 = vmatprep.subr.bf16.mxu1 %v1628_v25  ;;  %v5296_v29 = vpop.permute.xlu0 %5295 }
 0xc84   :  { %4945 = vmatpush3.bf16.msra.mxu1 %v1628_v25  ;;  %v1564_v6 = vpack.c.bf16 %v1560_v0, %v1560_v0  ;;  %v5298_v33 = vunpack.i.h.bf16 %v5296_v29 }
 0xc85   :  { %v5525_v58 = vpop.eup %5524  ;;  %4939 = vmatpush3.bf16.msra.mxu0 %v1577_v56 }
 0xc86   :  { %v5527_v59 = vpop.eup %5526  ;;  %v1630_v62 = vpop.permute.xlu1 %1629  ;;  %v1558_v63 = vmul.f32 %v5525_v58, %v5513_v36  ;;  %4952 = vmatprep.subr.bf16.mxu0 %v5714_v60  ;;  %v5297_v36 = vunpack.i.l.bf16 %v5296_v29  ;;  %v1762_v37 = vsel %vm376_vm3, %v6012_v41, %v5298_v33 }
 0xc87   :  { %5251 = vmatprep.subr.msk.bf16.mxu1 %vm585_vm5, %v1630_v62  ;;  %v1639_v2 = vsel %vm585_vm5, %v1630_v62, 0  ;;  %v1559_v3 = vmul.f32 %v5527_v59, %v5515_v43 }
 0xc88   :  { %4941 = vmatmul.mubr.msk.bf16.vlgmr.msra.gmra.mrb[36].mxu0 %vm503_vm4, %v1562_v61  ;;  %4947 = vmatpush3.bf16.msra.mxu1 %v1639_v2 }
 0xc89   :  { %v1563_v5 = vpack.c.bf16 %v1559_v3, %v1558_v63  ;;  %4956 = vmatprep.mubr.msk.bf16.mxu0 %vm5715_vm2, %v5714_v60  ;;  %4968 = vmatprep.subr.bf16.mxu1 %v5714_v60 }
 0xc8a   :  { %4953 = vmatpush3.bf16.msra.mxu0 %v5392_v7  ;;  %v5301_v28 = vpop.permute.xlu1 %5300  ;;  %v5684_v7 = vld [vmem:[#allocation2] sm:$0xff] }
 0xc8b   :  { %4948 = vmatprep.mubr.msk.bf16.mxu1 %vm503_vm4, %v1563_v5  ;;  %4954 = vmatprep.subr.bf16.mxu0 %v5714_v60  ;;  %v5303_v43 = vunpack.i.h.bf16 %v5301_v28  ;;  %v5302_v47 = vunpack.i.l.bf16 %v5301_v28 }
 0xc8c   :  { %4949 = vmatmul.mubr.msk.bf16.vlgmr.msra.gmra.mrb[36].mxu1 %vm503_vm4, %v1564_v6  ;;  %v4487_v6 = vld [vmem:[%s6993_s10] ss:$0 sm:$0xff] }
 0xc8d   :  { %4972 = vmatprep.mubr.msk.bf16.mxu1 %vm5715_vm2, %v5714_v60  ;;  %v1769_v34 = vsel %vm1767_vm6, %v1762_v37, %v5303_v43  ;;  %v5687_v43 = vld [vmem:[#allocation2 + $0x18] sm:$0xff] }
 0xc8e   :  { %4955 = vmatpush3.bf16.msra.mxu0 %v5393_v8  ;;  %v5311_v16 = vpop.permute.xlu1 %5310 }
 0xc8f   :  { %4984 = vmatprep.subr.bf16.mxu0 %v5714_v60  ;;  %v5312_v48 = vunpack.i.l.bf16 %v5311_v16 }
 0xc91   :  { %v1763_v22 = vsel %vm376_vm3, %v6008_v38, %v5312_v48 }
 0xd5b   :  { %v4942_v9 = vpop.f32.mrb[36].mxu0 }
 0xd5c   :  { %v1613_v10 = vpop.f32.mrb[37].mxu0 }
 0xd5d   :  { %v4943_v11 = vpop.f32.mrb[38].mxu0 }
 0xd5e   :  { %v1616_v12 = vpop.f32.mrb[39].mxu0 }
 0xd5f   :  { %v5304_v13 = vpack.i.bf16 %v1616_v12, %v1613_v10  ;;  %v4950_v14 = vpop.f32.mrb[36].mxu1  ;;  %v5685_v12 = vld [vmem:[#allocation2 + $0x8] sm:$0xff] }
 0xd60   :  { %v1675_v15 = vpop.f32.mrb[37].mxu1 }
 0xd61   :  { %v5319_v20 = vpack.i.bf16 %v1675_v15, %v4942_v9  ;;  %5305 = vrot.lane.b32.xlu0 %v5304_v13, %s6998_s18  ;;  %v4951_v21 = vpop.f32.mrb[38].mxu1 }
 0xd62   :  { %v1678_v26 = vpop.f32.mrb[39].mxu1 }
 0xd63   :  { %v5334_v27 = vpack.i.bf16 %v4950_v14, %v1678_v26  ;;  %5320 = vrot.lane.b32.xlu1 %v5319_v20, %s6998_s18 }
 0xd65   :  { %5315 = vrot.lane.b32.xlu0 %v5314_v42, %s5728_s29  ;;  %v1761_v42 = vsel %vm376_vm3, %v6010_v39, %v5297_v36 }
 0xd67   :  { %5330 = vrot.lane.b32.xlu1 %v5329_v46, %s5728_s29  ;;  %v5313_v46 = vunpack.i.h.bf16 %v5311_v16 }
 0xd69   :  { %5325 = vrot.lane.b32.xlu0 %v5324_v35, %s7000_s3  ;;  %v1768_v35 = vsel %vm1767_vm6, %v1761_v42, %v5302_v47  ;;  %v1764_v39 = vsel %vm376_vm3, %v6019_v50, %v5313_v46 }
 0xd6d   :  { %5335 = vrot.lane.b32.xlu0 %v5334_v27, %s6998_s18  ;;  %v5686_v27 = vld [vmem:[#allocation2 + $0x10] sm:$0xff] }
 0xdd3   :  { %v5306_v40 = vpop.permute.xlu0 %5305 }
 0xdd4   :  { %v5308_v45 = vunpack.i.h.bf16 %v5306_v40  ;;  %v5307_v30 = vunpack.i.l.bf16 %v5306_v40 }
 0xdd5   :  { %v5321_v1 = vpop.permute.xlu1 %5320 }
 0xdd6   :  { %v1774_v52 = vsel %vm503_vm4, %v1768_v35, %v5307_v30  ;;  %v1775_v57 = vsel %vm503_vm4, %v1769_v34, %v5308_v45  ;;  %v5323_v23 = vunpack.i.h.bf16 %v5321_v1  ;;  %v5322_v51 = vunpack.i.l.bf16 %v5321_v1  ;;  %v5688_v45 = vld [vmem:[#allocation2 + $0x20] sm:$0xff] }
 0xdd7   :  { %v1780_v4 = vpack.c.bf16 %v1775_v57, %v1774_v52  ;;  %v5316_v44 = vpop.permute.xlu0 %5315  ;;  %v5689_v52 = vld [vmem:[#allocation2 + $0x28] sm:$0xff] }
 0xdd8   :  { %v5318_v19 = vunpack.i.h.bf16 %v5316_v44  ;;  %v5317_v41 = vunpack.i.l.bf16 %v5316_v44 }
 0xdd9   :  { %4957 = vmatmul.mubr.msk.bf16.vlgmr.msra.gmra.mrb[40].mxu0 %vm152_vm1, %v1780_v4  ;;  %v5331_v50 = vpop.permute.xlu1 %5330 }
 0xdda   :  { %v1770_v17 = vsel %vm1767_vm6, %v1763_v22, %v5317_v41  ;;  %v1771_v24 = vsel %vm1767_vm6, %v1764_v39, %v5318_v19  ;;  %4960 = vmatprep.mubr.msk.bf16.mxu0 %vm5715_vm2, %v5714_v60  ;;  %v5333_v58 = vunpack.i.h.bf16 %v5331_v50  ;;  %v5332_v59 = vunpack.i.l.bf16 %v5331_v50 }
 0xddb   :  { %v5326_v18 = vpop.permute.xlu0 %5325  ;;  %v1776_v31 = vsel %vm503_vm4, %v1770_v17, %v5322_v51  ;;  %v1777_v32 = vsel %vm503_vm4, %v1771_v24, %v5323_v23 }
 0xddc   :  { %v5328_v25 = vunpack.i.h.bf16 %v5326_v18  ;;  %v5327_v54 = vunpack.i.l.bf16 %v5326_v18  ;;  %v1781_v38 = vpack.c.bf16 %v1777_v32, %v1776_v31 }
 0xdde   :  { %v1766_v55 = vsel %vm376_vm3, %v6017_v49, %v5328_v25  ;;  %v1765_v56 = vsel %vm376_vm3, %v6021_v53, %v5327_v54 }
 0xddf   :  { %v5336_v62 = vpop.permute.xlu0 %5335  ;;  %v1772_v0 = vsel %vm1767_vm6, %v1765_v56, %v5332_v59  ;;  %v1773_v2 = vsel %vm1767_vm6, %v1766_v55, %v5333_v58 }
 0xde0   :  { %v5338_v61 = vunpack.i.h.bf16 %v5336_v62  ;;  %v5337_v63 = vunpack.i.l.bf16 %v5336_v62 }
 0xde1   :  { %4961 = vmatmul.mubr.msk.bf16.gmra.mrb[44].mxu0 %vm152_vm1, %v1781_v38 }
 0xde2   :  { %v1778_v3 = vsel %vm503_vm4, %v1772_v0, %v5337_v63  ;;  %v1779_v5 = vsel %vm503_vm4, %v1773_v2, %v5338_v61  ;;  %4964 = vmatprep.mubr.msk.bf16.mxu0 %vm5715_vm2, %v5714_v60 }
 0xde3   :  { %v1782_v49 = vpack.c.bf16 %v1779_v5, %v1778_v3 }
 0xde9   :  { %4965 = vmatmul.mubr.msk.bf16.gmra.mrb[48].mxu0 %vm152_vm1, %v1782_v49 }
 0xdea   :  { %5000 = vmatprep.mubr.msk.bf16.mxu0 %vm5715_vm2, %v5714_v60 }
 0xeac   :  { %v1842_v53 = vpop.f32.mrb[40].mxu0 }
 0xead   :  { %v1865_v8 = vadd.f32 %v5684_v7, %v1842_v53  ;;  %v4958_v9 = vpop.f32.mrb[41].mxu0 }
 0xeae   :  { %v1845_v10 = vpop.f32.mrb[42].mxu0  ;;  %v5394_v9 = vld [vmem:[%s6990_s7] sm:$0xff]  }
 0xeaf   :  { %v6293_v11 = vadd.f32 %v4487_v6, %v1865_v8  ;;  %v1866_v13 = vadd.f32 %v5685_v12, %v1845_v10  ;;  %v4959_v14 = vpop.f32.mrb[43].mxu0  ;;  %4969 = vmatpush3.bf16.msra.mxu1 %v5394_v9  ;;  %v5395_v10 = vld [vmem:[%s6990_s7 + $0x8] sm:$0xff]   ;;  %v4490_v9 = vld [vmem:[%s6994_s11] ss:$0 sm:$0xff] }
 0xeb0   :  { %4970 = vmatprep.subr.bf16.mxu1 %v5714_v60 }
 0xeb1   :  { %v6295_v15 = vadd.f32 %v4487_v6, %v1866_v13  ;;  %v1884_v20 = vsel %vm152_vm1, %v6293_v11, 0.0 }
 0xeb2   :  { %1885 = vadd.xlane.f32.xlu1 %v1884_v20 }
 0xeb3   :  { %v1887_v21 = vsel %vm152_vm1, %v6295_v15, 0.0  ;;  %4971 = vmatpush3.bf16.msra.mxu1 %v5395_v10 }
 0xeb4   :  { %1888 = vadd.xlane.f32.xlu0 %v1887_v21  ;;  %v1850_v26 = vpop.f32.mrb[44].mxu0  ;;  %5012 = vmatprep.subr.bf16.mxu1 %v5714_v60 }
 0xeb5   :  { %v1867_v28 = vadd.f32 %v5686_v27, %v1850_v26  ;;  %v4962_v29 = vpop.f32.mrb[45].mxu0 }
 0xeb6   :  { %v1853_v33 = vpop.f32.mrb[46].mxu0 }
 0xeb7   :  { %v6301_v36 = vadd.f32 %v4487_v6, %v1867_v28  ;;  %v1868_v47 = vadd.f32 %v5687_v43, %v1853_v33  ;;  %v4963_v16 = vpop.f32.mrb[47].mxu0 }
 0xeb8   :  { %v4488_v16 = vld [vmem:[%s6987_s4 + $0x2] ss:$0 sm:$0xff] }
 0xeb9   :  { %v6303_v40 = vadd.f32 %v4487_v6, %v1868_v47  ;;  %v1890_v37 = vsel %vm152_vm1, %v6301_v36, 0.0 }
 0xeba   :  { %1891 = vadd.xlane.f32.xlu0 %v1890_v37 }
 0xebb   :  { %v1893_v35 = vsel %vm152_vm1, %v6303_v40, 0.0 }
 0xebc   :  { %v1858_v42 = vpop.f32.mrb[48].mxu0 }
 0xebd   :  { %v1869_v30 = vadd.f32 %v5688_v45, %v1858_v42  ;;  %v4966_v34 = vpop.f32.mrb[49].mxu0 }
 0xebe   :  { %1894 = vadd.xlane.f32.xlu0 %v1893_v35  ;;  %v1861_v46 = vpop.f32.mrb[50].mxu0 }
 0xebf   :  { %v6309_v48 = vadd.f32 %v4487_v6, %v1869_v30  ;;  %v1870_v57 = vadd.f32 %v5689_v52, %v1861_v46  ;;  %v4967_v1 = vpop.f32.mrb[51].mxu0 }
 0xec1   :  { %v6311_v4 = vadd.f32 %v4487_v6, %v1870_v57  ;;  %v1896_v44 = vsel %vm152_vm1, %v6309_v48, 0.0 }
 0xec2   :  { %1897 = vadd.xlane.f32.xlu1 %v1896_v44  ;;  %v4489_v44 = vld [vmem:[%s6987_s4 + $0x3] ss:$0 sm:$0xff] }
 0xec3   :  { %v1899_v19 = vsel %vm152_vm1, %v6311_v4, 0.0 }
 0xec4   :  { %1900 = vadd.xlane.f32.xlu0 %v1899_v19 }
 0xf3f   :  { %v1886_v41 = vpop.xlane.xlu1 %1885 }
 0xf40   :  { %v1902_v39 = vmul.f32 0.03125, %v1886_v41 }
 0xf41   :  { %v1889_v22 = vpop.xlane.xlu0 %1888 }
 0xf42   :  { %v1908_v23 = vsub.f32 %v6293_v11, %v1902_v39  ;;  %v1903_v51 = vmul.f32 0.03125, %v1889_v22 }
 0xf44   :  { %v1909_v17 = vsub.f32 %v6295_v15, %v1903_v51  ;;  %v1914_v24 = vmul.f32 %v1908_v23, %v1908_v23 }
 0xf46   :  { %v1920_v18 = vsel %vm152_vm1, %v1914_v24, 0.0  ;;  %v1915_v31 = vmul.f32 %v1909_v17, %v1909_v17 }
 0xf47   :  { %v1892_v32 = vpop.xlane.xlu0 %1891  ;;  %1921 = vadd.xlane.f32.xlu1 %v1920_v18 }
 0xf48   :  { %v1904_v50 = vmul.f32 0.03125, %v1892_v32  ;;  %v1923_v25 = vsel %vm152_vm1, %v1915_v31, 0.0 }
 0xf49   :  { %1924 = vadd.xlane.f32.xlu0 %v1923_v25 }
 0xf4a   :  { %v6322_v54 = vsub.f32 %v6301_v36, %v1904_v50 }
 0xf4b   :  { %v1895_v38 = vpop.xlane.xlu0 %1894 }
 0xf4c   :  { %v1905_v55 = vmul.f32 0.03125, %v1895_v38  ;;  %v1916_v56 = vmul.f32 %v6322_v54, %v6322_v54 }
 0xf4e   :  { %v6327_v58 = vsub.f32 %v6303_v40, %v1905_v55  ;;  %v1926_v59 = vsel %vm152_vm1, %v1916_v56, 0.0 }
 0xf4f   :  { %1927 = vadd.xlane.f32.xlu1 %v1926_v59  ;;  %v1898_v62 = vpop.xlane.xlu1 %1897 }
 0xf50   :  { %v1906_v61 = vmul.f32 0.03125, %v1898_v62  ;;  %v1917_v63 = vmul.f32 %v6327_v58, %v6327_v58 }
 0xf51   :  { %v1901_v0 = vpop.xlane.xlu0 %1900 }
 0xf52   :  { %v6333_v2 = vsub.f32 %v6309_v48, %v1906_v61  ;;  %v1907_v3 = vmul.f32 0.03125, %v1901_v0  ;;  %v1929_v5 = vsel %vm152_vm1, %v1917_v63, 0.0 }
 0xf53   :  { %1930 = vadd.xlane.f32.xlu0 %v1929_v5  ;;  %v5398_v5 = vld [vmem:[%s6991_s8 + $0x10] sm:$0xff]  }
 0xf54   :  { %v1913_v49 = vsub.f32 %v6311_v4, %v1907_v3  ;;  %v1918_v53 = vmul.f32 %v6333_v2, %v6333_v2  ;;  %v5397_v3 = vld [vmem:[%s6991_s8 + $0x8] sm:$0xff]  }
 0xf56   :  { %v1932_v6 = vsel %vm152_vm1, %v1918_v53, 0.0  ;;  %v1919_v7 = vmul.f32 %v1913_v49, %v1913_v49  ;;  %v5400_v53 = vld [vmem:[%s6991_s8 + $0x20] sm:$0xff]  }
 0xf57   :  { %1933 = vadd.xlane.f32.xlu1 %v1932_v6  ;;  %v5401_v6 = vld [vmem:[%s6991_s8 + $0x28] sm:$0xff]  }
 0xf58   :  { %v1935_v8 = vsel %vm152_vm1, %v1919_v7, 0.0  ;;  %v5402_v7 = vld [vmem:[%s6991_s8 + $0x30] sm:$0xff]  }
 0xf59   :  { %1936 = vadd.xlane.f32.xlu0 %v1935_v8  ;;  %v5403_v8 = vld [vmem:[%s6991_s8 + $0x38] sm:$0xff]  }
 0xfd4   :  { %v1922_v12 = vpop.xlane.xlu1 %1921 }
 0xfd5   :  { %v1938_v13 = vmul.f32 0.03125, %v1922_v12 }
 0xfd6   :  { %v1925_v14 = vpop.xlane.xlu0 %1924 }
 0xfd7   :  { %v1944_v20 = vadd.f32 1e-05, %v1938_v13  ;;  %v1939_v21 = vmul.f32 0.03125, %v1925_v14 }
 0xfd9   :  { %5528 = vrsqrt.f32 %v1944_v20  ;;  %v1945_v26 = vadd.f32 1e-05, %v1939_v21 }
 0xfdb   :  { %5530 = vrsqrt.f32 %v1945_v26 }
 0xfdc   :  { %v1928_v27 = vpop.xlane.xlu1 %1927 }
 0xfdd   :  { %v1940_v28 = vmul.f32 0.03125, %v1928_v27 }
 0xfdf   :  { %v1946_v29 = vadd.f32 1e-05, %v1940_v28 }
 0xfe0   :  { %v1931_v33 = vpop.xlane.xlu0 %1930 }
 0xfe1   :  { %5532 = vrsqrt.f32 %v1946_v29  ;;  %v1941_v43 = vmul.f32 0.03125, %v1931_v33 }
 0xfe3   :  { %v5529_v47 = vpop.eup %5528  ;;  %v1947_v37 = vadd.f32 1e-05, %v1941_v43 }
 0xfe4   :  { %v1956_v42 = vmul.f32 %v5529_v47, %v1908_v23  ;;  %v1934_v45 = vpop.xlane.xlu1 %1933 }
 0xfe5   :  { %v5531_v30 = vpop.eup %5530  ;;  %5534 = vrsqrt.f32 %v1947_v37  ;;  %v1942_v34 = vmul.f32 0.03125, %v1934_v45 }
 0xfe6   :  { %v1966_v35 = vmul.f32 %v4488_v16, %v1956_v42  ;;  %v1957_v46 = vmul.f32 %v5531_v30, %v1909_v17  ;;  %v1937_v52 = vpop.xlane.xlu0 %1936 }
 0xfe7   :  { %v1948_v57 = vadd.f32 1e-05, %v1942_v34  ;;  %v1943_v1 = vmul.f32 0.03125, %v1937_v52 }
 0xfe8   :  { %v1967_v19 = vmul.f32 %v4488_v16, %v1957_v46  ;;  %v1976_v39 = vadd.f32 %v4489_v44, %v1966_v35 }
 0xfe9   :  { %5536 = vrsqrt.f32 %v1948_v57  ;;  %v1949_v41 = vadd.f32 1e-05, %v1943_v1 }
 0xfea   :  { %v1977_v22 = vadd.f32 %v4489_v44, %v1967_v19 }
 0xfeb   :  { %v5533_v51 = vpop.eup %5532  ;;  %5538 = vrsqrt.f32 %v1949_v41 }
 0xfec   :  { %v1982_v23 = vpack.c.bf16 %v1977_v22, %v1976_v39  ;;  %v1958_v24 = vmul.f32 %v5533_v51, %v6322_v54 }
 0xfee   :  { %4973 = vmatmul.mubr.msk.bf16.vlgmr.msra.gmra.mrb[40].mxu1 %vm152_vm1, %v1982_v23  ;;  %v1968_v31 = vmul.f32 %v4488_v16, %v1958_v24 }
 0xfef   :  { %v5535_v17 = vpop.eup %5534  ;;  %4976 = vmatprep.mubr.msk.bf16.mxu1 %vm5715_vm2, %v5714_v60 }
 0xff0   :  { %v1959_v18 = vmul.f32 %v5535_v17, %v6327_v58  ;;  %v1978_v25 = vadd.f32 %v4489_v44, %v1968_v31 }
 0xff2   :  { %v1969_v32 = vmul.f32 %v4488_v16, %v1959_v18 }
 0xff3   :  { %v5537_v50 = vpop.eup %5536 }
 0xff4   :  { %v1979_v38 = vadd.f32 %v4489_v44, %v1969_v32  ;;  %v1960_v55 = vmul.f32 %v5537_v50, %v6333_v2  ;;  %v5396_v2 = vld [vmem:[%s6991_s8] sm:$0xff]  }
 0xff5   :  { %v5539_v56 = vpop.eup %5538  ;;  %4985 = vmatpush3.bf16.msra.mxu0 %v5396_v2 }
 0xff6   :  { %v1983_v59 = vpack.c.bf16 %v1979_v38, %v1978_v25  ;;  %v1961_v62 = vmul.f32 %v5539_v56, %v1913_v49  ;;  %v1970_v54 = vmul.f32 %v4488_v16, %v1960_v55  ;;  %4986 = vmatprep.subr.bf16.mxu0 %v5714_v60  ;;  %v5399_v49 = vld [vmem:[%s6991_s8 + $0x18] sm:$0xff]  }
 0xff8   :  { %4977 = vmatmul.mubr.msk.bf16.gmra.mrb[44].mxu1 %vm152_vm1, %v1983_v59  ;;  %v1971_v61 = vmul.f32 %v4488_v16, %v1961_v62  ;;  %v1980_v0 = vadd.f32 %v4489_v44, %v1970_v54 }
 0xff9   :  { %4980 = vmatprep.mubr.msk.bf16.mxu1 %vm5715_vm2, %v5714_v60  ;;  %4987 = vmatpush3.bf16.msra.mxu0 %v5397_v3 }
 0xffa   :  { %v1981_v63 = vadd.f32 %v4489_v44, %v1971_v61  ;;  %4988 = vmatprep.subr.bf16.mxu0 %v5714_v60 }
 0xffc   :  { %v1984_v58 = vpack.c.bf16 %v1981_v63, %v1980_v0 }
 0xffd   :  { %4989 = vmatpush3.bf16.msra.mxu0 %v5398_v5 }
 0xffe   :  { %4990 = vmatprep.subr.bf16.mxu0 %v5714_v60 }
0x1000   :  { %4981 = vmatmul.mubr.msk.bf16.gmra.mrb[48].mxu1 %vm152_vm1, %v1984_v58 }
0x1001   :  { %5016 = vmatprep.mubr.msk.bf16.mxu1 %vm5715_vm2, %v5714_v60  ;;  %4991 = vmatpush3.bf16.msra.mxu0 %v5399_v49 }
0x1002   :  { %4992 = vmatprep.subr.bf16.mxu0 %v5714_v60 }
0x1005   :  { %4993 = vmatpush3.bf16.msra.mxu0 %v5400_v53 }
0x1006   :  { %4994 = vmatprep.subr.bf16.mxu0 %v5714_v60 }
0x1009   :  { %4995 = vmatpush3.bf16.msra.mxu0 %v5401_v6 }
0x100a   :  { %4996 = vmatprep.subr.bf16.mxu0 %v5714_v60 }
0x100d   :  { %4997 = vmatpush3.bf16.msra.mxu0 %v5402_v7 }
0x100e   :  { %4998 = vmatprep.subr.bf16.mxu0 %v5714_v60 }
0x1011   :  { %4999 = vmatpush3.bf16.msra.mxu0 %v5403_v8 }
0x10c1   :  { %v2051_v10 = vpop.f32.mrb[40].mxu1 }
0x10c2   :  { %v2052_v12 = vadd.f32 %v4490_v9, %v2051_v10  ;;  %v4974_v13 = vpop.f32.mrb[41].mxu1 }
0x10c3   :  { %v2054_v14 = vpop.f32.mrb[42].mxu1 }
0x10c4   :  { %v2074_v20 = vmul.f32 %v2052_v12, %v2052_v12  ;;  %v2055_v21 = vadd.f32 %v4490_v9, %v2054_v14  ;;  %v4975_v26 = vpop.f32.mrb[43].mxu1 }
0x10c6   :  { %v2080_v27 = vmul.f32 %v2074_v20, %v2052_v12  ;;  %v2075_v28 = vmul.f32 %v2055_v21, %v2055_v21 }
0x10c8   :  { %v2086_v29 = vmul.f32 0.044715, %v2080_v27  ;;  %v2081_v33 = vmul.f32 %v2075_v28, %v2055_v21 }
0x10ca   :  { %v2092_v43 = vadd.f32 %v2086_v29, %v2052_v12  ;;  %v2087_v47 = vmul.f32 0.044715, %v2081_v33 }
0x10cb   :  { %v2059_v16 = vpop.f32.mrb[44].mxu1 }
0x10cc   :  { %v2098_v37 = vmul.f32 0.7978846, %v2092_v43  ;;  %v2093_v42 = vadd.f32 %v2087_v47, %v2055_v21  ;;  %v2060_v45 = vadd.f32 %v4490_v9, %v2059_v16  ;;  %v4978_v30 = vpop.f32.mrb[45].mxu1 }
0x10cd   :  { %v2062_v34 = vpop.f32.mrb[46].mxu1 }
0x10ce   :  { %5540 = vtanh.f32 %v2098_v37  ;;  %v2099_v35 = vmul.f32 0.7978846, %v2093_v42  ;;  %v2076_v46 = vmul.f32 %v2060_v45, %v2060_v45  ;;  %v2063_v52 = vadd.f32 %v4490_v9, %v2062_v34  ;;  %v4979_v57 = vpop.f32.mrb[47].mxu1 }
0x10d0   :  { %5542 = vtanh.f32 %v2099_v35  ;;  %v2082_v1 = vmul.f32 %v2076_v46, %v2060_v45  ;;  %v2077_v44 = vmul.f32 %v2063_v52, %v2063_v52 }
0x10d2   :  { %v2088_v19 = vmul.f32 0.044715, %v2082_v1  ;;  %v2083_v41 = vmul.f32 %v2077_v44, %v2063_v52 }
0x10d3   :  { %v2067_v39 = vpop.f32.mrb[48].mxu1 }
0x10d4   :  { %v2094_v22 = vadd.f32 %v2088_v19, %v2060_v45  ;;  %v2089_v51 = vmul.f32 0.044715, %v2083_v41  ;;  %v2068_v23 = vadd.f32 %v4490_v9, %v2067_v39  ;;  %v4982_v24 = vpop.f32.mrb[49].mxu1 }
0x10d5   :  { %v2070_v17 = vpop.f32.mrb[50].mxu1 }
0x10d6   :  { %v2100_v18 = vmul.f32 0.7978846, %v2094_v22  ;;  %v2095_v31 = vadd.f32 %v2089_v51, %v2063_v52  ;;  %v2078_v32 = vmul.f32 %v2068_v23, %v2068_v23  ;;  %v2071_v50 = vadd.f32 %v4490_v9, %v2070_v17  ;;  %v4983_v25 = vpop.f32.mrb[51].mxu1 }
0x10d8   :  { %v5541_v38 = vpop.eup %5540  ;;  %5544 = vtanh.f32 %v2100_v18  ;;  %v2101_v55 = vmul.f32 0.7978846, %v2095_v31  ;;  %v2084_v56 = vmul.f32 %v2078_v32, %v2068_v23  ;;  %v2079_v59 = vmul.f32 %v2071_v50, %v2071_v50 }
0x10d9   :  { %v2110_v62 = vadd.f32 1.0, %v5541_v38 }
0x10da   :  { %v5543_v54 = vpop.eup %5542  ;;  %5546 = vtanh.f32 %v2101_v55  ;;  %v2090_v61 = vmul.f32 0.044715, %v2084_v56  ;;  %v2085_v63 = vmul.f32 %v2079_v59, %v2071_v50 }
0x10db   :  { %v2116_v0 = vmul.f32 0.5, %v2110_v62  ;;  %v2111_v58 = vadd.f32 1.0, %v5543_v54 }
0x10dc   :  { %v2096_v2 = vadd.f32 %v2090_v61, %v2068_v23  ;;  %v2091_v3 = vmul.f32 0.044715, %v2085_v63 }
0x10dd   :  { %v2117_v5 = vmul.f32 0.5, %v2111_v58  ;;  %v2122_v6 = vmul.f32 %v2116_v0, %v2052_v12 }
0x10de   :  { %v2102_v49 = vmul.f32 0.7978846, %v2096_v2  ;;  %v2097_v53 = vadd.f32 %v2091_v3, %v2071_v50 }
0x10df   :  { %v2123_v7 = vmul.f32 %v2117_v5, %v2055_v21 }
0x10e0   :  { %5548 = vtanh.f32 %v2102_v49  ;;  %v2103_v8 = vmul.f32 0.7978846, %v2097_v53 }
0x10e1   :  { %v2128_v9 = vpack.c.bf16 %v2123_v7, %v2122_v6 }
0x10e2   :  { %v5545_v10 = vpop.eup %5544  ;;  %5550 = vtanh.f32 %v2103_v8 }
0x10e3   :  { %5001 = vmatmul.mubr.bf16.vlgmr.msra.gmra.mrb[52].mxu0 %v2128_v9  ;;  %v2112_v13 = vadd.f32 1.0, %v5545_v10 }
0x10e4   :  { %v5547_v14 = vpop.eup %5546  ;;  %5004 = vmatprep.mubr.msk.bf16.mxu0 %vm5715_vm2, %v5714_v60 }
0x10e5   :  { %v2113_v20 = vadd.f32 1.0, %v5547_v14  ;;  %v2118_v26 = vmul.f32 0.5, %v2112_v13 }
0x10e7   :  { %v2119_v27 = vmul.f32 0.5, %v2113_v20  ;;  %v2124_v28 = vmul.f32 %v2118_v26, %v2060_v45  ;;  %v4496_v45 = vld [vmem:[%s6995_s12] ss:$0 sm:$0xff] }
0x10e9   :  { %v2125_v29 = vmul.f32 %v2119_v27, %v2063_v52 }
0x10ea   :  { %v5549_v33 = vpop.eup %5548 }
0x10eb   :  { %v2129_v43 = vpack.c.bf16 %v2125_v29, %v2124_v28  ;;  %v2114_v12 = vadd.f32 1.0, %v5549_v33 }
0x10ec   :  { %v5551_v21 = vpop.eup %5550 }
0x10ed   :  { %5005 = vmatmul.mubr.bf16.gmra.mrb[56].mxu0 %v2129_v43  ;;  %v2115_v47 = vadd.f32 1.0, %v5551_v21  ;;  %v2120_v16 = vmul.f32 0.5, %v2114_v12 }
0x10ee   :  { %5008 = vmatprep.mubr.msk.bf16.mxu0 %vm5715_vm2, %v5714_v60 }
0x10ef   :  { %v2121_v37 = vmul.f32 0.5, %v2115_v47  ;;  %v2126_v42 = vmul.f32 %v2120_v16, %v2068_v23 }
0x10f1   :  { %v2127_v30 = vmul.f32 %v2121_v37, %v2071_v50 }
0x10f3   :  { %v2130_v34 = vpack.c.bf16 %v2127_v30, %v2126_v42  ;;  %v5404_v30 = vld [vmem:[%s6988_s5 + $0x10] sm:$0xff]  }
0x10f4   :  { %5013 = vmatpush3.bf16.msra.mxu1 %v5404_v30 }
0x10f5   :  { %5009 = vmatmul.mubr.bf16.gmra.mrb[60].mxu0 %v2130_v34  ;;  %5014 = vmatprep.subr.bf16.mxu1 %v5714_v60  ;;  %v5405_v34 = vld [vmem:[%s6988_s5 + $0x18] sm:$0xff]  }
0x10f8   :  { %5015 = vmatpush3.bf16.msra.mxu1 %v5405_v34 }
0x11b6   :  { %v2236_v35 = vpop.f32.mrb[52].mxu0 }
0x11b7   :  { %v2237_v46 = vadd.f32 %v4496_v45, %v2236_v35  ;;  %v5002_v52 = vpop.f32.mrb[53].mxu0 }
0x11b8   :  { %v2239_v57 = vpop.f32.mrb[54].mxu0 }
0x11b9   :  { %v6409_v1 = vadd.f32 %v2237_v46, %v6293_v11  ;;  %v2240_v44 = vadd.f32 %v4496_v45, %v2239_v57  ;;  %v5003_v19 = vpop.f32.mrb[55].mxu0 }
0x11bb   :  { %v6412_v41 = vadd.f32 %v2240_v44, %v6295_v15  ;;  %v2270_v39 = vsel %vm152_vm1, %v6409_v1, 0.0 }
0x11bc   :  { %2271 = vadd.xlane.f32.xlu1 %v2270_v39 }
0x11bd   :  { %v2273_v22 = vsel %vm152_vm1, %v6412_v41, 0.0 }
0x11be   :  { %2274 = vadd.xlane.f32.xlu0 %v2273_v22 }
0x11c0   :  { %v2244_v51 = vpop.f32.mrb[56].mxu0 }
0x11c1   :  { %v2245_v23 = vadd.f32 %v4496_v45, %v2244_v51  ;;  %v5006_v24 = vpop.f32.mrb[57].mxu0 }
0x11c2   :  { %v2247_v17 = vpop.f32.mrb[58].mxu0 }
0x11c3   :  { %v6419_v11 = vadd.f32 %v2245_v23, %v6301_v36  ;;  %v2248_v18 = vadd.f32 %v4496_v45, %v2247_v17  ;;  %v5007_v31 = vpop.f32.mrb[59].mxu0  ;;  %v4509_v17 = vld [vmem:[%s6987_s4 + $0x4] ss:$0 sm:$0xff] }
0x11c5   :  { %v6422_v15 = vadd.f32 %v2248_v18, %v6303_v40  ;;  %v2276_v32 = vsel %vm152_vm1, %v6419_v11, 0.0 }
0x11c6   :  { %2277 = vadd.xlane.f32.xlu1 %v2276_v32 }
0x11c7   :  { %v2279_v50 = vsel %vm152_vm1, %v6422_v15, 0.0 }
0x11c8   :  { %2280 = vadd.xlane.f32.xlu0 %v2279_v50  ;;  %v2252_v25 = vpop.f32.mrb[60].mxu0 }
0x11c9   :  { %v2253_v38 = vadd.f32 %v4496_v45, %v2252_v25  ;;  %v5010_v55 = vpop.f32.mrb[61].mxu0 }
0x11ca   :  { %v2255_v56 = vpop.f32.mrb[62].mxu0  ;;  %v4510_v55 = vld [vmem:[%s6987_s4 + $0x5] ss:$0 sm:$0xff] }
0x11cb   :  { %v6429_v36 = vadd.f32 %v2253_v38, %v6309_v48  ;;  %v2256_v59 = vadd.f32 %v4496_v45, %v2255_v56  ;;  %v5011_v62 = vpop.f32.mrb[63].mxu0 }
0x11cd   :  { %v6432_v40 = vadd.f32 %v2256_v59, %v6311_v4  ;;  %v2282_v54 = vsel %vm152_vm1, %v6429_v36, 0.0 }
0x11ce   :  { %2283 = vadd.xlane.f32.xlu1 %v2282_v54 }
0x11cf   :  { %v2285_v61 = vsel %vm152_vm1, %v6432_v40, 0.0 }
0x11d0   :  { %2286 = vadd.xlane.f32.xlu0 %v2285_v61 }
0x1249   :  { %v2272_v63 = vpop.xlane.xlu1 %2271 }
0x124a   :  { %v2288_v0 = vmul.f32 0.03125, %v2272_v63 }
0x124b   :  { %v2275_v58 = vpop.xlane.xlu0 %2274 }
0x124c   :  { %v2294_v2 = vsub.f32 %v6409_v1, %v2288_v0  ;;  %v2289_v48 = vmul.f32 0.03125, %v2275_v58 }
0x124e   :  { %v2295_v3 = vsub.f32 %v6412_v41, %v2289_v48  ;;  %v2300_v5 = vmul.f32 %v2294_v2, %v2294_v2 }
0x1250   :  { %v2306_v4 = vsel %vm152_vm1, %v2300_v5, 0.0  ;;  %v2301_v49 = vmul.f32 %v2295_v3, %v2295_v3 }
0x1251   :  { %2307 = vadd.xlane.f32.xlu1 %v2306_v4 }
0x1252   :  { %v2309_v53 = vsel %vm152_vm1, %v2301_v49, 0.0 }
0x1253   :  { %v2278_v6 = vpop.xlane.xlu1 %2277  ;;  %2310 = vadd.xlane.f32.xlu0 %v2309_v53 }
0x1254   :  { %v2290_v7 = vmul.f32 0.03125, %v2278_v6 }
0x1255   :  { %v2281_v8 = vpop.xlane.xlu0 %2280 }
0x1256   :  { %v6443_v9 = vsub.f32 %v6419_v11, %v2290_v7  ;;  %v2291_v10 = vmul.f32 0.03125, %v2281_v8 }
0x1258   :  { %v6446_v13 = vsub.f32 %v6422_v15, %v2291_v10  ;;  %v2302_v14 = vmul.f32 %v6443_v9, %v6443_v9 }
0x125a   :  { %v2312_v20 = vsel %vm152_vm1, %v2302_v14, 0.0  ;;  %v2303_v26 = vmul.f32 %v6446_v13, %v6446_v13 }
0x125b   :  { %2313 = vadd.xlane.f32.xlu1 %v2312_v20  ;;  %v2284_v27 = vpop.xlane.xlu1 %2283 }
0x125c   :  { %v2292_v28 = vmul.f32 0.03125, %v2284_v27  ;;  %v2315_v29 = vsel %vm152_vm1, %v2303_v26, 0.0 }
0x125d   :  { %2316 = vadd.xlane.f32.xlu0 %v2315_v29  ;;  %v2287_v33 = vpop.xlane.xlu0 %2286 }
0x125e   :  { %v2298_v43 = vsub.f32 %v6429_v36, %v2292_v28  ;;  %v2293_v12 = vmul.f32 0.03125, %v2287_v33 }
0x1260   :  { %v2299_v21 = vsub.f32 %v6432_v40, %v2293_v12  ;;  %v2304_v47 = vmul.f32 %v2298_v43, %v2298_v43 }
0x1262   :  { %v2318_v16 = vsel %vm152_vm1, %v2304_v47, 0.0  ;;  %v2305_v37 = vmul.f32 %v2299_v21, %v2299_v21 }
0x1263   :  { %2319 = vadd.xlane.f32.xlu1 %v2318_v16 }
0x1264   :  { %v2321_v42 = vsel %vm152_vm1, %v2305_v37, 0.0 }
0x1265   :  { %2322 = vadd.xlane.f32.xlu0 %v2321_v42 }
0x12de   :  { %v2308_v45 = vpop.xlane.xlu1 %2307 }
0x12df   :  { %v2324_v35 = vmul.f32 0.03125, %v2308_v45 }
0x12e0   :  { %v2311_v46 = vpop.xlane.xlu0 %2310 }
0x12e1   :  { %v2330_v52 = vadd.f32 1e-05, %v2324_v35  ;;  %v2325_v57 = vmul.f32 0.03125, %v2311_v46 }
0x12e3   :  { %5552 = vrsqrt.f32 %v2330_v52  ;;  %v2331_v44 = vadd.f32 1e-05, %v2325_v57 }
0x12e5   :  { %5554 = vrsqrt.f32 %v2331_v44 }
0x12e8   :  { %v2314_v19 = vpop.xlane.xlu1 %2313 }
0x12e9   :  { %v2326_v39 = vmul.f32 0.03125, %v2314_v19 }
0x12ea   :  { %v2317_v22 = vpop.xlane.xlu0 %2316 }
0x12eb   :  { %v2332_v51 = vadd.f32 1e-05, %v2326_v39  ;;  %v2327_v23 = vmul.f32 0.03125, %v2317_v22 }
0x12ed   :  { %v5553_v24 = vpop.eup %5552  ;;  %5556 = vrsqrt.f32 %v2332_v51  ;;  %v2333_v18 = vadd.f32 1e-05, %v2327_v23 }
0x12ee   :  { %v2342_v31 = vmul.f32 %v5553_v24, %v2294_v2 }
0x12ef   :  { %v5555_v32 = vpop.eup %5554  ;;  %5558 = vrsqrt.f32 %v2333_v18 }
0x12f0   :  { %v2352_v50 = vmul.f32 %v4509_v17, %v2342_v31  ;;  %v2343_v25 = vmul.f32 %v5555_v32, %v2295_v3  ;;  %v2320_v38 = vpop.xlane.xlu1 %2319 }
0x12f1   :  { %v2328_v56 = vmul.f32 0.03125, %v2320_v38 }
0x12f2   :  { %v2353_v59 = vmul.f32 %v4509_v17, %v2343_v25  ;;  %v2323_v62 = vpop.xlane.xlu0 %2322  ;;  %v2362_v63 = vadd.f32 %v4510_v55, %v2352_v50 }
0x12f3   :  { %v2334_v54 = vadd.f32 1e-05, %v2328_v56  ;;  %v2329_v61 = vmul.f32 0.03125, %v2323_v62 }
0x12f4   :  { %v2363_v0 = vadd.f32 %v4510_v55, %v2353_v59 }
0x12f5   :  { %5560 = vrsqrt.f32 %v2334_v54  ;;  %v2335_v58 = vadd.f32 1e-05, %v2329_v61 }
0x12f6   :  { %v2368_v48 = vpack.c.bf16 %v2363_v0, %v2362_v63 }
0x12f7   :  { %v5557_v2 = vpop.eup %5556  ;;  %5562 = vrsqrt.f32 %v2335_v58 }
0x12f8   :  { %5017 = vmatmul.mubr.msk.bf16.vlgmr.msra.gmra.mrb[52].mxu1 %vm152_vm1, %v2368_v48  ;;  %v2344_v3 = vmul.f32 %v5557_v2, %v6443_v9 }
0x12f9   :  { %v5559_v5 = vpop.eup %5558  ;;  %5020 = vmatprep.mubr.msk.bf16.mxu1 %vm5715_vm2, %v5714_v60 }
0x12fa   :  { %v2345_v4 = vmul.f32 %v5559_v5, %v6446_v13  ;;  %v2354_v49 = vmul.f32 %v4509_v17, %v2344_v3  ;;  %v4516_v13 = vld [vmem:[%s6992_s9 + $0x1] ss:$0 sm:$0xff]  ;;  %s7002_s9 = smov 8  }
0x12fc   :  { %v2355_v53 = vmul.f32 %v4509_v17, %v2345_v4  ;;  %v2364_v6 = vadd.f32 %v4510_v55, %v2354_v49 }
0x12fe   :  { %v2365_v7 = vadd.f32 %v4510_v55, %v2355_v53 }
0x12ff   :  { %v5561_v8 = vpop.eup %5560 }
0x1300   :  { %v2369_v10 = vpack.c.bf16 %v2365_v7, %v2364_v6  ;;  %v2346_v14 = vmul.f32 %v5561_v8, %v2298_v43 }
0x1301   :  { %v5563_v20 = vpop.eup %5562 }
0x1302   :  { %5021 = vmatmul.mubr.msk.bf16.gmra.mrb[56].mxu1 %vm152_vm1, %v2369_v10  ;;  %v2347_v26 = vmul.f32 %v5563_v20, %v2299_v21  ;;  %v2356_v27 = vmul.f32 %v4509_v17, %v2346_v14 }
0x1303   :  { %5024 = vmatprep.mubr.msk.bf16.mxu1 %vm5715_vm2, %v5714_v60 }
0x1304   :  { %v2357_v9 = vmul.f32 %v4509_v17, %v2347_v26  ;;  %v2366_v28 = vadd.f32 %v4510_v55, %v2356_v27 }
0x1306   :  { %v2367_v29 = vadd.f32 %v4510_v55, %v2357_v9 }
0x1308   :  { %v2370_v33 = vpack.c.bf16 %v2367_v29, %v2366_v28 }
0x130a   :  { %5025 = vmatmul.mubr.msk.bf16.gmra.mrb[60].mxu1 %vm152_vm1, %v2370_v33 }
0x13cb   :  { %v2439_v12 = vpop.f32.mrb[52].mxu1 }
0x13cc   :  { %v5018_v43 = vpop.f32.mrb[53].mxu1  ;;  %v2440_v16 = vadd.f32 %v4516_v13, %v2439_v12 }
0x13cd   :  { %v2442_v47 = vpop.f32.mrb[54].mxu1 }
0x13ce   :  { %v2443_v37 = vadd.f32 %v4516_v13, %v2442_v47  ;;  %v5019_v21 = vpop.f32.mrb[55].mxu1 }
0x13d0   :  { %v6483_v42 = vpack.c.bf16 %v2443_v37, %v2440_v16 }
0x13d2   :  { %2468 = vrot.lane.b32.xlu1 %v6483_v42, %s5716_s21  ;;  %5032 = vmatprep.mubr.msk.bf16.mxu1 %vm376_vm3, %v6483_v42 }
0x13d5   :  { %v2447_v30 = vpop.f32.mrb[56].mxu1 }
0x13d6   :  { %v2448_v34 = vadd.f32 %v4516_v13, %v2447_v30  ;;  %v5022_v45 = vpop.f32.mrb[57].mxu1 }
0x13d7   :  { %v2450_v35 = vpop.f32.mrb[58].mxu1 }
0x13d8   :  { %v6489_v46 = vpack.c.bf16 %v2448_v34, %v2448_v34  ;;  %v5023_v52 = vpop.f32.mrb[59].mxu1  ;;  %v2451_v44 = vadd.f32 %v4516_v13, %v2450_v35 }
0x13da   :  { %2470 = vrot.lane.b32.xlu0 %v6489_v46, %s5716_s21 }
0x13dd   :  { %v2455_v57 = vpop.f32.mrb[60].mxu1 }
0x13de   :  { %v2456_v19 = vadd.f32 %v4516_v13, %v2455_v57  ;;  %v5026_v39 = vpop.f32.mrb[61].mxu1 }
0x13df   :  { %v2458_v22 = vpop.f32.mrb[62].mxu1 }
0x13e0   :  { %v6493_v51 = vpack.c.bf16 %v2456_v19, %v2451_v44  ;;  %v2459_v23 = vadd.f32 %v4516_v13, %v2458_v22  ;;  %v5027_v24 = vpop.f32.mrb[63].mxu1 }
0x13e2   :  { %2534 = vrot.lane.b32.xlu1 %v6493_v51, %s5716_s21  ;;  %5040 = vmatprep.mubr.msk.bf16.mxu0 %vm376_vm3, %v6493_v51  ;;  %v6499_v17 = vpack.c.bf16 %v2459_v23, %v2459_v23 }
0x13e6   :  { %2536 = vrot.lane.b32.xlu1 %v6499_v17, %s5716_s21 }
0x1444   :  { %v2469_v18 = vpop.permute.xlu1 %2468 }
0x1445   :  { %5252 = vmatprep.subr.msk.bf16.mxu1 %vm376_vm3, %v2469_v18  ;;  %v2479_v31 = vsel %vm376_vm3, %v2469_v18, 0 }
0x1446   :  { %5029 = vmatpush3.bf16.xpose.msra.mxu1 %v2479_v31 }
0x144c   :  { %v2471_v32 = vpop.permute.xlu0 %2470 }
0x144d   :  { %5253 = vmatprep.subr.msk.bf16.mxu1 %vm376_vm3, %v2471_v32  ;;  %v2482_v50 = vsel %vm376_vm3, %v2471_v32, 0 }
0x144e   :  { %5031 = vmatpush3.bf16.xpose.msra.mxu1 %v2482_v50 }
0x1454   :  { %v2535_v25 = vpop.permute.xlu1 %2534 }
0x1455   :  { %5033 = vmatmul.mubr.msk.bf16.vlgmr.msra.gmra.mrb[64].mxu1 %vm376_vm3, %v6489_v46  ;;  %5254 = vmatprep.subr.msk.bf16.mxu0 %vm376_vm3, %v2535_v25  ;;  %v2545_v38 = vsel %vm376_vm3, %v2535_v25, 0 }
0x1456   :  { %5037 = vmatpush3.bf16.xpose.msra.mxu0 %v2545_v38 }
0x1458   :  { %v2537_v55 = vpop.permute.xlu1 %2536 }
0x1459   :  { %5255 = vmatprep.subr.msk.bf16.mxu0 %vm376_vm3, %v2537_v55  ;;  %v2548_v56 = vsel %vm376_vm3, %v2537_v55, 0 }
0x145e   :  { %5039 = vmatpush3.bf16.xpose.msra.mxu0 %v2548_v56 }
0x1465   :  { %5041 = vmatmul.mubr.msk.bf16.vlgmr.msra.gmra.mrb[64].mxu0 %vm376_vm3, %v6499_v17 }
0x1528   :  { %v5034_v59 = vpop.f32.mrb[64].mxu1 }
0x1529   :  { %v2518_v62 = vpop.f32.mrb[65].mxu1  ;;  %v2604_v58 = vsel %vm503_vm4, %v5034_v59, -inf }
0x152a   :  { %v5035_v54 = vpop.f32.mrb[66].mxu1  ;;  %v2598_v61 = vsel %vm503_vm4, %v2518_v62, -inf }
0x152b   :  { %2599 = vmax.xlane.f32.xlu1 %v2598_v61  ;;  %v2521_v63 = vpop.f32.mrb[67].mxu1 }
0x152c   :  { %v2601_v0 = vsel %vm503_vm4, %v2521_v63, -inf }
0x152d   :  { %2602 = vmax.xlane.f32.xlu0 %v2601_v0 }
0x1531   :  { %2605 = vmax.xlane.f32.xlu0 %v2604_v58 }
0x1538   :  { %v5042_v48 = vpop.f32.mrb[64].mxu0 }
0x1539   :  { %v2584_v2 = vpop.f32.mrb[65].mxu0  ;;  %v2613_v49 = vsel %vm503_vm4, %v5042_v48, -inf }
0x153a   :  { %v5043_v3 = vpop.f32.mrb[66].mxu0  ;;  %v2607_v5 = vsel %vm503_vm4, %v2584_v2, -inf }
0x153b   :  { %2608 = vmax.xlane.f32.xlu0 %v2607_v5  ;;  %v2587_v4 = vpop.f32.mrb[67].mxu0 }
0x153c   :  { %2668 = vrot.lane.b32.xlu1 %v6483_v42, %s5717_s22  ;;  %v2610_v53 = vsel %vm503_vm4, %v2587_v4, -inf }
0x153f   :  { %2614 = vmax.xlane.f32.xlu0 %v2613_v49 }
0x1540   :  { %2730 = vrot.lane.b32.xlu1 %v6493_v51, %s5717_s22 }
0x1544   :  { %2796 = vrot.lane.b32.xlu1 %v6483_v42, %s5718_s23 }
0x1555   :  { %2670 = vrot.lane.b32.xlu0 %v6489_v46, %s5717_s22 }
0x1568   :  { %2611 = vmax.xlane.f32.xlu1 %v2610_v53 }
0x1579   :  { %2732 = vrot.lane.b32.xlu1 %v6499_v17, %s5717_s22 }
0x15b8   :  { %v2600_v6 = vpop.xlane.xlu1 %2599 }
0x15b9   :  { %v2616_v14 = vsub.f32 %v2518_v62, %v2600_v6 }
0x15ba   :  { %v2603_v7 = vpop.xlane.xlu0 %2602 }
0x15bb   :  { %v2617_v8 = vsub.f32 %v2521_v63, %v2603_v7  ;;  %v2622_v28 = vmul.f32 1.442695, %v2616_v14 }
0x15bc   :  { %v2669_v10 = vpop.permute.xlu1 %2668 }
0x15bd   :  { %v2624_v20 = vmul.f32 1.442695, %v2617_v8  ;;  %5044 = vmatprep.subr.bf16.mxu1 %v2669_v10 }
0x15be   :  { %5045 = vmatpush3.bf16.msra.mxu1 %v2669_v10  ;;  %v2606_v26 = vpop.xlane.xlu0 %2605 }
0x15bf   :  { %5564 = vpow2.f32 %v2624_v20  ;;  %v2618_v27 = vsub.f32 %v5034_v59, %v2606_v26 }
0x15c0   :  { %v2731_v9 = vpop.permute.xlu1 %2730 }
0x15c1   :  { %v2626_v29 = vmul.f32 1.442695, %v2618_v27  ;;  %5052 = vmatprep.subr.bf16.mxu0 %v2731_v9 }
0x15c2   :  { %5053 = vmatpush3.bf16.msra.mxu0 %v2731_v9 }
0x15c3   :  { %5566 = vpow2.f32 %v2626_v29 }
0x15c4   :  { %5568 = vpow2.f32 %v2622_v28  ;;  %v2797_v57 = vpop.permute.xlu1 %2796 }
0x15c5   :  { %v2807_v49 = vsel %vm376_vm3, %v2797_v57, 0 }
0x15c8   :  { %v2609_v33 = vpop.xlane.xlu0 %2608 }
0x15c9   :  { %v5565_v13 = vpop.eup %5564  ;;  %v2619_v43 = vsub.f32 %v2584_v2, %v2609_v33 }
0x15ca   :  { %v2637_v12 = vsel %vm503_vm4, %v5565_v13, 0.0 }
0x15cb   :  { %2638 = vadd.xlane.f32.xlu0 %v2637_v12  ;;  %v2628_v34 = vmul.f32 1.442695, %v2619_v43 }
0x15cc   :  { %v2615_v47 = vpop.xlane.xlu0 %2614 }
0x15cd   :  { %v5567_v16 = vpop.eup %5566  ;;  %v2621_v37 = vsub.f32 %v5042_v48, %v2615_v47 }
0x15ce   :  { %v2640_v21 = vsel %vm503_vm4, %v5567_v16, 0.0  ;;  %v5569_v30 = vpop.eup %5568 }
0x15cf   :  { %v2632_v45 = vmul.f32 1.442695, %v2621_v37  ;;  %2641 = vadd.xlane.f32.xlu1 %v2640_v21  ;;  %v2634_v44 = vsel %vm503_vm4, %v5569_v30, 0.0 }
0x15d0   :  { %v2671_v35 = vpop.permute.xlu0 %2670 }
0x15d1   :  { %5570 = vpow2.f32 %v2632_v45  ;;  %5256 = vmatprep.subr.msk.bf16.mxu1 %vm585_vm5, %v2671_v35  ;;  %v2680_v52 = vsel %vm585_vm5, %v2671_v35, 0 }
0x15d2   :  { %5047 = vmatpush3.bf16.msra.mxu1 %v2680_v52  ;;  %5572 = vpow2.f32 %v2628_v34 }
0x15d3   :  { %5258 = vmatprep.subr.msk.bf16.mxu1 %vm376_vm3, %v2797_v57  ;;  %2635 = vadd.xlane.f32.xlu1 %v2634_v44 }
0x15db   :  { %v5571_v19 = vpop.eup %5570 }
0x15dc   :  { %v2649_v39 = vsel %vm503_vm4, %v5571_v19, 0.0  ;;  %v5573_v22 = vpop.eup %5572 }
0x15dd   :  { %2650 = vadd.xlane.f32.xlu0 %v2649_v39  ;;  %v2643_v23 = vsel %vm503_vm4, %v5573_v22, 0.0 }
0x15e1   :  { %2644 = vadd.xlane.f32.xlu0 %v2643_v23 }
0x15e4   :  { %2864 = vrot.lane.b32.xlu1 %v6493_v51, %s5718_s23 }
0x15f5   :  { %v2612_v24 = vpop.xlane.xlu1 %2611 }
0x15f6   :  { %v2620_v18 = vsub.f32 %v2587_v4, %v2612_v24 }
0x15f7   :  { %2798 = vrot.lane.b32.xlu0 %v6489_v46, %s5718_s23 }
0x15f8   :  { %v2630_v31 = vmul.f32 1.442695, %v2620_v18 }
0x15f9   :  { %v2733_v32 = vpop.permute.xlu1 %2732 }
0x15fa   :  { %5574 = vpow2.f32 %v2630_v31  ;;  %v2742_v50 = vsel %vm585_vm5, %v2733_v32, 0  ;;  %5257 = vmatprep.subr.msk.bf16.mxu0 %vm585_vm5, %v2733_v32 }
0x15fb   :  { %2792 = vrot.lane.b32.xlu0 %v6483_v42, %s5719_s24  ;;  %5055 = vmatpush3.bf16.msra.mxu0 %v2742_v50 }
0x15ff   :  { %2866 = vrot.lane.b32.xlu0 %v6499_v17, %s5718_s23 }
0x1603   :  { %2862 = vrot.lane.b32.xlu0 %v6499_v17, %s5719_s24 }
0x1604   :  { %v5575_v25 = vpop.eup %5574 }
0x1605   :  { %v2646_v38 = vsel %vm503_vm4, %v5575_v25, 0.0 }
0x1608   :  { %2647 = vadd.xlane.f32.xlu1 %v2646_v38 }
0x1619   :  { %2794 = vrot.lane.b32.xlu1 %v6489_v46, %s5719_s24 }
0x161d   :  { %2860 = vrot.lane.b32.xlu1 %v6493_v51, %s5719_s24 }
0x1658   :  { %v2639_v55 = vpop.xlane.xlu0 %2638 }
0x165c   :  { %v2642_v56 = vpop.xlane.xlu1 %2641 }
0x165d   :  { %5576 = vrcp.f32 %v2642_v56 }
0x165e   :  { %5578 = vrcp.f32 %v2639_v55 }
0x1660   :  { %v2636_v59 = vpop.xlane.xlu1 %2635 }
0x1661   :  { %5580 = vrcp.f32 %v2636_v59 }
0x1664   :  { %v2865_v62 = vpop.permute.xlu1 %2864 }
0x1665   :  { %5260 = vmatprep.subr.msk.bf16.mxu0 %vm376_vm3, %v2865_v62 }
0x1667   :  { %v5577_v54 = vpop.eup %5576 }
0x1668   :  { %v5579_v61 = vpop.eup %5578  ;;  %v2660_v58 = vmul.f32 %v5577_v54, %v5567_v16 }
0x1669   :  { %v2659_v2 = vmul.f32 %v5579_v61, %v5565_v13  ;;  %v2875_v13 = vsel %vm376_vm3, %v2865_v62, 0 }
0x166a   :  { %v2651_v63 = vpop.xlane.xlu0 %2650  ;;  %v2665_v4 = vpack.c.bf16 %v2660_v58, %v2660_v58 }
0x166b   :  { %v5581_v0 = vpop.eup %5580  ;;  %5582 = vrcp.f32 %v2651_v63 }
0x166c   :  { %v2658_v48 = vmul.f32 %v5581_v0, %v5569_v30 }
0x166e   :  { %v2645_v3 = vpop.xlane.xlu0 %2644  ;;  %v2664_v5 = vpack.c.bf16 %v2659_v2, %v2658_v48 }
0x166f   :  { %5584 = vrcp.f32 %v2645_v3 }
0x1670   :  { %5048 = vmatprep.mubr.msk.bf16.mxu1 %vm503_vm4, %v2664_v5 }
0x1671   :  { %5049 = vmatmul.mubr.msk.bf16.vlgmr.msra.gmra.mrb[68].mxu1 %vm503_vm4, %v2665_v4 }
0x1672   :  { %5061 = vmatpush3.bf16.xpose.msra.mxu1 %v2807_v49  ;;  %v2799_v53 = vpop.permute.xlu0 %2798 }
0x1673   :  { %5259 = vmatprep.subr.msk.bf16.mxu1 %vm376_vm3, %v2799_v53  ;;  %v2810_v7 = vsel %vm376_vm3, %v2799_v53, 0 }
0x1675   :  { %v5583_v14 = vpop.eup %5582 }
0x1676   :  { %v2793_v6 = vpop.permute.xlu0 %2792  ;;  %v2663_v27 = vmul.f32 %v5583_v14, %v5571_v19 }
0x1677   :  { %5064 = vmatprep.mubr.msk.bf16.mxu1 %vm376_vm3, %v2793_v6 }
0x1678   :  { %v2667_v33 = vpack.c.bf16 %v2663_v27, %v2663_v27 }
0x1679   :  { %v5585_v20 = vpop.eup %5584 }
0x167a   :  { %5063 = vmatpush3.bf16.xpose.msra.mxu1 %v2810_v7  ;;  %v2661_v9 = vmul.f32 %v5585_v20, %v5573_v22  ;;  %v2867_v43 = vpop.permute.xlu0 %2866 }
0x167b   :  { %v2878_v47 = vsel %vm376_vm3, %v2867_v43, 0 }
0x167e   :  { %v2863_v16 = vpop.permute.xlu0 %2862 }
0x1695   :  { %v2648_v8 = vpop.xlane.xlu1 %2647 }
0x1696   :  { %5586 = vrcp.f32 %v2648_v8 }
0x1699   :  { %v2795_v10 = vpop.permute.xlu1 %2794 }
0x169a   :  { %5065 = vmatmul.mubr.msk.bf16.vlgmr.msra.gmra.mrb[72].mxu1 %vm376_vm3, %v2795_v10 }
0x169d   :  { %v2861_v12 = vpop.permute.xlu1 %2860 }
0x16a0   :  { %v5587_v26 = vpop.eup %5586 }
0x16a1   :  { %v2662_v28 = vmul.f32 %v5587_v26, %v5575_v25 }
0x16a3   :  { %v2666_v29 = vpack.c.bf16 %v2662_v28, %v2661_v9 }
0x16a5   :  { %5056 = vmatprep.mubr.msk.bf16.mxu0 %vm503_vm4, %v2666_v29 }
0x16a6   :  { %5057 = vmatmul.mubr.msk.bf16.vlgmr.msra.gmra.mrb[68].mxu0 %vm503_vm4, %v2667_v33 }
0x16a7   :  { %5069 = vmatpush3.bf16.xpose.msra.mxu0 %v2875_v13  ;;  %5072 = vmatprep.mubr.msk.bf16.mxu0 %vm376_vm3, %v2861_v12 }
0x16a8   :  { %5261 = vmatprep.subr.msk.bf16.mxu0 %vm376_vm3, %v2867_v43 }
0x16af   :  { %5071 = vmatpush3.bf16.xpose.msra.mxu0 %v2878_v47 }
0x16b6   :  { %5073 = vmatmul.mubr.msk.bf16.vlgmr.msra.gmra.mrb[72].mxu0 %vm376_vm3, %v2863_v16 }
0x1744   :  { %v6571_v37 = vpop.f32.mrb[68].mxu1 }
0x1745   :  { %v6573_v21 = vpop.f32.mrb[69].mxu1 }
0x1746   :  { %v5051_v30 = vpop.f32.mrb[70].mxu1 }
0x1747   :  { %v6575_v34 = vpop.f32.mrb[71].mxu1 }
0x176d   :  { %v5066_v45 = vpop.f32.mrb[72].mxu1 }
0x176e   :  { %v2846_v35 = vpop.f32.mrb[73].mxu1  ;;  %v2934_v39 = vsel %vm503_vm4, %v5066_v45, -inf }
0x176f   :  { %v5067_v52 = vpop.f32.mrb[74].mxu1  ;;  %v2928_v57 = vsel %vm503_vm4, %v2846_v35, -inf }
0x1770   :  { %2929 = vmax.xlane.f32.xlu1 %v2928_v57  ;;  %v2849_v44 = vpop.f32.mrb[75].mxu1 }
0x1771   :  { %v2931_v19 = vsel %vm503_vm4, %v2849_v44, -inf }
0x1772   :  { %2932 = vmax.xlane.f32.xlu0 %v2931_v19 }
0x1776   :  { %2935 = vmax.xlane.f32.xlu0 %v2934_v39 }
0x1779   :  { %v6580_v22 = vpop.f32.mrb[68].mxu0 }
0x177a   :  { %v6582_v23 = vpop.f32.mrb[69].mxu0 }
0x177b   :  { %v5059_v24 = vpop.f32.mrb[70].mxu0 }
0x177c   :  { %v6584_v18 = vpop.f32.mrb[71].mxu0 }
0x1781   :  { %2998 = vrot.lane.b32.xlu1 %v6483_v42, %s5720_s25 }
0x1785   :  { %3060 = vrot.lane.b32.xlu1 %v6493_v51, %s5720_s25 }
0x1789   :  { %v5074_v31 = vpop.f32.mrb[72].mxu0  ;;  %3126 = vrot.lane.b32.xlu1 %v6483_v42, %s5721_s26 }
0x178a   :  { %v2914_v32 = vpop.f32.mrb[73].mxu0  ;;  %v2943_v55 = vsel %vm503_vm4, %v5074_v31, -inf }
0x178b   :  { %v5075_v50 = vpop.f32.mrb[74].mxu0  ;;  %v2937_v25 = vsel %vm503_vm4, %v2914_v32, -inf }
0x178c   :  { %2938 = vmax.xlane.f32.xlu0 %v2937_v25  ;;  %v2917_v38 = vpop.f32.mrb[75].mxu0 }
0x178d   :  { %v2940_v56 = vsel %vm503_vm4, %v2917_v38, -inf }
0x1790   :  { %2944 = vmax.xlane.f32.xlu0 %v2943_v55 }
0x17a6   :  { %3000 = vrot.lane.b32.xlu0 %v6489_v46, %s5720_s25 }
0x17ad   :  { %2941 = vmax.xlane.f32.xlu1 %v2940_v56 }
0x17be   :  { %3062 = vrot.lane.b32.xlu1 %v6499_v17, %s5720_s25  ;;  %s7003_s25 = smov 24  }
0x17fd   :  { %v2930_v59 = vpop.xlane.xlu1 %2929 }
0x17fe   :  { %v2946_v63 = vsub.f32 %v2846_v35, %v2930_v59 }
0x17ff   :  { %v2933_v62 = vpop.xlane.xlu0 %2932 }
0x1800   :  { %v2947_v54 = vsub.f32 %v2849_v44, %v2933_v62  ;;  %v2952_v3 = vmul.f32 1.442695, %v2946_v63 }
0x1801   :  { %v2999_v61 = vpop.permute.xlu1 %2998 }
0x1802   :  { %v2954_v0 = vmul.f32 1.442695, %v2947_v54  ;;  %5076 = vmatprep.subr.bf16.mxu1 %v2999_v61 }
0x1803   :  { %v2936_v58 = vpop.xlane.xlu0 %2935  ;;  %5077 = vmatpush3.bf16.msra.mxu1 %v2999_v61 }
0x1804   :  { %5588 = vpow2.f32 %v2954_v0  ;;  %v2948_v48 = vsub.f32 %v5066_v45, %v2936_v58 }
0x1805   :  { %v3061_v2 = vpop.permute.xlu1 %3060 }
0x1806   :  { %v2956_v5 = vmul.f32 1.442695, %v2948_v48  ;;  %5084 = vmatprep.subr.bf16.mxu0 %v3061_v2 }
0x1807   :  { %5085 = vmatpush3.bf16.msra.mxu0 %v3061_v2 }
0x1808   :  { %5590 = vpow2.f32 %v2956_v5 }
0x1809   :  { %5592 = vpow2.f32 %v2952_v3  ;;  %v3127_v33 = vpop.permute.xlu1 %3126 }
0x180a   :  { %v3137_v54 = vsel %vm376_vm3, %v3127_v33, 0 }
0x180e   :  { %v5589_v4 = vpop.eup %5588 }
0x180f   :  { %v2967_v49 = vsel %vm503_vm4, %v5589_v4, 0.0 }
0x1810   :  { %2968 = vadd.xlane.f32.xlu0 %v2967_v49 }
0x1812   :  { %v5591_v53 = vpop.eup %5590 }
0x1813   :  { %v2970_v6 = vsel %vm503_vm4, %v5591_v53, 0.0  ;;  %v5593_v7 = vpop.eup %5592 }
0x1814   :  { %2971 = vadd.xlane.f32.xlu1 %v2970_v6  ;;  %v2964_v8 = vsel %vm503_vm4, %v5593_v7, 0.0 }
0x1818   :  { %2965 = vadd.xlane.f32.xlu1 %v2964_v8 }
0x1819   :  { %v2939_v10 = vpop.xlane.xlu0 %2938 }
0x181a   :  { %v2949_v14 = vsub.f32 %v2914_v32, %v2939_v10 }
0x181c   :  { %v2958_v27 = vmul.f32 1.442695, %v2949_v14 }
0x181d   :  { %v2945_v20 = vpop.xlane.xlu0 %2944 }
0x181e   :  { %v2951_v26 = vsub.f32 %v5074_v31, %v2945_v20 }
0x1820   :  { %v2962_v9 = vmul.f32 1.442695, %v2951_v26 }
0x1821   :  { %v3001_v28 = vpop.permute.xlu0 %3000 }
0x1822   :  { %5594 = vpow2.f32 %v2962_v9  ;;  %v3010_v29 = vsel %vm585_vm5, %v3001_v28, 0  ;;  %5262 = vmatprep.subr.msk.bf16.mxu1 %vm585_vm5, %v3001_v28 }
0x1823   :  { %5079 = vmatpush3.bf16.msra.mxu1 %v3010_v29  ;;  %5596 = vpow2.f32 %v2958_v27 }
0x1824   :  { %5264 = vmatprep.subr.msk.bf16.mxu1 %vm376_vm3, %v3127_v33 }
0x1829   :  { %3194 = vrot.lane.b32.xlu1 %v6493_v51, %s5721_s26 }
0x182c   :  { %v5595_v13 = vpop.eup %5594 }
0x182d   :  { %v2979_v12 = vsel %vm503_vm4, %v5595_v13, 0.0  ;;  %v5597_v43 = vpop.eup %5596 }
0x182e   :  { %2980 = vadd.xlane.f32.xlu0 %v2979_v12  ;;  %v2973_v47 = vsel %vm503_vm4, %v5597_v43, 0.0 }
0x1832   :  { %2974 = vadd.xlane.f32.xlu0 %v2973_v47 }
0x183a   :  { %v2942_v16 = vpop.xlane.xlu1 %2941 }
0x183b   :  { %v2950_v30 = vsub.f32 %v2917_v38, %v2942_v16 }
0x183d   :  { %v2960_v45 = vmul.f32 1.442695, %v2950_v30 }
0x183e   :  { %v3063_v35 = vpop.permute.xlu1 %3062 }
0x183f   :  { %5598 = vpow2.f32 %v2960_v45  ;;  %v3072_v52 = vsel %vm585_vm5, %v3063_v35, 0  ;;  %5263 = vmatprep.subr.msk.bf16.mxu0 %vm585_vm5, %v3063_v35 }
0x1840   :  { %5087 = vmatpush3.bf16.msra.mxu0 %v3072_v52 }
0x1848   :  { %3128 = vrot.lane.b32.xlu0 %v6489_v46, %s5721_s26 }
0x1849   :  { %v5599_v57 = vpop.eup %5598 }
0x184a   :  { %v2976_v44 = vsel %vm503_vm4, %v5599_v57, 0.0 }
0x184c   :  { %3122 = vrot.lane.b32.xlu0 %v6483_v42, %s5722_s1 }
0x184d   :  { %2977 = vadd.xlane.f32.xlu1 %v2976_v44 }
0x1850   :  { %3196 = vrot.lane.b32.xlu0 %v6499_v17, %s5721_s26 }
0x1854   :  { %3192 = vrot.lane.b32.xlu0 %v6499_v17, %s5722_s1 }
0x185e   :  { %3124 = vrot.lane.b32.xlu1 %v6489_v46, %s5722_s1 }
0x1862   :  { %3190 = vrot.lane.b32.xlu1 %v6493_v51, %s5722_s1 }
0x189d   :  { %v2969_v19 = vpop.xlane.xlu0 %2968 }
0x18a1   :  { %v2972_v39 = vpop.xlane.xlu1 %2971 }
0x18a2   :  { %5600 = vrcp.f32 %v2972_v39 }
0x18a3   :  { %5602 = vrcp.f32 %v2969_v19 }
0x18a5   :  { %v2966_v24 = vpop.xlane.xlu1 %2965 }
0x18a6   :  { %5604 = vrcp.f32 %v2966_v24 }
0x18a9   :  { %v3195_v31 = vpop.permute.xlu1 %3194 }
0x18aa   :  { %5266 = vmatprep.subr.msk.bf16.mxu0 %vm376_vm3, %v3195_v31  ;;  %v3205_v14 = vsel %vm376_vm3, %v3195_v31, 0 }
0x18ac   :  { %v5601_v32 = vpop.eup %5600 }
0x18ad   :  { %v5603_v50 = vpop.eup %5602  ;;  %v2990_v38 = vmul.f32 %v5601_v32, %v5591_v53 }
0x18ae   :  { %v2989_v56 = vmul.f32 %v5603_v50, %v5589_v4 }
0x18af   :  { %v2995_v62 = vpack.c.bf16 %v2990_v38, %v2990_v38 }
0x18b0   :  { %v5605_v25 = vpop.eup %5604 }
0x18b1   :  { %v2988_v55 = vmul.f32 %v5605_v25, %v5593_v7 }
0x18b3   :  { %v2994_v59 = vpack.c.bf16 %v2989_v56, %v2988_v55 }
0x18b5   :  { %5080 = vmatprep.mubr.msk.bf16.mxu1 %vm503_vm4, %v2994_v59 }
0x18b6   :  { %5081 = vmatmul.mubr.msk.bf16.vlgmr.msra.gmra.mrb[76].mxu1 %vm503_vm4, %v2995_v62 }
0x18b7   :  { %5093 = vmatpush3.bf16.xpose.msra.mxu1 %v3137_v54 }
0x18bb   :  { %v2981_v61 = vpop.xlane.xlu0 %2980 }
0x18bc   :  { %5606 = vrcp.f32 %v2981_v61 }
0x18bf   :  { %v2975_v63 = vpop.xlane.xlu0 %2974 }
0x18c0   :  { %5608 = vrcp.f32 %v2975_v63 }
0x18c3   :  { %v3129_v0 = vpop.permute.xlu0 %3128 }
0x18c4   :  { %v3140_v58 = vsel %vm376_vm3, %v3129_v0, 0  ;;  %5265 = vmatprep.subr.msk.bf16.mxu1 %vm376_vm3, %v3129_v0 }
0x18c5   :  { %5095 = vmatpush3.bf16.xpose.msra.mxu1 %v3140_v58 }
0x18c6   :  { %v5607_v5 = vpop.eup %5606 }
0x18c7   :  { %v3123_v48 = vpop.permute.xlu0 %3122  ;;  %v2993_v53 = vmul.f32 %v5607_v5, %v5595_v13 }
0x18c8   :  { %5096 = vmatprep.mubr.msk.bf16.mxu1 %vm376_vm3, %v3123_v48 }
0x18c9   :  { %v2997_v10 = vpack.c.bf16 %v2993_v53, %v2993_v53 }
0x18ca   :  { %v5609_v4 = vpop.eup %5608 }
0x18cb   :  { %v2991_v6 = vmul.f32 %v5609_v4, %v5597_v43  ;;  %v3197_v26 = vpop.permute.xlu0 %3196 }
0x18cc   :  { %v3208_v27 = vsel %vm376_vm3, %v3197_v26, 0 }
0x18cf   :  { %v3193_v9 = vpop.permute.xlu0 %3192 }
0x18da   :  { %v2978_v2 = vpop.xlane.xlu1 %2977 }
0x18db   :  { %5610 = vrcp.f32 %v2978_v2 }
0x18de   :  { %v3125_v3 = vpop.permute.xlu1 %3124 }
0x18df   :  { %5097 = vmatmul.mubr.msk.bf16.vlgmr.msra.gmra.mrb[80].mxu1 %vm376_vm3, %v3125_v3 }
0x18e2   :  { %v3191_v20 = vpop.permute.xlu1 %3190 }
0x18e5   :  { %v5611_v49 = vpop.eup %5610 }
0x18e6   :  { %v2992_v7 = vmul.f32 %v5611_v49, %v5599_v57 }
0x18e8   :  { %v2996_v8 = vpack.c.bf16 %v2992_v7, %v2991_v6 }
0x18ea   :  { %5088 = vmatprep.mubr.msk.bf16.mxu0 %vm503_vm4, %v2996_v8 }
0x18eb   :  { %5089 = vmatmul.mubr.msk.bf16.vlgmr.msra.gmra.mrb[76].mxu0 %vm503_vm4, %v2997_v10 }
0x18ec   :  { %5101 = vmatpush3.bf16.xpose.msra.mxu0 %v3205_v14  ;;  %5104 = vmatprep.mubr.msk.bf16.mxu0 %vm376_vm3, %v3191_v20 }
0x18ed   :  { %5267 = vmatprep.subr.msk.bf16.mxu0 %vm376_vm3, %v3197_v26 }
0x18f4   :  { %5103 = vmatpush3.bf16.xpose.msra.mxu0 %v3208_v27 }
0x18fb   :  { %5105 = vmatmul.mubr.msk.bf16.vlgmr.msra.gmra.mrb[80].mxu0 %vm376_vm3, %v3193_v9 }
0x1989   :  { %v6639_v28 = vpop.f32.mrb[76].mxu1 }
0x198a   :  { %v6641_v29 = vpop.f32.mrb[77].mxu1 }
0x198b   :  { %v5083_v33 = vpop.f32.mrb[78].mxu1 }
0x198c   :  { %v6643_v13 = vpop.f32.mrb[79].mxu1 }
0x198d   :  { %v5339_v12 = vpack.i.bf16 %v6643_v13, %v6641_v29 }
0x19b2   :  { %v5098_v43 = vpop.f32.mrb[80].mxu1 }
0x19b3   :  { %v3176_v47 = vpop.f32.mrb[81].mxu1  ;;  %v3264_v52 = vsel %vm503_vm4, %v5098_v43, -inf }
0x19b4   :  { %v5099_v16 = vpop.f32.mrb[82].mxu1  ;;  %v3258_v30 = vsel %vm503_vm4, %v3176_v47, -inf }
0x19b5   :  { %3259 = vmax.xlane.f32.xlu1 %v3258_v30  ;;  %v3179_v45 = vpop.f32.mrb[83].mxu1 }
0x19b6   :  { %v3261_v35 = vsel %vm503_vm4, %v3179_v45, -inf }
0x19b7   :  { %3262 = vmax.xlane.f32.xlu0 %v3261_v35 }
0x19bb   :  { %3265 = vmax.xlane.f32.xlu0 %v3264_v52 }
0x19be   :  { %v6650_v57 = vpop.f32.mrb[76].mxu0 }
0x19bf   :  { %v6652_v44 = vpop.f32.mrb[77].mxu0 }
0x19c0   :  { %v5354_v19 = vpack.i.bf16 %v6652_v44, %v6639_v28  ;;  %v5091_v39 = vpop.f32.mrb[78].mxu0 }
0x19c1   :  { %v6656_v24 = vpop.f32.mrb[79].mxu0 }
0x19c2   :  { %v5369_v31 = vpack.i.bf16 %v6650_v57, %v6656_v24 }
0x19c6   :  { %3328 = vrot.lane.b32.xlu1 %v6483_v42, %s5723_s2 }
0x19ca   :  { %3390 = vrot.lane.b32.xlu1 %v6493_v51, %s5723_s2 }
0x19ce   :  { %v5106_v32 = vpop.f32.mrb[80].mxu0  ;;  %3456 = vrot.lane.b32.xlu1 %v6483_v42, %s5724_s27 }
0x19cf   :  { %v3244_v50 = vpop.f32.mrb[81].mxu0  ;;  %v3273_v56 = vsel %vm503_vm4, %v5106_v32, -inf }
0x19d0   :  { %v5107_v25 = vpop.f32.mrb[82].mxu0  ;;  %v3267_v38 = vsel %vm503_vm4, %v3244_v50, -inf }
0x19d1   :  { %3268 = vmax.xlane.f32.xlu0 %v3267_v38  ;;  %v3247_v55 = vpop.f32.mrb[83].mxu0 }
0x19d2   :  { %v3270_v59 = vsel %vm503_vm4, %v3247_v55, -inf }
0x19d5   :  { %3274 = vmax.xlane.f32.xlu0 %v3273_v56 }
0x19eb   :  { %3330 = vrot.lane.b32.xlu0 %v6489_v46, %s5723_s2 }
0x19f2   :  { %3271 = vmax.xlane.f32.xlu1 %v3270_v59 }
0x1a03   :  { %3392 = vrot.lane.b32.xlu1 %v6499_v17, %s5723_s2 }
0x1a42   :  { %v3260_v62 = vpop.xlane.xlu1 %3259 }
0x1a43   :  { %v3276_v0 = vsub.f32 %v3176_v47, %v3260_v62 }
0x1a44   :  { %v3263_v54 = vpop.xlane.xlu0 %3262 }
0x1a45   :  { %v3277_v61 = vsub.f32 %v3179_v45, %v3263_v54  ;;  %v3282_v5 = vmul.f32 1.442695, %v3276_v0 }
0x1a46   :  { %v3329_v63 = vpop.permute.xlu1 %3328 }
0x1a47   :  { %v3284_v58 = vmul.f32 1.442695, %v3277_v61  ;;  %5108 = vmatprep.subr.bf16.mxu1 %v3329_v63 }
0x1a48   :  { %v3266_v48 = vpop.xlane.xlu0 %3265  ;;  %5109 = vmatpush3.bf16.msra.mxu1 %v3329_v63 }
0x1a49   :  { %5612 = vpow2.f32 %v3284_v58  ;;  %v3278_v2 = vsub.f32 %v5098_v43, %v3266_v48 }
0x1a4a   :  { %v3391_v3 = vpop.permute.xlu1 %3390 }
0x1a4b   :  { %v3286_v4 = vmul.f32 1.442695, %v3278_v2  ;;  %5116 = vmatprep.subr.bf16.mxu0 %v3391_v3 }
0x1a4c   :  { %5117 = vmatpush3.bf16.msra.mxu0 %v3391_v3 }
0x1a4d   :  { %5614 = vpow2.f32 %v3286_v4 }
0x1a4e   :  { %5616 = vpow2.f32 %v3282_v5  ;;  %v3457_v16 = vpop.permute.xlu1 %3456 }
0x1a53   :  { %v5613_v49 = vpop.eup %5612 }
0x1a54   :  { %v3297_v53 = vsel %vm503_vm4, %v5613_v49, 0.0 }
0x1a55   :  { %3298 = vadd.xlane.f32.xlu0 %v3297_v53  ;;  %v3467_v53 = vsel %vm376_vm3, %v3457_v16, 0 }
0x1a57   :  { %v5615_v6 = vpop.eup %5614 }
0x1a58   :  { %v3300_v7 = vsel %vm503_vm4, %v5615_v6, 0.0  ;;  %v5617_v8 = vpop.eup %5616 }
0x1a59   :  { %3301 = vadd.xlane.f32.xlu1 %v3300_v7  ;;  %v3294_v10 = vsel %vm503_vm4, %v5617_v8, 0.0 }
0x1a5d   :  { %3295 = vadd.xlane.f32.xlu1 %v3294_v10 }
0x1a5e   :  { %v3269_v14 = vpop.xlane.xlu0 %3268 }
0x1a5f   :  { %v3279_v20 = vsub.f32 %v3244_v50, %v3269_v14 }
0x1a61   :  { %v3288_v9 = vmul.f32 1.442695, %v3279_v20 }
0x1a62   :  { %v3275_v26 = vpop.xlane.xlu0 %3274 }
0x1a63   :  { %v3281_v27 = vsub.f32 %v5106_v32, %v3275_v26 }
0x1a65   :  { %v3292_v33 = vmul.f32 1.442695, %v3281_v27 }
0x1a66   :  { %v3331_v43 = vpop.permute.xlu0 %3330 }
0x1a67   :  { %5618 = vpow2.f32 %v3292_v33  ;;  %v3340_v47 = vsel %vm585_vm5, %v3331_v43, 0  ;;  %5268 = vmatprep.subr.msk.bf16.mxu1 %vm585_vm5, %v3331_v43 }
0x1a68   :  { %5111 = vmatpush3.bf16.msra.mxu1 %v3340_v47  ;;  %5620 = vpow2.f32 %v3288_v9 }
0x1a69   :  { %5270 = vmatprep.subr.msk.bf16.mxu1 %vm376_vm3, %v3457_v16 }
0x1a6e   :  { %3524 = vrot.lane.b32.xlu1 %v6493_v51, %s5724_s27 }
0x1a71   :  { %v5619_v30 = vpop.eup %5618 }
0x1a72   :  { %v3309_v45 = vsel %vm503_vm4, %v5619_v30, 0.0  ;;  %v5621_v35 = vpop.eup %5620 }
0x1a73   :  { %3310 = vadd.xlane.f32.xlu0 %v3309_v45  ;;  %v3303_v52 = vsel %vm503_vm4, %v5621_v35, 0.0 }
0x1a77   :  { %3304 = vadd.xlane.f32.xlu0 %v3303_v52 }
0x1a7f   :  { %v3272_v39 = vpop.xlane.xlu1 %3271 }
0x1a80   :  { %v3280_v32 = vsub.f32 %v3247_v55, %v3272_v39 }
0x1a82   :  { %v3290_v50 = vmul.f32 1.442695, %v3280_v32 }
0x1a83   :  { %v3393_v25 = vpop.permute.xlu1 %3392 }
0x1a84   :  { %5622 = vpow2.f32 %v3290_v50  ;;  %v3402_v38 = vsel %vm585_vm5, %v3393_v25, 0  ;;  %5269 = vmatprep.subr.msk.bf16.mxu0 %vm585_vm5, %v3393_v25 }
0x1a85   :  { %5119 = vmatpush3.bf16.msra.mxu0 %v3402_v38 }
0x1a8d   :  { %3458 = vrot.lane.b32.xlu0 %v6489_v46, %s5724_s27 }
0x1a8e   :  { %v5623_v56 = vpop.eup %5622 }
0x1a8f   :  { %v3306_v59 = vsel %vm503_vm4, %v5623_v56, 0.0 }
0x1a91   :  { %3452 = vrot.lane.b32.xlu0 %v6483_v42, %s5725_s28 }
0x1a92   :  { %3307 = vadd.xlane.f32.xlu1 %v3306_v59 }
0x1a95   :  { %3526 = vrot.lane.b32.xlu0 %v6499_v17, %s5724_s27 }
0x1a99   :  { %3522 = vrot.lane.b32.xlu0 %v6499_v17, %s5725_s28 }
0x1aa3   :  { %3454 = vrot.lane.b32.xlu1 %v6489_v46, %s5725_s28 }
0x1aa7   :  { %3520 = vrot.lane.b32.xlu1 %v6493_v51, %s5725_s28 }
0x1ae2   :  { %v3299_v55 = vpop.xlane.xlu0 %3298 }
0x1ae6   :  { %v3302_v62 = vpop.xlane.xlu1 %3301 }
0x1ae7   :  { %5624 = vrcp.f32 %v3302_v62 }
0x1ae8   :  { %5626 = vrcp.f32 %v3299_v55 }
0x1aea   :  { %v3296_v54 = vpop.xlane.xlu1 %3295 }
0x1aeb   :  { %5628 = vrcp.f32 %v3296_v54 }
0x1aee   :  { %v3525_v61 = vpop.permute.xlu1 %3524 }
0x1aef   :  { %5272 = vmatprep.subr.msk.bf16.mxu0 %vm376_vm3, %v3525_v61  ;;  %v3535_v52 = vsel %vm376_vm3, %v3525_v61, 0 }
0x1af1   :  { %v5625_v63 = vpop.eup %5624 }
0x1af2   :  { %v5627_v0 = vpop.eup %5626  ;;  %v3320_v48 = vmul.f32 %v5625_v63, %v5615_v6 }
0x1af3   :  { %v3319_v3 = vmul.f32 %v5627_v0, %v5613_v49 }
0x1af4   :  { %v3325_v4 = vpack.c.bf16 %v3320_v48, %v3320_v48 }
0x1af5   :  { %v5629_v58 = vpop.eup %5628 }
0x1af6   :  { %v3318_v2 = vmul.f32 %v5629_v58, %v5617_v8 }
0x1af8   :  { %v3324_v5 = vpack.c.bf16 %v3319_v3, %v3318_v2 }
0x1afa   :  { %5112 = vmatprep.mubr.msk.bf16.mxu1 %vm503_vm4, %v3324_v5 }
0x1afb   :  { %5113 = vmatmul.mubr.msk.bf16.vlgmr.msra.gmra.mrb[84].mxu1 %vm503_vm4, %v3325_v4 }
0x1afc   :  { %5125 = vmatpush3.bf16.xpose.msra.mxu1 %v3467_v53 }
0x1b00   :  { %v3311_v7 = vpop.xlane.xlu0 %3310 }
0x1b01   :  { %5630 = vrcp.f32 %v3311_v7 }
0x1b04   :  { %v3305_v10 = vpop.xlane.xlu0 %3304 }
0x1b05   :  { %5632 = vrcp.f32 %v3305_v10 }
0x1b08   :  { %v3459_v14 = vpop.permute.xlu0 %3458 }
0x1b09   :  { %v3470_v20 = vsel %vm376_vm3, %v3459_v14, 0  ;;  %5271 = vmatprep.subr.msk.bf16.mxu1 %vm376_vm3, %v3459_v14 }
0x1b0a   :  { %5127 = vmatpush3.bf16.xpose.msra.mxu1 %v3470_v20 }
0x1b0b   :  { %v5631_v26 = vpop.eup %5630 }
0x1b0c   :  { %v3453_v6 = vpop.permute.xlu0 %3452  ;;  %v3323_v33 = vmul.f32 %v5631_v26, %v5619_v30 }
0x1b0d   :  { %5128 = vmatprep.mubr.msk.bf16.mxu1 %vm376_vm3, %v3453_v6 }
0x1b0e   :  { %v3327_v45 = vpack.c.bf16 %v3323_v33, %v3323_v33 }
0x1b0f   :  { %v5633_v27 = vpop.eup %5632 }
0x1b10   :  { %v3321_v43 = vmul.f32 %v5633_v27, %v5621_v35  ;;  %v3527_v32 = vpop.permute.xlu0 %3526 }
0x1b11   :  { %v3538_v50 = vsel %vm376_vm3, %v3527_v32, 0 }
0x1b14   :  { %v3523_v30 = vpop.permute.xlu0 %3522 }
0x1b1f   :  { %v3308_v49 = vpop.xlane.xlu1 %3307 }
0x1b20   :  { %5634 = vrcp.f32 %v3308_v49 }
0x1b23   :  { %v3455_v8 = vpop.permute.xlu1 %3454 }
0x1b24   :  { %5129 = vmatmul.mubr.msk.bf16.vlgmr.msra.gmra.mrb[88].mxu1 %vm376_vm3, %v3455_v8 }
0x1b27   :  { %v3521_v39 = vpop.permute.xlu1 %3520 }
0x1b2a   :  { %v5635_v9 = vpop.eup %5634 }
0x1b2b   :  { %v3322_v47 = vmul.f32 %v5635_v9, %v5623_v56 }
0x1b2d   :  { %v3326_v16 = vpack.c.bf16 %v3322_v47, %v3321_v43 }
0x1b2f   :  { %5120 = vmatprep.mubr.msk.bf16.mxu0 %vm503_vm4, %v3326_v16 }
0x1b30   :  { %5121 = vmatmul.mubr.msk.bf16.vlgmr.msra.gmra.mrb[84].mxu0 %vm503_vm4, %v3327_v45 }
0x1b31   :  { %5133 = vmatpush3.bf16.xpose.msra.mxu0 %v3535_v52  ;;  %5136 = vmatprep.mubr.msk.bf16.mxu0 %vm376_vm3, %v3521_v39 }
0x1b32   :  { %5273 = vmatprep.subr.msk.bf16.mxu0 %vm376_vm3, %v3527_v32 }
0x1b39   :  { %5135 = vmatpush3.bf16.xpose.msra.mxu0 %v3538_v50 }
0x1b40   :  { %5137 = vmatmul.mubr.msk.bf16.vlgmr.msra.gmra.mrb[88].mxu0 %vm376_vm3, %v3523_v30 }
0x1bce   :  { %v6713_v35 = vpop.f32.mrb[84].mxu1 }
0x1bcf   :  { %v6715_v25 = vpop.f32.mrb[85].mxu1 }
0x1bd0   :  { %v5115_v38 = vpop.f32.mrb[86].mxu1 }
0x1bd1   :  { %v6717_v56 = vpop.f32.mrb[87].mxu1 }
0x1bd2   :  { %v5344_v59 = vpack.i.bf16 %v6717_v56, %v6715_v25 }
0x1bf7   :  { %v5130_v55 = vpop.f32.mrb[88].mxu1 }
0x1bf8   :  { %v3506_v62 = vpop.f32.mrb[89].mxu1  ;;  %v3594_v58 = vsel %vm503_vm4, %v5130_v55, -inf }
0x1bf9   :  { %v5131_v54 = vpop.f32.mrb[90].mxu1  ;;  %v3588_v61 = vsel %vm503_vm4, %v3506_v62, -inf }
0x1bfa   :  { %3589 = vmax.xlane.f32.xlu1 %v3588_v61  ;;  %v3509_v63 = vpop.f32.mrb[91].mxu1 }
0x1bfb   :  { %v3591_v0 = vsel %vm503_vm4, %v3509_v63, -inf }
0x1bfc   :  { %3592 = vmax.xlane.f32.xlu0 %v3591_v0 }
0x1c00   :  { %3595 = vmax.xlane.f32.xlu0 %v3594_v58 }
0x1c03   :  { %v6724_v48 = vpop.f32.mrb[84].mxu0 }
0x1c04   :  { %v6726_v2 = vpop.f32.mrb[85].mxu0 }
0x1c05   :  { %v5359_v3 = vpack.i.bf16 %v6726_v2, %v6713_v35  ;;  %v5123_v5 = vpop.f32.mrb[86].mxu0 }
0x1c06   :  { %v6730_v4 = vpop.f32.mrb[87].mxu0 }
0x1c07   :  { %v5374_v53 = vpack.i.bf16 %v6724_v48, %v6730_v4 }
0x1c13   :  { %v5138_v7 = vpop.f32.mrb[88].mxu0 }
0x1c14   :  { %v3574_v10 = vpop.f32.mrb[89].mxu0  ;;  %v3603_v8 = vsel %vm503_vm4, %v5138_v7, -inf }
0x1c15   :  { %v5139_v14 = vpop.f32.mrb[90].mxu0  ;;  %v3597_v20 = vsel %vm503_vm4, %v3574_v10, -inf }
0x1c16   :  { %3598 = vmax.xlane.f32.xlu0 %v3597_v20  ;;  %v3577_v6 = vpop.f32.mrb[91].mxu0 }
0x1c17   :  { %v3600_v49 = vsel %vm503_vm4, %v3577_v6, -inf }
0x1c18   :  { %3601 = vmax.xlane.f32.xlu1 %v3600_v49 }
0x1c1a   :  { %3604 = vmax.xlane.f32.xlu0 %v3603_v8 }
0x1c29   :  { %3658 = vrot.lane.b32.xlu1 %v6483_v42, %s5726_s0 }
0x1c87   :  { %v3590_v26 = vpop.xlane.xlu1 %3589 }
0x1c88   :  { %v3606_v33 = vsub.f32 %v3506_v62, %v3590_v26 }
0x1c89   :  { %v3593_v27 = vpop.xlane.xlu0 %3592 }
0x1c8a   :  { %v3607_v9 = vsub.f32 %v3509_v63, %v3593_v27  ;;  %v3612_v45 = vmul.f32 1.442695, %v3606_v33 }
0x1c8c   :  { %v3614_v43 = vmul.f32 1.442695, %v3607_v9 }
0x1c8d   :  { %v3596_v47 = vpop.xlane.xlu0 %3595 }
0x1c8e   :  { %5636 = vpow2.f32 %v3614_v43  ;;  %v3608_v16 = vsub.f32 %v5130_v55, %v3596_v47 }
0x1c90   :  { %v3616_v52 = vmul.f32 1.442695, %v3608_v16 }
0x1c92   :  { %5638 = vpow2.f32 %v3616_v52 }
0x1c93   :  { %5640 = vpow2.f32 %v3612_v45 }
0x1c98   :  { %v5637_v39 = vpop.eup %5636 }
0x1c99   :  { %v3627_v32 = vsel %vm503_vm4, %v5637_v39, 0.0 }
0x1c9a   :  { %3628 = vadd.xlane.f32.xlu0 %v3627_v32 }
0x1c9c   :  { %v5639_v50 = vpop.eup %5638 }
0x1c9d   :  { %v3630_v30 = vsel %vm503_vm4, %v5639_v50, 0.0  ;;  %v5641_v42 = vpop.eup %5640 }
0x1c9e   :  { %3631 = vadd.xlane.f32.xlu1 %v3630_v30  ;;  %v3624_v38 = vsel %vm503_vm4, %v5641_v42, 0.0 }
0x1ca2   :  { %3625 = vadd.xlane.f32.xlu1 %v3624_v38 }
0x1ca3   :  { %v3599_v62 = vpop.xlane.xlu0 %3598 }
0x1ca4   :  { %v3609_v61 = vsub.f32 %v3574_v10, %v3599_v62 }
0x1ca5   :  { %v3602_v54 = vpop.xlane.xlu1 %3601 }
0x1ca6   :  { %v3618_v58 = vmul.f32 1.442695, %v3609_v61  ;;  %v3610_v10 = vsub.f32 %v3577_v6, %v3602_v54  ;;  %v5406_v54 = vld [vmem:[%s6989_s6 + $0x10] sm:$0xff]   ;;  %v5407_v61 = vld [vmem:[%s6989_s6 + $0x18] sm:$0xff]  }
0x1ca7   :  { %v3605_v55 = vpop.xlane.xlu0 %3604 }
0x1ca8   :  { %v3611_v63 = vsub.f32 %v5138_v7, %v3605_v55  ;;  %v3620_v7 = vmul.f32 1.442695, %v3610_v10 }
0x1ca9   :  { %v3659_v0 = vpop.permute.xlu1 %3658 }
0x1caa   :  { %v3622_v5 = vmul.f32 1.442695, %v3611_v63  ;;  %5140 = vmatprep.subr.bf16.mxu1 %v3659_v0 }
0x1cab   :  { %5141 = vmatpush3.bf16.msra.mxu1 %v3659_v0 }
0x1cac   :  { %5642 = vpow2.f32 %v3622_v5 }
0x1cad   :  { %5644 = vpow2.f32 %v3618_v58 }
0x1cae   :  { %5646 = vpow2.f32 %v3620_v7 }
0x1cb3   :  { %3720 = vrot.lane.b32.xlu1 %v6493_v51, %s5726_s0 }
0x1cb6   :  { %v5643_v14 = vpop.eup %5642 }
0x1cb7   :  { %v3639_v20 = vsel %vm503_vm4, %v5643_v14, 0.0  ;;  %v5645_v49 = vpop.eup %5644 }
0x1cb8   :  { %3640 = vadd.xlane.f32.xlu0 %v3639_v20  ;;  %v3633_v8 = vsel %vm503_vm4, %v5645_v49, 0.0  ;;  %v5647_v26 = vpop.eup %5646 }
0x1cb9   :  { %v3636_v51 = vsel %vm503_vm4, %v5647_v26, 0.0 }
0x1cbc   :  { %3634 = vadd.xlane.f32.xlu0 %v3633_v8 }
0x1cd2   :  { %3660 = vrot.lane.b32.xlu0 %v6489_v46, %s5726_s0 }
0x1cd6   :  { %5345 = vrot.lane.b32.xlu0 %v5344_v59, %s5728_s29 }
0x1cd7   :  { %3637 = vadd.xlane.f32.xlu1 %v3636_v51 }
0x1cda   :  { %5355 = vrot.lane.b32.xlu0 %v5354_v19, %s7002_s9 }
0x1ce8   :  { %3722 = vrot.lane.b32.xlu1 %v6499_v17, %s5726_s0 }
0x1cec   :  { %5340 = vrot.lane.b32.xlu1 %v5339_v12, %s7002_s9 }
0x1d27   :  { %v3629_v46 = vpop.xlane.xlu0 %3628 }
0x1d28   :  { %5648 = vrcp.f32 %v3629_v46 }
0x1d2b   :  { %v3632_v6 = vpop.xlane.xlu1 %3631 }
0x1d2f   :  { %v3626_v25 = vpop.xlane.xlu1 %3625 }
0x1d30   :  { %5650 = vrcp.f32 %v3626_v25 }
0x1d31   :  { %5652 = vrcp.f32 %v3632_v6 }
0x1d32   :  { %v5649_v59 = vpop.eup %5648 }
0x1d33   :  { %v3721_v56 = vpop.permute.xlu1 %3720  ;;  %v3649_v44 = vmul.f32 %v5649_v59, %v5637_v39 }
0x1d34   :  { %5148 = vmatprep.subr.bf16.mxu0 %v3721_v56 }
0x1d35   :  { %5149 = vmatpush3.bf16.msra.mxu0 %v3721_v56 }
0x1d3a   :  { %v5651_v27 = vpop.eup %5650 }
0x1d3b   :  { %v3648_v28 = vmul.f32 %v5651_v27, %v5641_v42  ;;  %v5653_v9 = vpop.eup %5652 }
0x1d3c   :  { %v3650_v13 = vmul.f32 %v5653_v9, %v5639_v50 }
0x1d3d   :  { %v3654_v19 = vpack.c.bf16 %v3649_v44, %v3648_v28 }
0x1d3e   :  { %v3655_v43 = vpack.c.bf16 %v3650_v13, %v3650_v13 }
0x1d3f   :  { %5144 = vmatprep.mubr.msk.bf16.mxu1 %vm503_vm4, %v3654_v19 }
0x1d45   :  { %v3641_v17 = vpop.xlane.xlu0 %3640 }
0x1d46   :  { %5654 = vrcp.f32 %v3641_v17 }
0x1d49   :  { %v3635_v29 = vpop.xlane.xlu0 %3634 }
0x1d4a   :  { %5656 = vrcp.f32 %v3635_v29 }
0x1d4d   :  { %v3661_v12 = vpop.permute.xlu0 %3660 }
0x1d4e   :  { %v3670_v33 = vsel %vm585_vm5, %v3661_v12, 0  ;;  %5274 = vmatprep.subr.msk.bf16.mxu1 %vm585_vm5, %v3661_v12 }
0x1d4f   :  { %5143 = vmatpush3.bf16.msra.mxu1 %v3670_v33 }
0x1d50   :  { %5156 = vmatprep.subr.bf16.mxu1 %v5714_v60  ;;  %v5655_v52 = vpop.eup %5654 }
0x1d51   :  { %v3653_v50 = vmul.f32 %v5655_v52, %v5643_v14  ;;  %v5346_v57 = vpop.permute.xlu0 %5345 }
0x1d52   :  { %5145 = vmatmul.mubr.msk.bf16.vlgmr.msra.gmra.mrb[92].mxu1 %vm503_vm4, %v3655_v43  ;;  %v5347_v51 = vunpack.i.l.bf16 %v5346_v57 }
0x1d53   :  { %5160 = vmatprep.mubr.msk.bf16.mxu1 %vm5715_vm2, %v5714_v60  ;;  %v3657_v62 = vpack.c.bf16 %v3653_v50, %v3653_v50  ;;  %5157 = vmatpush3.bf16.msra.mxu1 %v5406_v54 }
0x1d54   :  { %v5657_v39 = vpop.eup %5656  ;;  %5158 = vmatprep.subr.bf16.mxu1 %v5714_v60 }
0x1d55   :  { %v3651_v30 = vmul.f32 %v5657_v39, %v5645_v49 }
0x1d57   :  { %5159 = vmatpush3.bf16.msra.mxu1 %v5407_v61 }
0x1d58   :  { %5188 = vmatprep.subr.bf16.mxu1 %v5714_v60 }
0x1d64   :  { %v3638_v47 = vpop.xlane.xlu1 %3637 }
0x1d65   :  { %5658 = vrcp.f32 %v3638_v47 }
0x1d68   :  { %v3723_v16 = vpop.permute.xlu1 %3722 }
0x1d69   :  { %v3732_v45 = vsel %vm585_vm5, %v3723_v16, 0  ;;  %5275 = vmatprep.subr.msk.bf16.mxu0 %vm585_vm5, %v3723_v16 }
0x1d6a   :  { %5151 = vmatpush3.bf16.msra.mxu0 %v3732_v45 }
0x1d6b   :  { %5172 = vmatprep.subr.bf16.mxu0 %v5714_v60 }
0x1d6c   :  { %v5341_v35 = vpop.permute.xlu1 %5340 }
0x1d6d   :  { %v5343_v2 = vunpack.i.h.bf16 %v5341_v35 }
0x1d6f   :  { %v5659_v32 = vpop.eup %5658  ;;  %v3855_v24 = vsel %vm376_vm3, %v6575_v34, %v5343_v2  ;;  %v5356_v34 = vpop.permute.xlu0 %5355 }
0x1d70   :  { %v3652_v42 = vmul.f32 %v5659_v32, %v5647_v26  ;;  %v5348_v26 = vunpack.i.h.bf16 %v5346_v57  ;;  %v5358_v27 = vunpack.i.h.bf16 %v5356_v34  ;;  %v5357_v28 = vunpack.i.l.bf16 %v5356_v34 }
0x1d72   :  { %v3656_v38 = vpack.c.bf16 %v3652_v42, %v3651_v30  ;;  %v3861_v48 = vsel %vm1767_vm6, %v3855_v24, %v5348_v26  ;;  %v3857_v29 = vsel %vm376_vm3, %v6582_v23, %v5358_v27  ;;  %v3856_v13 = vsel %vm376_vm3, %v6571_v37, %v5357_v28 }
0x1d74   :  { %5152 = vmatprep.mubr.msk.bf16.mxu0 %vm503_vm4, %v3656_v38 }
0x1d75   :  { %5153 = vmatmul.mubr.msk.bf16.vlgmr.msra.gmra.mrb[92].mxu0 %vm503_vm4, %v3657_v62 }
0x1d76   :  { %5176 = vmatprep.mubr.msk.bf16.mxu0 %vm5715_vm2, %v5714_v60 }
0x1e25   :  { %v5146_v55 = vpop.f32.mrb[92].mxu1 }
0x1e26   :  { %v3706_v63 = vpop.f32.mrb[93].mxu1 }
0x1e27   :  { %v5147_v0 = vpop.f32.mrb[94].mxu1 }
0x1e28   :  { %v3709_v58 = vpop.f32.mrb[95].mxu1 }
0x1e29   :  { %v5349_v5 = vpack.i.bf16 %v3709_v58, %v3706_v63 }
0x1e2b   :  { %5350 = vrot.lane.b32.xlu1 %v5349_v5, %s7003_s25 }
0x1e2f   :  { %5360 = vrot.lane.b32.xlu1 %v5359_v3, %s5728_s29  ;;  %v5342_v3 = vunpack.i.l.bf16 %v5341_v35 }
0x1e33   :  { %5370 = vrot.lane.b32.xlu1 %v5369_v31, %s7002_s9  ;;  %v3854_v31 = vsel %vm376_vm3, %v6573_v21, %v5342_v3 }
0x1e34   :  { %v3860_v56 = vsel %vm1767_vm6, %v3854_v31, %v5347_v51 }
0x1e48   :  { %v5154_v14 = vpop.f32.mrb[92].mxu0 }
0x1e49   :  { %v3768_v20 = vpop.f32.mrb[93].mxu0 }
0x1e4a   :  { %v5364_v49 = vpack.i.bf16 %v3768_v20, %v5146_v55  ;;  %v5155_v8 = vpop.f32.mrb[94].mxu0 }
0x1e4b   :  { %v3771_v10 = vpop.f32.mrb[95].mxu0 }
0x1e4c   :  { %v5379_v7 = vpack.i.bf16 %v5154_v14, %v3771_v10  ;;  %5365 = vrot.lane.b32.xlu0 %v5364_v49, %s7003_s25 }
0x1e4e   :  { %5380 = vrot.lane.b32.xlu1 %v5379_v7, %s7003_s25 }
0x1e50   :  { %5375 = vrot.lane.b32.xlu0 %v5374_v53, %s5728_s29 }
0x1e9d   :  { %v5351_v46 = vpop.permute.xlu1 %5350 }
0x1e9e   :  { %v5353_v6 = vunpack.i.h.bf16 %v5351_v46  ;;  %v5352_v25 = vunpack.i.l.bf16 %v5351_v46 }
0x1ea0   :  { %v3866_v4 = vsel %vm503_vm4, %v3860_v56, %v5352_v25  ;;  %v3867_v53 = vsel %vm503_vm4, %v3861_v48, %v5353_v6 }
0x1ea1   :  { %v3872_v59 = vpack.c.bf16 %v3867_v53, %v3866_v4  ;;  %v5361_v21 = vpop.permute.xlu1 %5360 }
0x1ea2   :  { %v5363_v44 = vunpack.i.h.bf16 %v5361_v21  ;;  %v5362_v19 = vunpack.i.l.bf16 %v5361_v21 }
0x1ea3   :  { %5161 = vmatmul.mubr.msk.bf16.vlgmr.msra.gmra.mrb[96].mxu1 %vm152_vm1, %v3872_v59 }
0x1ea4   :  { %5164 = vmatprep.mubr.msk.bf16.mxu1 %vm5715_vm2, %v5714_v60  ;;  %v3863_v43 = vsel %vm1767_vm6, %v3857_v29, %v5363_v44  ;;  %v3862_v47 = vsel %vm1767_vm6, %v3856_v13, %v5362_v19 }
0x1ea5   :  { %v5371_v17 = vpop.permute.xlu1 %5370 }
0x1ea6   :  { %v5373_v16 = vunpack.i.h.bf16 %v5371_v17  ;;  %v5372_v45 = vunpack.i.l.bf16 %v5371_v17 }
0x1ea8   :  { %v3859_v37 = vsel %vm376_vm3, %v6580_v22, %v5373_v16  ;;  %v3858_v38 = vsel %vm376_vm3, %v6584_v18, %v5372_v45  ;;  %v4564_v18 = vld [vmem:[%s6993_s10 + $0x1] ss:$0 sm:$0xff]  ;;  %v5408_v16 = vld [vmem:[%s6990_s7 + $0x10] sm:$0xff]  }
0x1ea9   :  { %5173 = vmatpush3.bf16.msra.mxu0 %v5408_v16 }
0x1eaa   :  { %5174 = vmatprep.subr.bf16.mxu0 %v5714_v60 }
0x1ebe   :  { %v5366_v9 = vpop.permute.xlu0 %5365 }
0x1ebf   :  { %v5368_v12 = vunpack.i.h.bf16 %v5366_v9  ;;  %v5367_v33 = vunpack.i.l.bf16 %v5366_v9 }
0x1ec0   :  { %v5381_v32 = vpop.permute.xlu1 %5380 }
0x1ec1   :  { %v3868_v52 = vsel %vm503_vm4, %v3862_v47, %v5367_v33  ;;  %v3869_v39 = vsel %vm503_vm4, %v3863_v43, %v5368_v12  ;;  %v5383_v62 = vunpack.i.h.bf16 %v5381_v32  ;;  %v5382_v54 = vunpack.i.l.bf16 %v5381_v32 }
0x1ec2   :  { %v3873_v50 = vpack.c.bf16 %v3869_v39, %v3868_v52  ;;  %v5376_v30 = vpop.permute.xlu0 %5375  ;;  %v5409_v39 = vld [vmem:[%s6990_s7 + $0x18] sm:$0xff]   ;;  %s5730_s7 = smov [#allocation3]  }
0x1ec3   :  { %v5378_v42 = vunpack.i.h.bf16 %v5376_v30  ;;  %v5377_v23 = vunpack.i.l.bf16 %v5376_v30  ;;  %5175 = vmatpush3.bf16.msra.mxu0 %v5409_v39  ;;  %s4423_s28 = sshll.u32 %s5730_s7, 4  ;;  %s4424_s28 = int_to_ptr.vmem [resolvable:$true] %s4423_s28 }
0x1ec4   :  { %5165 = vmatmul.mubr.msk.bf16.gmra.mrb[100].mxu1 %vm152_vm1, %v3873_v50  ;;  %5216 = vmatprep.subr.bf16.mxu0 %v5714_v60  ;;  %p5695_p1 = scmp.lt.s32.totalorder %s4424_s28, %s4424_s28 }
0x1ec5   :  { %v3864_v61 = vsel %vm1767_vm6, %v3858_v38, %v5377_v23  ;;  %v3865_v55 = vsel %vm1767_vm6, %v3859_v37, %v5378_v42  ;;  %5168 = vmatprep.mubr.msk.bf16.mxu1 %vm5715_vm2, %v5714_v60 }
0x1ec6   :  { %v3870_v63 = vsel %vm503_vm4, %v3864_v61, %v5382_v54  ;;  %v3871_v0 = vsel %vm503_vm4, %v3865_v55, %v5383_v62 }
0x1ec7   :  { %v3874_v58 = vpack.c.bf16 %v3871_v0, %v3870_v63  ;;  %v6877_v63 = vld [vmem:[%s6987_s4 + $0x6] ss:$0 sm:$0xff] }
0x1ecc   :  { %5169 = vmatmul.mubr.msk.bf16.gmra.mrb[104].mxu1 %vm152_vm1, %v3874_v58 }
0x1ecd   :  { %5204 = vmatprep.mubr.msk.bf16.mxu1 %vm5715_vm2, %v5714_v60 }
0x1f76   :  { %v3935_v22 = vpop.f32.mrb[96].mxu1 }
0x1f77   :  { %v3958_v5 = vadd.f32 %v3935_v22, %v6409_v1  ;;  %v5162_v14 = vpop.f32.mrb[97].mxu1 }
0x1f78   :  { %v3938_v20 = vpop.f32.mrb[98].mxu1 }
0x1f79   :  { %v6837_v49 = vadd.f32 %v4564_v18, %v3958_v5  ;;  %v3959_v8 = vadd.f32 %v3938_v20, %v6412_v41  ;;  %v5163_v10 = vpop.f32.mrb[99].mxu1  ;;  %v6883_v5 = vld [vmem:[%s6987_s4 + $0x7] ss:$0 sm:$0xff] }
0x1f7b   :  { %v3973_v7 = vadd.f32 %v4564_v18, %v3959_v8  ;;  %v3978_v35 = vsel %vm152_vm1, %v6837_v49, 0.0 }
0x1f7c   :  { %3979 = vadd.xlane.f32.xlu0 %v3978_v35 }
0x1f7d   :  { %v3981_v2 = vsel %vm152_vm1, %v3973_v7, 0.0 }
0x1f7e   :  { %3982 = vadd.xlane.f32.xlu1 %v3981_v2 }
0x1f97   :  { %v3943_v3 = vpop.f32.mrb[100].mxu1 }
0x1f98   :  { %v3960_v57 = vadd.f32 %v3943_v3, %v6419_v11  ;;  %v5166_v24 = vpop.f32.mrb[101].mxu1 }
0x1f99   :  { %v3946_v1 = vpop.f32.mrb[102].mxu1 }
0x1f9a   :  { %v3974_v31 = vadd.f32 %v4564_v18, %v3960_v57  ;;  %v3961_v26 = vadd.f32 %v3946_v1, %v6422_v15  ;;  %v5167_v51 = vpop.f32.mrb[103].mxu1 }
0x1f9c   :  { %v6845_v46 = vadd.f32 %v4564_v18, %v3961_v26  ;;  %v3984_v41 = vsel %vm152_vm1, %v3974_v31, 0.0 }
0x1f9d   :  { %3985 = vadd.xlane.f32.xlu0 %v3984_v41 }
0x1f9e   :  { %v3987_v48 = vsel %vm152_vm1, %v6845_v46, 0.0 }
0x1f9f   :  { %v3951_v6 = vpop.f32.mrb[104].mxu1 }
0x1fa0   :  { %v3962_v25 = vadd.f32 %v3951_v6, %v6429_v36  ;;  %v5170_v56 = vpop.f32.mrb[105].mxu1 }
0x1fa1   :  { %3988 = vadd.xlane.f32.xlu0 %v3987_v48  ;;  %v3954_v11 = vpop.f32.mrb[106].mxu1 }
0x1fa2   :  { %v6851_v4 = vadd.f32 %v4564_v18, %v3962_v25  ;;  %v3963_v53 = vadd.f32 %v3954_v11, %v6432_v40  ;;  %v5171_v15 = vpop.f32.mrb[107].mxu1 }
0x1fa4   :  { %v6854_v59 = vadd.f32 %v4564_v18, %v3963_v53  ;;  %v3990_v30 = vsel %vm152_vm1, %v6851_v4, 0.0 }
0x1fa6   :  { %v3993_v42 = vsel %vm152_vm1, %v6854_v59, 0.0 }
0x2009   :  { %v3980_v21 = vpop.xlane.xlu0 %3979 }
0x200a   :  { %v3996_v34 = vmul.f32 0.03125, %v3980_v21 }
0x200b   :  { %v3983_v27 = vpop.xlane.xlu1 %3982 }
0x200c   :  { %v4002_v28 = vsub.f32 %v6837_v49, %v3996_v34  ;;  %v3997_v44 = vmul.f32 0.03125, %v3983_v27 }
0x200e   :  { %v4003_v36 = vsub.f32 %v3973_v7, %v3997_v44  ;;  %v4008_v19 = vmul.f32 %v4002_v28, %v4002_v28 }
0x2010   :  { %v4014_v17 = vsel %vm152_vm1, %v4008_v19, 0.0  ;;  %v4009_v9 = vmul.f32 %v4003_v36, %v4003_v36  ;;  %v5411_v19 = vld [vmem:[%s6991_s8 + $0x48] sm:$0xff]  }
0x2011   :  { %4015 = vadd.xlane.f32.xlu0 %v4014_v17  ;;  %v5412_v17 = vld [vmem:[%s6991_s8 + $0x50] sm:$0xff]  }
0x2012   :  { %v4017_v29 = vsel %vm152_vm1, %v4009_v9, 0.0  ;;  %v5413_v9 = vld [vmem:[%s6991_s8 + $0x58] sm:$0xff]  }
0x2013   :  { %4018 = vadd.xlane.f32.xlu1 %v4017_v29  ;;  %v5414_v29 = vld [vmem:[%s6991_s8 + $0x60] sm:$0xff]  }
0x202a   :  { %v3986_v13 = vpop.xlane.xlu0 %3985 }
0x202b   :  { %v3998_v40 = vmul.f32 0.03125, %v3986_v13  ;;  %v5415_v13 = vld [vmem:[%s6991_s8 + $0x68] sm:$0xff]  }
0x202d   :  { %v4004_v12 = vsub.f32 %v3974_v31, %v3998_v40  ;;  %v5416_v40 = vld [vmem:[%s6991_s8 + $0x70] sm:$0xff]  }
0x202e   :  { %v3989_v33 = vpop.xlane.xlu0 %3988 }
0x202f   :  { %v3999_v43 = vmul.f32 0.03125, %v3989_v33  ;;  %v4010_v47 = vmul.f32 %v4004_v12, %v4004_v12 }
0x2031   :  { %v4005_v45 = vsub.f32 %v6845_v46, %v3999_v43  ;;  %v4020_v52 = vsel %vm152_vm1, %v4010_v47, 0.0 }
0x2032   :  { %4021 = vadd.xlane.f32.xlu0 %v4020_v52 }
0x2033   :  { %v4011_v32 = vmul.f32 %v4005_v45, %v4005_v45 }
0x2035   :  { %v4023_v50 = vsel %vm152_vm1, %v4011_v32, 0.0 }
0x2036   :  { %4024 = vadd.xlane.f32.xlu1 %v4023_v50  ;;  %3991 = vadd.xlane.f32.xlu0 %v3990_v30 }
0x203a   :  { %3994 = vadd.xlane.f32.xlu1 %v3993_v42 }
0x209e   :  { %v4016_v23 = vpop.xlane.xlu0 %4015 }
0x209f   :  { %v4032_v37 = vmul.f32 0.03125, %v4016_v23 }
0x20a0   :  { %v4019_v38 = vpop.xlane.xlu1 %4018 }
0x20a1   :  { %v4038_v62 = vadd.f32 1e-05, %v4032_v37  ;;  %v4033_v54 = vmul.f32 0.03125, %v4019_v38 }
0x20a3   :  { %5660 = vrsqrt.f32 %v4038_v62  ;;  %v4039_v61 = vadd.f32 1e-05, %v4033_v54  ;;  %v6943_v54 = vld [vmem:[%s6994_s11 + $0x1] ss:$0 sm:$0xff] }
0x20a5   :  { %5662 = vrsqrt.f32 %v4039_v61 }
0x20ad   :  { %v5661_v55 = vpop.eup %5660 }
0x20ae   :  { %v4050_v0 = vmul.f32 %v5661_v55, %v4002_v28 }
0x20af   :  { %v5663_v58 = vpop.eup %5662 }
0x20b0   :  { %v4060_v22 = vmul.f32 %v6877_v63, %v4050_v0  ;;  %v4051_v18 = vmul.f32 %v5663_v58, %v4003_v36  ;;  %v5410_v36 = vld [vmem:[%s6991_s8 + $0x40] sm:$0xff]  }
0x20b1   :  { %5189 = vmatpush3.bf16.msra.mxu1 %v5410_v36 }
0x20b2   :  { %v4061_v14 = vmul.f32 %v6877_v63, %v4051_v18  ;;  %v4070_v20 = vadd.f32 %v6883_v5, %v4060_v22  ;;  %5190 = vmatprep.subr.bf16.mxu1 %v5714_v60 }
0x20b4   :  { %v4071_v8 = vadd.f32 %v6883_v5, %v4061_v14 }
0x20b5   :  { %5191 = vmatpush3.bf16.msra.mxu1 %v5411_v19 }
0x20b6   :  { %v4076_v10 = vpack.c.bf16 %v4071_v8, %v4070_v20  ;;  %5192 = vmatprep.subr.bf16.mxu1 %v5714_v60 }
0x20b8   :  { %5177 = vmatmul.mubr.msk.bf16.vlgmr.msra.gmra.mrb[96].mxu0 %vm152_vm1, %v4076_v10 }
0x20b9   :  { %5180 = vmatprep.mubr.msk.bf16.mxu0 %vm5715_vm2, %v5714_v60  ;;  %5193 = vmatpush3.bf16.msra.mxu1 %v5412_v17 }
0x20ba   :  { %5194 = vmatprep.subr.bf16.mxu1 %v5714_v60 }
0x20bd   :  { %5195 = vmatpush3.bf16.msra.mxu1 %v5413_v9 }
0x20be   :  { %5196 = vmatprep.subr.bf16.mxu1 %v5714_v60 }
0x20bf   :  { %v4022_v7 = vpop.xlane.xlu0 %4021 }
0x20c0   :  { %v4034_v35 = vmul.f32 0.03125, %v4022_v7 }
0x20c1   :  { %5197 = vmatpush3.bf16.msra.mxu1 %v5414_v29 }
0x20c2   :  { %v4040_v2 = vadd.f32 1e-05, %v4034_v35  ;;  %5198 = vmatprep.subr.bf16.mxu1 %v5714_v60 }
0x20c3   :  { %v4025_v3 = vpop.xlane.xlu1 %4024  ;;  %v3992_v57 = vpop.xlane.xlu0 %3991 }
0x20c4   :  { %5664 = vrsqrt.f32 %v4040_v2  ;;  %v4035_v24 = vmul.f32 0.03125, %v4025_v3  ;;  %v4000_v1 = vmul.f32 0.03125, %v3992_v57 }
0x20c5   :  { %5199 = vmatpush3.bf16.msra.mxu1 %v5415_v13 }
0x20c6   :  { %v4041_v31 = vadd.f32 1e-05, %v4035_v24  ;;  %v4006_v26 = vsub.f32 %v6851_v4, %v4000_v1  ;;  %5200 = vmatprep.subr.bf16.mxu1 %v5714_v60 }
0x20c7   :  { %v3995_v51 = vpop.xlane.xlu1 %3994 }
0x20c8   :  { %5666 = vrsqrt.f32 %v4041_v31  ;;  %v4001_v41 = vmul.f32 0.03125, %v3995_v51  ;;  %v4012_v6 = vmul.f32 %v4006_v26, %v4006_v26 }
0x20c9   :  { %5201 = vmatpush3.bf16.msra.mxu1 %v5416_v40 }
0x20ca   :  { %v4007_v25 = vsub.f32 %v6854_v59, %v4001_v41  ;;  %v4026_v56 = vsel %vm152_vm1, %v4012_v6, 0.0  ;;  %5202 = vmatprep.subr.bf16.mxu1 %v5714_v60 }
0x20cb   :  { %4027 = vadd.xlane.f32.xlu0 %v4026_v56 }
0x20cc   :  { %v4013_v48 = vmul.f32 %v4007_v25, %v4007_v25 }
0x20ce   :  { %v5665_v11 = vpop.eup %5664  ;;  %v4029_v53 = vsel %vm152_vm1, %v4013_v48, 0.0 }
0x20cf   :  { %v4052_v15 = vmul.f32 %v5665_v11, %v4004_v12  ;;  %4030 = vadd.xlane.f32.xlu1 %v4029_v53  ;;  %v5417_v12 = vld [vmem:[%s6991_s8 + $0x78] sm:$0xff]  }
0x20d0   :  { %5203 = vmatpush3.bf16.msra.mxu1 %v5417_v12 }
0x20d1   :  { %v4062_v27 = vmul.f32 %v6877_v63, %v4052_v15 }
0x20d2   :  { %v5667_v21 = vpop.eup %5666 }
0x20d3   :  { %v4053_v34 = vmul.f32 %v5667_v21, %v4005_v45  ;;  %v4072_v28 = vadd.f32 %v6883_v5, %v4062_v27 }
0x20d5   :  { %v4063_v4 = vmul.f32 %v6877_v63, %v4053_v34 }
0x20d7   :  { %v4073_v44 = vadd.f32 %v6883_v5, %v4063_v4 }
0x20d9   :  { %v4077_v59 = vpack.c.bf16 %v4073_v44, %v4072_v28 }
0x20db   :  { %5181 = vmatmul.mubr.msk.bf16.gmra.mrb[100].mxu0 %vm152_vm1, %v4077_v59 }
0x20dc   :  { %5184 = vmatprep.mubr.msk.bf16.mxu0 %vm5715_vm2, %v5714_v60 }
0x2158   :  { %v4028_v33 = vpop.xlane.xlu0 %4027 }
0x2159   :  { %v4036_v43 = vmul.f32 0.03125, %v4028_v33 }
0x215b   :  { %v4042_v47 = vadd.f32 1e-05, %v4036_v43 }
0x215c   :  { %v4031_v16 = vpop.xlane.xlu1 %4030 }
0x215d   :  { %5668 = vrsqrt.f32 %v4042_v47  ;;  %v4037_v45 = vmul.f32 0.03125, %v4031_v16 }
0x215f   :  { %v4043_v52 = vadd.f32 1e-05, %v4037_v45 }
0x2161   :  { %5670 = vrsqrt.f32 %v4043_v52  ;;  %v5418_v52 = vld [vmem:[%s6996_s13] sm:$0xff]  }
0x2162   :  { %5217 = vmatpush3.bf16.msra.mxu0 %v5418_v52 }
0x2163   :  { %5218 = vmatprep.subr.bf16.mxu0 %v5714_v60 }
0x2167   :  { %v5669_v39 = vpop.eup %5668 }
0x2168   :  { %v4054_v32 = vmul.f32 %v5669_v39, %v4006_v26  ;;  %v5419_v39 = vld [vmem:[%s6996_s13 + $0x8] sm:$0xff]  }
0x2169   :  { %5219 = vmatpush3.bf16.msra.mxu0 %v5419_v39 }
0x216a   :  { %v4064_v42 = vmul.f32 %v6877_v63, %v4054_v32 }
0x216b   :  { %v5671_v50 = vpop.eup %5670 }
0x216c   :  { %v4055_v30 = vmul.f32 %v5671_v50, %v4007_v25  ;;  %v4074_v37 = vadd.f32 %v6883_v5, %v4064_v42 }
0x216e   :  { %v4065_v23 = vmul.f32 %v6877_v63, %v4055_v30 }
0x2170   :  { %v4075_v38 = vadd.f32 %v6883_v5, %v4065_v23 }
0x2172   :  { %v4078_v62 = vpack.c.bf16 %v4075_v38, %v4074_v37 }
0x2174   :  { %5185 = vmatmul.mubr.msk.bf16.gmra.mrb[104].mxu0 %vm152_vm1, %v4078_v62 }
0x2175   :  { %5220 = vmatprep.mubr.msk.bf16.mxu0 %vm5715_vm2, %v5714_v60 }
0x218b   :  { %v4147_v61 = vpop.f32.mrb[96].mxu0 }
0x218c   :  { %v4148_v55 = vadd.f32 %v6943_v54, %v4147_v61  ;;  %v5178_v0 = vpop.f32.mrb[97].mxu0 }
0x218d   :  { %v4150_v63 = vpop.f32.mrb[98].mxu0 }
0x218e   :  { %v4170_v58 = vmul.f32 %v4148_v55, %v4148_v55  ;;  %v4151_v22 = vadd.f32 %v6943_v54, %v4150_v63  ;;  %v5179_v18 = vpop.f32.mrb[99].mxu0 }
0x2190   :  { %v4176_v5 = vmul.f32 %v4170_v58, %v4148_v55  ;;  %v4171_v14 = vmul.f32 %v4151_v22, %v4151_v22 }
0x2192   :  { %v4182_v20 = vmul.f32 0.044715, %v4176_v5  ;;  %v4177_v8 = vmul.f32 %v4171_v14, %v4151_v22 }
0x2194   :  { %v4188_v10 = vadd.f32 %v4182_v20, %v4148_v55  ;;  %v4183_v7 = vmul.f32 0.044715, %v4177_v8 }
0x2196   :  { %v4194_v35 = vmul.f32 0.7978846, %v4188_v10  ;;  %v4189_v2 = vadd.f32 %v4183_v7, %v4151_v22 }
0x2198   :  { %5672 = vtanh.f32 %v4194_v35  ;;  %v4195_v3 = vmul.f32 0.7978846, %v4189_v2 }
0x219a   :  { %5674 = vtanh.f32 %v4195_v3 }
0x21a2   :  { %v5673_v57 = vpop.eup %5672 }
0x21a3   :  { %v4206_v24 = vadd.f32 1.0, %v5673_v57 }
0x21a4   :  { %v5675_v1 = vpop.eup %5674 }
0x21a5   :  { %v4212_v31 = vmul.f32 0.5, %v4206_v24  ;;  %v4207_v26 = vadd.f32 1.0, %v5675_v1 }
0x21a7   :  { %v4213_v51 = vmul.f32 0.5, %v4207_v26  ;;  %v4218_v41 = vmul.f32 %v4212_v31, %v4148_v55  ;;  %v4595_v31 = vld [vmem:[%s6995_s12 + $0x1] ss:$0 sm:$0xff]  ;;  %s5690_s12 = scalar_lea.vmem %s4424_s28, 256 }
0x21a8   :  { %p5691_p0 = scmp.ne.s32.totalorder %s4424_s28, %s5690_s12  ;;  %p5696_p2 = scmp.lt.s32.totalorder %s5690_s12, %s5690_s12 }
0x21a9   :  { %v4219_v6 = vmul.f32 %v4213_v51, %v4151_v22 }
0x21aa   :  { %p5697_p3 = por %p5696_p2, %p5695_p1 }
0x21ab   :  { %v4224_v25 = vpack.c.bf16 %v4219_v6, %v4218_v41 }
0x21ac   :  { %p5698_p4 = pnand %p5697_p3, %p5691_p0 }
0x21ad   :  { %5205 = vmatmul.mubr.bf16.vlgmr.msra.gmra.mrb[108].mxu1 %v4224_v25 }
0x21ae   :  { %v4155_v56 = vpop.f32.mrb[100].mxu0  ;;  %5208 = vmatprep.mubr.msk.bf16.mxu1 %vm5715_vm2, %v5714_v60 }
0x21af   :  { %v4156_v48 = vadd.f32 %v6943_v54, %v4155_v56  ;;  %v5182_v11 = vpop.f32.mrb[101].mxu0 }
0x21b0   :  { %v4158_v53 = vpop.f32.mrb[102].mxu0 }
0x21b1   :  { %v4172_v15 = vmul.f32 %v4156_v48, %v4156_v48  ;;  %v4159_v21 = vadd.f32 %v6943_v54, %v4158_v53  ;;  %v5183_v34 = vpop.f32.mrb[103].mxu0 }
0x21b3   :  { %v4178_v27 = vmul.f32 %v4172_v15, %v4156_v48  ;;  %v4173_v4 = vmul.f32 %v4159_v21, %v4159_v21 }
0x21b5   :  { %v4184_v28 = vmul.f32 0.044715, %v4178_v27  ;;  %v4179_v44 = vmul.f32 %v4173_v4, %v4159_v21 }
0x21b7   :  { %v4190_v59 = vadd.f32 %v4184_v28, %v4156_v48  ;;  %v4185_v36 = vmul.f32 0.044715, %v4179_v44 }
0x21b9   :  { %v4196_v19 = vmul.f32 0.7978846, %v4190_v59  ;;  %v4191_v17 = vadd.f32 %v4185_v36, %v4159_v21 }
0x21bb   :  { %5676 = vtanh.f32 %v4196_v19  ;;  %v4197_v9 = vmul.f32 0.7978846, %v4191_v17 }
0x21bd   :  { %5678 = vtanh.f32 %v4197_v9 }
0x21c5   :  { %v5677_v29 = vpop.eup %5676 }
0x21c6   :  { %v4208_v13 = vadd.f32 1.0, %v5677_v29 }
0x21c7   :  { %v5679_v40 = vpop.eup %5678 }
0x21c8   :  { %v4209_v12 = vadd.f32 1.0, %v5679_v40  ;;  %v4214_v33 = vmul.f32 0.5, %v4208_v13 }
0x21ca   :  { %v4215_v43 = vmul.f32 0.5, %v4209_v12  ;;  %v4220_v47 = vmul.f32 %v4214_v33, %v4156_v48 }
0x21cc   :  { %v4221_v16 = vmul.f32 %v4215_v43, %v4159_v21 }
0x21ce   :  { %v4225_v45 = vpack.c.bf16 %v4221_v16, %v4220_v47 }
0x21d0   :  { %5209 = vmatmul.mubr.bf16.gmra.mrb[112].mxu1 %v4225_v45 }
0x21d1   :  { %5212 = vmatprep.mubr.msk.bf16.mxu1 %vm5715_vm2, %v5714_v60 }
0x2247   :  { %v4163_v32 = vpop.f32.mrb[104].mxu0 }
0x2248   :  { %v4164_v50 = vadd.f32 %v6943_v54, %v4163_v32  ;;  %v5186_v30 = vpop.f32.mrb[105].mxu0 }
0x2249   :  { %v4166_v42 = vpop.f32.mrb[106].mxu0 }
0x224a   :  { %v4174_v23 = vmul.f32 %v4164_v50, %v4164_v50  ;;  %v4167_v37 = vadd.f32 %v6943_v54, %v4166_v42  ;;  %v5187_v38 = vpop.f32.mrb[107].mxu0 }
0x224c   :  { %v4180_v62 = vmul.f32 %v4174_v23, %v4164_v50  ;;  %v4175_v61 = vmul.f32 %v4167_v37, %v4167_v37 }
0x224e   :  { %v4186_v55 = vmul.f32 0.044715, %v4180_v62  ;;  %v4181_v0 = vmul.f32 %v4175_v61, %v4167_v37 }
0x2250   :  { %v4192_v63 = vadd.f32 %v4186_v55, %v4164_v50  ;;  %v4187_v60 = vmul.f32 0.044715, %v4181_v0 }
0x2252   :  { %v4198_v58 = vmul.f32 0.7978846, %v4192_v63  ;;  %v4193_v22 = vadd.f32 %v4187_v60, %v4167_v37 }
0x2254   :  { %5680 = vtanh.f32 %v4198_v58  ;;  %v4199_v18 = vmul.f32 0.7978846, %v4193_v22 }
0x2256   :  { %5682 = vtanh.f32 %v4199_v18 }
0x225e   :  { %v5681_v5 = vpop.eup %5680 }
0x225f   :  { %v4210_v14 = vadd.f32 1.0, %v5681_v5 }
0x2260   :  { %v5683_v20 = vpop.eup %5682 }
0x2261   :  { %v4211_v8 = vadd.f32 1.0, %v5683_v20  ;;  %v4216_v10 = vmul.f32 0.5, %v4210_v14 }
0x2263   :  { %v4217_v7 = vmul.f32 0.5, %v4211_v8  ;;  %v4222_v35 = vmul.f32 %v4216_v10, %v4164_v50 }
0x2265   :  { %v4223_v54 = vmul.f32 %v4217_v7, %v4167_v37 }
0x2267   :  { %v4226_v2 = vpack.c.bf16 %v4223_v54, %v4222_v35 }
0x2269   :  { %5213 = vmatmul.mubr.bf16.gmra.mrb[116].mxu1 %v4226_v2 }
0x2280   :  { %v4334_v3 = vpop.f32.mrb[108].mxu1 }
0x2281   :  { %v5206_v57 = vpop.f32.mrb[109].mxu1  ;;  %v4335_v51 = vadd.f32 %v4595_v31, %v4334_v3 }
0x2282   :  { %v4337_v24 = vpop.f32.mrb[110].mxu1 }
0x2283   :  { %v5207_v1 = vpop.f32.mrb[111].mxu1  ;;  %v4353_v48 = vadd.f32 %v4335_v51, %v6837_v49 }
0x22a3   :  { %v4341_v26 = vpop.f32.mrb[112].mxu1 }
0x22a4   :  { %v5210_v41 = vpop.f32.mrb[113].mxu1 }
0x22a5   :  { %v4343_v6 = vpop.f32.mrb[114].mxu1 }
0x22a6   :  { %v4344_v25 = vadd.f32 %v4595_v31, %v4343_v6  ;;  %v5211_v56 = vpop.f32.mrb[115].mxu1 }
0x22a8   :  { %v4354_v11 = vadd.f32 %v4344_v25, %v6845_v46 }
0x22aa   :  { %v4355_v53 = vpack.c.bf16 %v4354_v11, %v4353_v48 }
0x22ac   :  { %5221 = vmatmul.mubr.msk.bf16.vlgmr.msra.gmra.mrb[108].mxu0 %vm152_vm1, %v4355_v53 }
0x233c   :  { %v4348_v15 = vpop.f32.mrb[116].mxu1 }
0x233d   :  { %v5214_v21 = vpop.f32.mrb[117].mxu1 }
0x233e   :  { %v4350_v34 = vpop.f32.mrb[118].mxu1 }
0x233f   :  { %v5215_v27 = vpop.f32.mrb[119].mxu1 }
0x237f   :  { %v4409_v4 = vpop.f32.mrb[108].mxu0 }
0x2380   :  { %4416 = vst.msk [vmem:[#allocation3] sm:$0xff] %vm376_vm3, %v4409_v4  ;;  %v5222_v28 = vpop.f32.mrb[109].mxu0 }
0x2381   :  { %v4412_v44 = vpop.f32.mrb[110].mxu0 }
0x2382   :  { %4417 = vst.msk [vmem:[#allocation3 + $0x8] sm:$0xff] %vm376_vm3, %v4412_v44  ;;  %v5223_v49 = vpop.f32.mrb[111].mxu0 }
0x2383   :  { %5701 = shalt.err (!%p5698_p4)
}
0x2384   :  { %s5702_s4 = scalar_lea.hbm %s6997_s14, 256 }
0x2385   :  { %p5703_p5 = scmp.ne.s32.totalorder %s6997_s14, %s5702_s4  ;;  %p5706_p6 = scmp.lt.u32.totalorder %s5702_s4, %s6997_s14 }
0x2387   :  { %p5708_p7 = pnand %p5706_p6, %p5703_p5 }
0x2389   :  { %5711 = shalt.err (!%p5708_p7)
}
0x238a   :  { %s5731_s19 = smov 128  }
0x238b   :  { %4429 = dma.vmem_to_hbm [thread:$0]  %s4424_s28, 256, %s6997_s14, [#allocation4], %s5731_s19, %s5731_s19, %s7002_s9  }
0x238c   :  { %5712 = dma.done.wait [#allocation4], 256  }
0x238d   :  { %5713 = vsyncadd [#allocation4], 4294967040 }
0x238e   :  { %4433 = vsyncpa [#allocation4], 1 }

</bundles_post_ra>
